<compile_context>
chip_gen: v7x
topology: tpu7x:2x2x1
jax: 0.10.0
libtpu: 0.0.40
codegen_flags: <defaults>
</compile_context>

<pallas_src>
import functools

import jax
import jax.numpy as jnp
from jax import lax
from jax.experimental import pallas as pl
from jax.experimental.pallas import tpu as pltpu


def _vae_kernel(x_ref, eps_ref,
                w1_ref, b1_ref, w23_ref, b23_ref,
                wd1_ref, bd1_ref, wd2_ref, bd2_ref,
                out_ref, kl_ref,
                *, batch, tile_b, lp):
    b = pl.program_id(0)

    x = x_ref[...]                                    # (TILE_B, 1600) bf16
    eps = eps_ref[...]                                # (TILE_B, LP)   f32

    # ---- Variational encoder ----
    # bf16 MXU matmul, f32 accumulation; bias-add / relu in f32.
    h = jnp.dot(x, w1_ref[...], preferred_element_type=jnp.float32) + b1_ref[...]
    h = jnp.maximum(h, 0.0)                           # relu, (TILE_B, 512) f32

    # Fused mu / log_sigma projection: single (512, 2*LP) bf16 matmul, then a
    # 128-aligned (free) lane split.
    y = jnp.dot(h.astype(jnp.bfloat16), w23_ref[...],
                preferred_element_type=jnp.float32) + b23_ref[...]
    mu = y[:, :lp]                                    # (TILE_B, LP) f32
    log_sigma = y[:, lp:]                             # (TILE_B, LP) f32
    sigma = jnp.exp(log_sigma)                        # padded cols: exp(0) = 1

    z = mu + sigma * eps                              # reparameterization (padded cols -> 0)

    # KL divergence.  Padded latent columns contribute exactly 0
    # (0.5 * (1 + 0 - 0 - 1)); padded batch rows are masked out explicitly.
    kl_row = 0.5 * jnp.sum(sigma * sigma + mu * mu - 2.0 * log_sigma - 1.0,
                           axis=-1, keepdims=True)    # (TILE_B, 1)
    row_ids = b * tile_b + lax.broadcasted_iota(jnp.int32, (tile_b, 1), 0)
    kl_row = jnp.where(row_ids < batch, kl_row, 0.0)
    kl_ref[...] = jnp.reshape(jnp.sum(kl_row), (1, 1, 1))

    # ---- Decoder ----
    hd = jnp.dot(z.astype(jnp.bfloat16), wd1_ref[...],
                 preferred_element_type=jnp.float32) + bd1_ref[...]
    hd = jnp.maximum(hd, 0.0)                         # relu, (TILE_B, 512) f32

    logits = jnp.dot(hd.astype(jnp.bfloat16), wd2_ref[...],
                     preferred_element_type=jnp.float32) + bd2_ref[...]
    # Single EUP op (tanh-based); swap to pl.reciprocal(1+exp(-x), approx=True)
    # only if a bundle dump shows the EUP slot binding after the bf16 change.
    out_ref[...] = jax.nn.sigmoid(logits)             # (TILE_B, 1600) f32


@jax.jit
def vae_forward(x_nchw, eps, params):
    """x_nchw: (B, C, H, W) with C*H*W == 1600; eps: (B, L) standard normals."""
    B = x_nchw.shape[0]
    x_flat = x_nchw.reshape(B, -1).astype(jnp.float32)    # torch.flatten(x, 1)
    D_in = x_flat.shape[1]                                 # 1600
    L = eps.shape[1]

    (w1, b1, w2, b2, w3, b3, wd1, bd1, wd2, bd2) = params
    H = w1.shape[1]                                        # 512
    LP = max(128, pl.cdiv(L, 128) * 128)                   # lane-aligned latent width

    # Fused, lane-aligned mu|log_sigma projection (zero-padded latent columns).
    w23 = (jnp.zeros((H, 2 * LP), jnp.float32)
           .at[:, :L].set(w2).at[:, LP:LP + L].set(w3))
    b23 = (jnp.zeros((1, 2 * LP), jnp.float32)
           .at[:, :L].set(b2).at[:, LP:LP + L].set(b3))
    wd1_p = jnp.zeros((LP, H), jnp.float32).at[:L, :].set(wd1)

    # bf16 weights / inputs for the MXU (f32 accumulation happens in-kernel).
    w1_b = w1.astype(jnp.bfloat16)
    w23_b = w23.astype(jnp.bfloat16)
    wd1_b = wd1_p.astype(jnp.bfloat16)
    wd2_b = wd2.astype(jnp.bfloat16)
    x_b = x_flat.astype(jnp.bfloat16)

    # Batch tiling: prefer >= 2 tiles whenever B allows (feeds both v7x TCs),
    # cap tiles at 512 rows; tiny B falls back to one sublane-aligned tile.
    if B >= 16:
        tile_b = min(512, pl.cdiv(pl.cdiv(B, 2), 8) * 8)
    else:
        tile_b = max(8, pl.cdiv(B, 8) * 8)
    num_tiles = pl.cdiv(B, tile_b)
    b_pad = num_tiles * tile_b

    eps_p = jnp.pad(eps.astype(jnp.float32), ((0, b_pad - B), (0, LP - L)))
    if b_pad != B:
        x_b = jnp.pad(x_b, ((0, b_pad - B), (0, 0)))

    kernel = functools.partial(_vae_kernel, batch=B, tile_b=tile_b, lp=LP)

    # Advisory cost estimate for the XLA scheduler.
    flops = 2 * b_pad * (D_in * H + H * 2 * LP + LP * H + H * D_in)
    transcendentals = b_pad * (LP + D_in)                  # exp(sigma) + sigmoid
    bytes_accessed = (x_b.size * 2 + eps_p.size * 4 + b_pad * D_in * 4
                      + (w1_b.size + w23_b.size + wd1_b.size + wd2_b.size) * 2
                      + (b1.size + b23.size + bd1.size + bd2.size) * 4)

    def const_spec(shape):
        # Weights never change block index -> keep a single VMEM copy.
        return pl.BlockSpec(shape, lambda b: (0, 0), pipeline_mode=pl.Buffered(1))

    out, kl_parts = pl.pallas_call(
        kernel,
        out_shape=(
            jax.ShapeDtypeStruct((b_pad, D_in), jnp.float32),
            jax.ShapeDtypeStruct((num_tiles, 1, 1), jnp.float32),
        ),
        grid=(num_tiles,),
        in_specs=[
            pl.BlockSpec((tile_b, D_in), lambda b: (b, 0)),   # x   (bf16, batch-tiled)
            pl.BlockSpec((tile_b, LP), lambda b: (b, 0)),     # eps (f32, batch-tiled)
            const_spec((D_in, H)),                            # w1   (bf16, VMEM-resident)
            const_spec((1, H)),                               # b1
            const_spec((H, 2 * LP)),                          # w2|w3 fused (bf16)
            const_spec((1, 2 * LP)),                          # b2|b3 fused
            const_spec((LP, H)),                              # wd1 (bf16, latent-padded)
            const_spec((1, H)),                               # bd1
            const_spec((H, D_in)),                            # wd2 (bf16)
            const_spec((1, D_in)),                            # bd2
        ],
        out_specs=(
            pl.BlockSpec((tile_b, D_in), lambda b: (b, 0)),   # reconstruction
            pl.BlockSpec((1, 1, 1), lambda b: (b, 0, 0)),     # per-tile KL partial
        ),
        compiler_params=pltpu.CompilerParams(
            dimension_semantics=("parallel",),                # shard batch tiles across TCs
        ),
        cost_estimate=pl.CostEstimate(flops=flops,
                                      transcendentals=transcendentals,
                                      bytes_accessed=bytes_accessed),
    )(
        x_b, eps_p,
        w1_b, b1.reshape(1, -1),
        w23_b, b23,
        wd1_b, bd1.reshape(1, -1),
        wd2_b, bd2.reshape(1, -1),
    )
    return out[:B], jnp.sum(kl_parts)


def init_params(key, latent_dims):
    """Deterministic init matching nn.Linear shapes (stored as (in, out))."""
    def linear(key, fan_in, fan_out):
        kw, kb = jax.random.split(key)
        bound = 1.0 / jnp.sqrt(fan_in)
        w = jax.random.uniform(kw, (fan_in, fan_out), jnp.float32, -bound, bound)
        b = jax.random.uniform(kb, (fan_out,), jnp.float32, -bound, bound)
        return w, b

    k1, k2, k3, k4, k5 = jax.random.split(key, 5)
    w1, b1 = linear(k1, 1600, 512)          # encoder.linear1
    w2, b2 = linear(k2, 512, latent_dims)   # encoder.linear2 (mu)
    w3, b3 = linear(k3, 512, latent_dims)   # encoder.linear3 (log sigma)
    wd1, bd1 = linear(k4, latent_dims, 512) # decoder.linear1
    wd2, bd2 = linear(k5, 512, 1600)        # decoder.linear2
    return (w1, b1, w2, b2, w3, b3, wd1, bd1, wd2, bd2)


def reference_forward(x_nchw, eps, params):
    """Pure-JAX f32 reference for correctness checking."""
    (w1, b1, w2, b2, w3, b3, wd1, bd1, wd2, bd2) = params
    x = x_nchw.reshape(x_nchw.shape[0], -1).astype(jnp.float32)
    h = jax.nn.relu(x @ w1 + b1)
    mu = h @ w2 + b2
    log_sigma = h @ w3 + b3
    sigma = jnp.exp(log_sigma)
    z = mu + sigma * eps
    kl = 0.5 * jnp.sum(sigma ** 2 + mu ** 2 - 2.0 * log_sigma - 1.0)
    hd = jax.nn.relu(z @ wd1 + bd1)
    out = jax.nn.sigmoid(hd @ wd2 + bd2)
    return out, kl


if __name__ == "__main__":
    latent_dims = 16
    B, C, H, W = 2, 4, 20, 20          # C*H*W == 1600, matching the 1600-dim encoder input

    key = jax.random.PRNGKey(0)
    k_params, k_x, k_eps = jax.random.split(key, 3)

    params = init_params(k_params, latent_dims)
    x = jax.random.uniform(k_x, (B, C, H, W), jnp.float32)         # NCHW input
    eps = jax.random.normal(k_eps, (B, latent_dims), jnp.float32)  # N(0,1) sample

    out, kl = vae_forward(x, eps, params)
    out = jax.block_until_ready(out)
    kl = jax.block_until_ready(kl)

    # Sanity check against pure-JAX f32 reference (tolerances relaxed for the
    # bf16-operand MXU matmuls; elementwise math stays f32 in-kernel).
    out_ref, kl_ref = reference_forward(x, eps, params)
    assert out.shape == (B, 1600)
    assert jnp.allclose(out, out_ref, atol=3e-2, rtol=3e-2)
    assert jnp.allclose(kl, kl_ref, atol=1e-1, rtol=1e-1)

    print("KERNEL_OK")
</pallas_src>

<mosaic_0001>
module attributes {stable_mosaic.version = 11 : i64} {
  func.func @_vae_kernel(%arg0: i32, %arg1: memref<8x1600xbf16, #tpu.memory_space<vmem>>, %arg2: memref<8x128xf32, #tpu.memory_space<vmem>>, %arg3: memref<1600x512xbf16, #tpu.memory_space<vmem>>, %arg4: memref<1x512xf32, #tpu.memory_space<vmem>>, %arg5: memref<512x256xbf16, #tpu.memory_space<vmem>>, %arg6: memref<1x256xf32, #tpu.memory_space<vmem>>, %arg7: memref<128x512xbf16, #tpu.memory_space<vmem>>, %arg8: memref<1x512xf32, #tpu.memory_space<vmem>>, %arg9: memref<512x1600xbf16, #tpu.memory_space<vmem>>, %arg10: memref<1x1600xf32, #tpu.memory_space<vmem>>, %arg11: memref<8x1600xf32, #tpu.memory_space<vmem>>, %arg12: memref<1x1x1xf32, #tpu.memory_space<vmem>>) attributes {dimension_semantics = [#tpu.dimension_semantics<parallel>], iteration_bounds = array<i64: 1>, scalar_prefetch = 0 : i64, scratch_operands = 0 : i64, tpu.core_type = #tpu.core_type<tc>, window_params = [{transform_indices = @transform_0, window_bounds = array<i64: 8, 1600>}, {transform_indices = @transform_1, window_bounds = array<i64: 8, 128>}, {pipeline_mode = #tpu.pipeline_mode<synchronous>, transform_indices = @transform_2, window_bounds = array<i64: 1600, 512>}, {pipeline_mode = #tpu.pipeline_mode<synchronous>, transform_indices = @transform_3, window_bounds = array<i64: 1, 512>}, {pipeline_mode = #tpu.pipeline_mode<synchronous>, transform_indices = @transform_4, window_bounds = array<i64: 512, 256>}, {pipeline_mode = #tpu.pipeline_mode<synchronous>, transform_indices = @transform_5, window_bounds = array<i64: 1, 256>}, {pipeline_mode = #tpu.pipeline_mode<synchronous>, transform_indices = @transform_6, window_bounds = array<i64: 128, 512>}, {pipeline_mode = #tpu.pipeline_mode<synchronous>, transform_indices = @transform_7, window_bounds = array<i64: 1, 512>}, {pipeline_mode = #tpu.pipeline_mode<synchronous>, transform_indices = @transform_8, window_bounds = array<i64: 512, 1600>}, {pipeline_mode = #tpu.pipeline_mode<synchronous>, transform_indices = @transform_9, window_bounds = array<i64: 1, 1600>}, {transform_indices = @transform_10, window_bounds = array<i64: 8, 1600>}, {transform_indices = @transform_11, window_bounds = array<i64: 1, 1, 1>}]} {
    %c0 = arith.constant 0 : index
    %c0_0 = arith.constant 0 : index
    %0 = vector.load %arg1[%c0, %c0_0] : memref<8x1600xbf16, #tpu.memory_space<vmem>>, vector<8x1600xbf16>
    %c0_1 = arith.constant 0 : index
    %c0_2 = arith.constant 0 : index
    %1 = vector.load %arg2[%c0_1, %c0_2] : memref<8x128xf32, #tpu.memory_space<vmem>>, vector<8x128xf32>
    %c0_3 = arith.constant 0 : index
    %c0_4 = arith.constant 0 : index
    %2 = vector.load %arg3[%c0_3, %c0_4] : memref<1600x512xbf16, #tpu.memory_space<vmem>>, vector<1600x512xbf16>
    %cst = arith.constant dense<0.000000e+00> : vector<8x512xf32>
    %3 = tpu.matmul %0, %2, %cst {dimension_numbers = #tpu.dot_dimension_numbers<[1], [0], [0], [1], [0, 0, 1, 1], [], []>} : vector<8x1600xbf16>, vector<1600x512xbf16>, vector<8x512xf32> -> vector<8x512xf32>
    %c0_5 = arith.constant 0 : index
    %c0_6 = arith.constant 0 : index
    %4 = vector.load %arg4[%c0_5, %c0_6] : memref<1x512xf32, #tpu.memory_space<vmem>>, vector<1x512xf32>
    %5 = vector.broadcast %4 : vector<1x512xf32> to vector<8x512xf32>
    %6 = arith.addf %3, %5 : vector<8x512xf32>
    %cst_7 = arith.constant 0.000000e+00 : f32
    %7 = vector.broadcast %cst_7 : f32 to vector<8x512xf32>
    %8 = arith.maximumf %6, %7 : vector<8x512xf32>
    %9 = arith.truncf %8 : vector<8x512xf32> to vector<8x512xbf16>
    %c0_8 = arith.constant 0 : index
    %c0_9 = arith.constant 0 : index
    %10 = vector.load %arg5[%c0_8, %c0_9] : memref<512x256xbf16, #tpu.memory_space<vmem>>, vector<512x256xbf16>
    %cst_10 = arith.constant dense<0.000000e+00> : vector<8x256xf32>
    %11 = tpu.matmul %9, %10, %cst_10 {dimension_numbers = #tpu.dot_dimension_numbers<[1], [0], [0], [1], [0, 0, 1, 1], [], []>} : vector<8x512xbf16>, vector<512x256xbf16>, vector<8x256xf32> -> vector<8x256xf32>
    %c0_11 = arith.constant 0 : index
    %c0_12 = arith.constant 0 : index
    %12 = vector.load %arg6[%c0_11, %c0_12] : memref<1x256xf32, #tpu.memory_space<vmem>>, vector<1x256xf32>
    %13 = vector.broadcast %12 : vector<1x256xf32> to vector<8x256xf32>
    %14 = arith.addf %11, %13 : vector<8x256xf32>
    %15 = vector.extract_strided_slice %14 {offsets = [0, 0], sizes = [8, 128], strides = [1, 1]} : vector<8x256xf32> to vector<8x128xf32>
    %16 = vector.extract_strided_slice %14 {offsets = [0, 128], sizes = [8, 128], strides = [1, 1]} : vector<8x256xf32> to vector<8x128xf32>
    %17 = math.exp %16 : vector<8x128xf32>
    %18 = arith.mulf %17, %1 : vector<8x128xf32>
    %19 = arith.addf %15, %18 : vector<8x128xf32>
    %20 = arith.mulf %17, %17 : vector<8x128xf32>
    %21 = arith.mulf %15, %15 : vector<8x128xf32>
    %22 = arith.addf %20, %21 : vector<8x128xf32>
    %cst_13 = arith.constant 2.000000e+00 : f32
    %23 = vector.broadcast %cst_13 : f32 to vector<8x128xf32>
    %24 = arith.mulf %23, %16 : vector<8x128xf32>
    %25 = arith.subf %22, %24 : vector<8x128xf32>
    %cst_14 = arith.constant 1.000000e+00 : f32
    %26 = vector.broadcast %cst_14 : f32 to vector<8x128xf32>
    %27 = arith.subf %25, %26 : vector<8x128xf32>
    %cst_15 = arith.constant dense<0.000000e+00> : vector<8xf32>
    %28 = vector.multi_reduction <add>, %27, %cst_15 [1] : vector<8x128xf32> to vector<8xf32>
    %29 = vector.shape_cast %28 : vector<8xf32> to vector<8x1xf32>
    %cst_16 = arith.constant 5.000000e-01 : f32
    %30 = vector.broadcast %cst_16 : f32 to vector<8x1xf32>
    %31 = arith.mulf %30, %29 : vector<8x1xf32>
    %c8_i32 = arith.constant 8 : i32
    %32 = arith.muli %arg0, %c8_i32 : i32
    %33 = tpu.iota {dimensions = array<i32: 0>} : vector<8x1xi32>
    %34 = vector.broadcast %32 : i32 to vector<8x1xi32>
    %35 = arith.addi %34, %33 : vector<8x1xi32>
    %c2_i32 = arith.constant 2 : i32
    %36 = vector.broadcast %c2_i32 : i32 to vector<8x1xi32>
    %37 = arith.cmpi slt, %35, %36 : vector<8x1xi32>
    %cst_17 = arith.constant 0.000000e+00 : f32
    %38 = vector.broadcast %cst_17 : f32 to vector<8x1xf32>
    %39 = arith.select %37, %31, %38 : vector<8x1xi1>, vector<8x1xf32>
    %40 = vector.shape_cast %39 : vector<8x1xf32> to vector<1x8x1xf32>
    %cst_18 = arith.constant dense<0.000000e+00> : vector<1xf32>
    %41 = vector.multi_reduction <add>, %40, %cst_18 [1, 2] : vector<1x8x1xf32> to vector<1xf32>
    %42 = vector.shape_cast %41 : vector<1xf32> to vector<1x1x1xf32>
    %43 = vector.extract %42[0, 0, 0] : f32 from vector<1x1x1xf32>
    %44 = vector.broadcast %43 : f32 to vector<1x1x1xf32>
    %c0_19 = arith.constant 0 : index
    %c0_20 = arith.constant 0 : index
    %c0_21 = arith.constant 0 : index
    %45 = vector.load %arg12[%c0_19, %c0_20, %c0_21] : memref<1x1x1xf32, #tpu.memory_space<vmem>>, vector<1x1x1xf32>
    tpu.vector_store %arg12[%c0_19, %c0_20, %c0_21], %44 {strides = array<i32>} : memref<1x1x1xf32, #tpu.memory_space<vmem>>, vector<1x1x1xf32>,
    %46 = arith.truncf %19 : vector<8x128xf32> to vector<8x128xbf16>
    %c0_22 = arith.constant 0 : index
    %c0_23 = arith.constant 0 : index
    %47 = vector.load %arg7[%c0_22, %c0_23] : memref<128x512xbf16, #tpu.memory_space<vmem>>, vector<128x512xbf16>
    %cst_24 = arith.constant dense<0.000000e+00> : vector<8x512xf32>
    %48 = tpu.matmul %46, %47, %cst_24 {dimension_numbers = #tpu.dot_dimension_numbers<[1], [0], [0], [1], [0, 0, 1, 1], [], []>} : vector<8x128xbf16>, vector<128x512xbf16>, vector<8x512xf32> -> vector<8x512xf32>
    %c0_25 = arith.constant 0 : index
    %c0_26 = arith.constant 0 : index
    %49 = vector.load %arg8[%c0_25, %c0_26] : memref<1x512xf32, #tpu.memory_space<vmem>>, vector<1x512xf32>
    %50 = vector.broadcast %49 : vector<1x512xf32> to vector<8x512xf32>
    %51 = arith.addf %48, %50 : vector<8x512xf32>
    %cst_27 = arith.constant 0.000000e+00 : f32
    %52 = vector.broadcast %cst_27 : f32 to vector<8x512xf32>
    %53 = arith.maximumf %51, %52 : vector<8x512xf32>
    %54 = arith.truncf %53 : vector<8x512xf32> to vector<8x512xbf16>
    %c0_28 = arith.constant 0 : index
    %c0_29 = arith.constant 0 : index
    %55 = vector.load %arg9[%c0_28, %c0_29] : memref<512x1600xbf16, #tpu.memory_space<vmem>>, vector<512x1600xbf16>
    %cst_30 = arith.constant dense<0.000000e+00> : vector<8x1600xf32>
    %56 = tpu.matmul %54, %55, %cst_30 {dimension_numbers = #tpu.dot_dimension_numbers<[1], [0], [0], [1], [0, 0, 1, 1], [], []>} : vector<8x512xbf16>, vector<512x1600xbf16>, vector<8x1600xf32> -> vector<8x1600xf32>
    %c0_31 = arith.constant 0 : index
    %c0_32 = arith.constant 0 : index
    %57 = vector.load %arg10[%c0_31, %c0_32] : memref<1x1600xf32, #tpu.memory_space<vmem>>, vector<1x1600xf32>
    %58 = vector.broadcast %57 : vector<1x1600xf32> to vector<8x1600xf32>
    %59 = arith.addf %56, %58 : vector<8x1600xf32>
    %60 = arith.negf %59 : vector<8x1600xf32>
    %61 = math.exp %60 : vector<8x1600xf32>
    %cst_33 = arith.constant 1.000000e+00 : f32
    %62 = vector.broadcast %cst_33 : f32 to vector<8x1600xf32>
    %63 = arith.addf %62, %61 : vector<8x1600xf32>
    %64 = arith.divf %62, %63 : vector<8x1600xf32>
    %c0_34 = arith.constant 0 : index
    %c0_35 = arith.constant 0 : index
    %65 = vector.load %arg11[%c0_34, %c0_35] : memref<8x1600xf32, #tpu.memory_space<vmem>>, vector<8x1600xf32>
    tpu.vector_store %arg11[%c0_34, %c0_35], %64 {strides = array<i32>} : memref<8x1600xf32, #tpu.memory_space<vmem>>, vector<8x1600xf32>,
    return
  }
  func.func @transform_0(%arg0: i32) -> (i32, i32) {
    %c0_i32 = arith.constant 0 : i32
    %c0_i32_0 = arith.constant 0 : i32
    return %arg0, %c0_i32 : i32, i32
  }
  func.func @transform_1(%arg0: i32) -> (i32, i32) {
    %c0_i32 = arith.constant 0 : i32
    %c0_i32_0 = arith.constant 0 : i32
    return %arg0, %c0_i32 : i32, i32
  }
  func.func @transform_2(%arg0: i32) -> (i32, i32) {
    %c0_i32 = arith.constant 0 : i32
    %c0_i32_0 = arith.constant 0 : i32
    %c0_i32_1 = arith.constant 0 : i32
    return %c0_i32, %c0_i32_0 : i32, i32
  }
  func.func @transform_3(%arg0: i32) -> (i32, i32) {
    %c0_i32 = arith.constant 0 : i32
    %c0_i32_0 = arith.constant 0 : i32
    %c0_i32_1 = arith.constant 0 : i32
    return %c0_i32, %c0_i32_0 : i32, i32
  }
  func.func @transform_4(%arg0: i32) -> (i32, i32) {
    %c0_i32 = arith.constant 0 : i32
    %c0_i32_0 = arith.constant 0 : i32
    %c0_i32_1 = arith.constant 0 : i32
    return %c0_i32, %c0_i32_0 : i32, i32
  }
  func.func @transform_5(%arg0: i32) -> (i32, i32) {
    %c0_i32 = arith.constant 0 : i32
    %c0_i32_0 = arith.constant 0 : i32
    %c0_i32_1 = arith.constant 0 : i32
    return %c0_i32, %c0_i32_0 : i32, i32
  }
  func.func @transform_6(%arg0: i32) -> (i32, i32) {
    %c0_i32 = arith.constant 0 : i32
    %c0_i32_0 = arith.constant 0 : i32
    %c0_i32_1 = arith.constant 0 : i32
    return %c0_i32, %c0_i32_0 : i32, i32
  }
  func.func @transform_7(%arg0: i32) -> (i32, i32) {
    %c0_i32 = arith.constant 0 : i32
    %c0_i32_0 = arith.constant 0 : i32
    %c0_i32_1 = arith.constant 0 : i32
    return %c0_i32, %c0_i32_0 : i32, i32
  }
  func.func @transform_8(%arg0: i32) -> (i32, i32) {
    %c0_i32 = arith.constant 0 : i32
    %c0_i32_0 = arith.constant 0 : i32
    %c0_i32_1 = arith.constant 0 : i32
    return %c0_i32, %c0_i32_0 : i32, i32
  }
  func.func @transform_9(%arg0: i32) -> (i32, i32) {
    %c0_i32 = arith.constant 0 : i32
    %c0_i32_0 = arith.constant 0 : i32
    %c0_i32_1 = arith.constant 0 : i32
    return %c0_i32, %c0_i32_0 : i32, i32
  }
  func.func @transform_10(%arg0: i32) -> (i32, i32) {
    %c0_i32 = arith.constant 0 : i32
    %c0_i32_0 = arith.constant 0 : i32
    return %arg0, %c0_i32 : i32, i32
  }
  func.func @transform_11(%arg0: i32) -> (i32, i32, i32) {
    %c0_i32 = arith.constant 0 : i32
    %c0_i32_0 = arith.constant 0 : i32
    %c0_i32_1 = arith.constant 0 : i32
    return %arg0, %c0_i32, %c0_i32_0 : i32, i32, i32
  }
}

</mosaic_0001>

<bundles_post_ra>
// kernel: vae_forward.1
= control target key start
LH: loop header
LB: loop body
LE: loop exit
PB: predicated region body
PF: predicated region fallthrough
CT: control target
= control target key end

     0   :  { %vm2514_vm0 = vcmask 523264   ;;  %s12783_s0 = inlined_call_operand.vmem [shape: bf16[8,1600], index: 0, kind: input, shape index: {}]   ;;  %s12784_s1 = inlined_call_operand.vmem [shape: f32[8,128], index: 1, kind: input, shape index: {}]   ;;  %s12785_s2 = inlined_call_operand.vmem [shape: bf16[1600,512], index: 2, kind: input, shape index: {}]   ;;  %s12786_s3 = inlined_call_operand.vmem [shape: f32[1,512], index: 3, kind: input, shape index: {}]   ;;  %s12787_s4 = inlined_call_operand.vmem [shape: bf16[512,256], index: 4, kind: input, shape index: {}]   ;;  %s12788_s5 = inlined_call_operand.vmem [shape: f32[1,256], index: 5, kind: input, shape index: {}]   ;;  %s12789_s6 = inlined_call_operand.vmem [shape: bf16[128,512], index: 6, kind: input, shape index: {}]   ;;  %s12790_s7 = inlined_call_operand.vmem [shape: f32[1,512], index: 7, kind: input, shape index: {}]   ;;  %s12791_s8 = inlined_call_operand.vmem [shape: bf16[512,1600], index: 8, kind: input, shape index: {}]   ;;  %s12792_s9 = inlined_call_operand.vmem [shape: f32[1,1600], index: 9, kind: input, shape index: {}]   ;;  %s12793_s10 = inlined_call_operand.vmem [shape: f32[8,1600], index: 10, kind: output, shape index: {0}]   ;;  %s12794_s11 = inlined_call_operand.hbm [shape: f32[1,1,1], index: 11, kind: output, shape index: {1}]  }
   0x1   :  { %v8310_v0 = vld [vmem:[%s12785_s2 + $0x4] ss:$16 sps:$4 sm:$0xff]   ;;  %v8312_v1 = vld [vmem:[%s12785_s2 + $0xc] ss:$16 sps:$4 sm:$0xff]   ;;  %v8314_v2 = vld [vmem:[%s12785_s2] ss:$16 sps:$4 sm:$0xff]  }
   0x2   :  { %2518 = vmatprep.subr.bf16.mxu0 %v8310_v0  ;;  %v8315_v3 = vld [vmem:[%s12785_s2 + $0x8] ss:$16 sps:$4 sm:$0xff]   ;;  %2805 = vmatprep.subr.bf16.mxu1 %v8312_v1  ;;  %v8316_v4 = vld [vmem:[%s12785_s2 + $0x24] ss:$16 sps:$4 sm:$0xff]   ;;  %v8318_v5 = vld [vmem:[%s12785_s2 + $0x2c] ss:$16 sps:$4 sm:$0xff]  }
   0x3   :  { %2519 = vmatpush1.bf16.msra.mxu0 %v8314_v2  ;;  %2806 = vmatpush1.bf16.msra.mxu1 %v8315_v3  ;;  %v8320_v6 = vld [vmem:[%s12785_s2 + $0x20] ss:$16 sps:$4 sm:$0xff]   ;;  %v8321_v7 = vld [vmem:[%s12785_s2 + $0x28] ss:$16 sps:$4 sm:$0xff]   ;;  %v8322_v8 = vld [vmem:[%s12785_s2 + $0x44] ss:$16 sps:$4 sm:$0xff]  }
   0x4   :  { %2520 = vmatprep.subr.bf16.mxu0 %v8316_v4  ;;  %2807 = vmatprep.subr.bf16.mxu1 %v8318_v5  ;;  %v8324_v9 = vld [vmem:[%s12785_s2 + $0x4c] ss:$16 sps:$4 sm:$0xff]   ;;  %v8326_v10 = vld [vmem:[%s12785_s2 + $0x40] ss:$16 sps:$4 sm:$0xff]   ;;  %v8327_v11 = vld [vmem:[%s12785_s2 + $0x48] ss:$16 sps:$4 sm:$0xff]  }
   0x5   :  { %v8328_v12 = vld [vmem:[%s12785_s2 + $0x64] ss:$16 sps:$4 sm:$0xff]   ;;  %v8330_v13 = vld [vmem:[%s12785_s2 + $0x6c] ss:$16 sps:$4 sm:$0xff]   ;;  %v8332_v14 = vld [vmem:[%s12785_s2 + $0x60] ss:$16 sps:$4 sm:$0xff]  }
   0x6   :  { %v8333_v15 = vld [vmem:[%s12785_s2 + $0x68] ss:$16 sps:$4 sm:$0xff]   ;;  %v8334_v16 = vld [vmem:[%s12785_s2 + $0x84] ss:$16 sps:$4 sm:$0xff]   ;;  %v8336_v17 = vld [vmem:[%s12785_s2 + $0x8c] ss:$16 sps:$4 sm:$0xff]  }
   0x7   :  { %2521 = vmatpush1.bf16.msra.mxu0 %v8320_v6  ;;  %2808 = vmatpush1.bf16.msra.mxu1 %v8321_v7  ;;  %v8338_v18 = vld [vmem:[%s12785_s2 + $0x80] ss:$16 sps:$4 sm:$0xff]   ;;  %v8339_v19 = vld [vmem:[%s12785_s2 + $0x88] ss:$16 sps:$4 sm:$0xff]   ;;  %v8340_v20 = vld [vmem:[%s12785_s2 + $0xa4] ss:$16 sps:$4 sm:$0xff]  }
   0x8   :  { %2522 = vmatprep.subr.bf16.mxu0 %v8322_v8  ;;  %2809 = vmatprep.subr.bf16.mxu1 %v8324_v9  ;;  %v8342_v21 = vld [vmem:[%s12785_s2 + $0xac] ss:$16 sps:$4 sm:$0xff]   ;;  %v8344_v22 = vld [vmem:[%s12785_s2 + $0xa0] ss:$16 sps:$4 sm:$0xff]   ;;  %v8345_v23 = vld [vmem:[%s12785_s2 + $0xa8] ss:$16 sps:$4 sm:$0xff]  }
   0x9   :  { %v8346_v24 = vld [vmem:[%s12785_s2 + $0xc4] ss:$16 sps:$4 sm:$0xff]   ;;  %v8348_v25 = vld [vmem:[%s12785_s2 + $0xcc] ss:$16 sps:$4 sm:$0xff]   ;;  %v8350_v26 = vld [vmem:[%s12785_s2 + $0xc0] ss:$16 sps:$4 sm:$0xff]  }
   0xa   :  { %v8351_v27 = vld [vmem:[%s12785_s2 + $0xc8] ss:$16 sps:$4 sm:$0xff]   ;;  %v8352_v28 = vld [vmem:[%s12785_s2 + $0xe4] ss:$16 sps:$4 sm:$0xff]   ;;  %v8354_v29 = vld [vmem:[%s12785_s2 + $0xec] ss:$16 sps:$4 sm:$0xff]  }
   0xb   :  { %2523 = vmatpush1.bf16.msra.mxu0 %v8326_v10  ;;  %2810 = vmatpush1.bf16.msra.mxu1 %v8327_v11  ;;  %v8356_v30 = vld [vmem:[%s12785_s2 + $0xe0] ss:$16 sps:$4 sm:$0xff]   ;;  %v8357_v31 = vld [vmem:[%s12785_s2 + $0xe8] ss:$16 sps:$4 sm:$0xff]   ;;  %v8358_v32 = vld [vmem:[%s12785_s2 + $0x104] ss:$16 sps:$4 sm:$0xff]  }
   0xc   :  { %2524 = vmatprep.subr.bf16.mxu0 %v8328_v12  ;;  %2811 = vmatprep.subr.bf16.mxu1 %v8330_v13  ;;  %v8360_v33 = vld [vmem:[%s12785_s2 + $0x10c] ss:$16 sps:$4 sm:$0xff]   ;;  %v8362_v34 = vld [vmem:[%s12785_s2 + $0x100] ss:$16 sps:$4 sm:$0xff]   ;;  %v8363_v35 = vld [vmem:[%s12785_s2 + $0x108] ss:$16 sps:$4 sm:$0xff]  }
   0xd   :  { %v8364_v36 = vld [vmem:[%s12785_s2 + $0x124] ss:$16 sps:$4 sm:$0xff]   ;;  %v8366_v37 = vld [vmem:[%s12785_s2 + $0x12c] ss:$16 sps:$4 sm:$0xff]   ;;  %v8368_v38 = vld [vmem:[%s12785_s2 + $0x120] ss:$16 sps:$4 sm:$0xff]  }
   0xe   :  { %v8369_v39 = vld [vmem:[%s12785_s2 + $0x128] ss:$16 sps:$4 sm:$0xff]   ;;  %v8370_v40 = vld [vmem:[%s12785_s2 + $0x144] ss:$16 sps:$4 sm:$0xff]   ;;  %v8372_v41 = vld [vmem:[%s12785_s2 + $0x14c] ss:$16 sps:$4 sm:$0xff]  }
   0xf   :  { %2525 = vmatpush1.bf16.msra.mxu0 %v8332_v14  ;;  %2812 = vmatpush1.bf16.msra.mxu1 %v8333_v15  ;;  %v8374_v42 = vld [vmem:[%s12785_s2 + $0x140] ss:$16 sps:$4 sm:$0xff]   ;;  %v8375_v43 = vld [vmem:[%s12785_s2 + $0x148] ss:$16 sps:$4 sm:$0xff]   ;;  %v8376_v44 = vld [vmem:[%s12785_s2 + $0x164] ss:$16 sps:$4 sm:$0xff]  }
  0x10   :  { %2526 = vmatprep.subr.bf16.mxu0 %v8334_v16  ;;  %2813 = vmatprep.subr.bf16.mxu1 %v8336_v17  ;;  %v8378_v45 = vld [vmem:[%s12785_s2 + $0x16c] ss:$16 sps:$4 sm:$0xff]   ;;  %v39_v46 = vld [vmem:[%s12783_s0] sm:$0xff]  ;;  %v8381_v49 = vld [vmem:[%s12785_s2 + $0x168] ss:$16 sps:$4 sm:$0xff]  }
  0x11   :  { %v8380_v47 = vld [vmem:[%s12785_s2 + $0x160] ss:$16 sps:$4 sm:$0xff]   ;;  %v7228_v48 = vcombine.high %v39_v46, %v39_v46  ;;  %v8382_v50 = vld [vmem:[%s12785_s2 + $0x184] ss:$16 sps:$4 sm:$0xff]   ;;  %v8384_v51 = vld [vmem:[%s12785_s2 + $0x18c] ss:$16 sps:$4 sm:$0xff]   ;;  %v7227_v4 = vcombine.low %v39_v46, %v39_v46 }
  0x12   :  { %v8386_v52 = vld [vmem:[%s12785_s2 + $0x180] ss:$16 sps:$4 sm:$0xff]   ;;  %v8387_v53 = vld [vmem:[%s12785_s2 + $0x188] ss:$16 sps:$4 sm:$0xff]   ;;  %v8388_v54 = vld [vmem:[%s12785_s2 + $0x1a4] ss:$16 sps:$4 sm:$0xff]  }
  0x13   :  { %2527 = vmatpush1.bf16.msra.mxu0 %v8338_v18  ;;  %2814 = vmatpush1.bf16.msra.mxu1 %v8339_v19  ;;  %v8390_v55 = vld [vmem:[%s12785_s2 + $0x1ac] ss:$16 sps:$4 sm:$0xff]   ;;  %v8392_v56 = vld [vmem:[%s12785_s2 + $0x1a0] ss:$16 sps:$4 sm:$0xff]   ;;  %v8393_v57 = vld [vmem:[%s12785_s2 + $0x1a8] ss:$16 sps:$4 sm:$0xff]  }
  0x14   :  { %2528 = vmatprep.subr.bf16.mxu0 %v8340_v20  ;;  %2815 = vmatprep.subr.bf16.mxu1 %v8342_v21  ;;  %v8394_v58 = vld [vmem:[%s12785_s2 + $0x1c4] ss:$16 sps:$4 sm:$0xff]   ;;  %v8396_v59 = vld [vmem:[%s12785_s2 + $0x1cc] ss:$16 sps:$4 sm:$0xff]   ;;  %v8398_v60 = vld [vmem:[%s12785_s2 + $0x1c0] ss:$16 sps:$4 sm:$0xff]  }
  0x15   :  { %2550 = vmatprep.mubr.bf16.mxu0 %v7228_v48  ;;  %2837 = vmatprep.mubr.bf16.mxu1 %v7228_v48  ;;  %v8399_v61 = vld [vmem:[%s12785_s2 + $0x1c8] ss:$16 sps:$4 sm:$0xff]   ;;  %v8400_v62 = vld [vmem:[%s12785_s2 + $0x1e4] ss:$16 sps:$4 sm:$0xff]   ;;  %v8402_v63 = vld [vmem:[%s12785_s2 + $0x1ec] ss:$16 sps:$4 sm:$0xff]  }
  0x16   :  { %v8404_v0 = vld [vmem:[%s12785_s2 + $0x1e0] ss:$16 sps:$4 sm:$0xff]   ;;  %v8405_v1 = vld [vmem:[%s12785_s2 + $0x1e8] ss:$16 sps:$4 sm:$0xff]   ;;  %v8410_v2 = vld [vmem:[%s12785_s2 + $0x204] ss:$16 sps:$4 sm:$0xff]  }
  0x17   :  { %2529 = vmatpush1.bf16.msra.mxu0 %v8344_v22  ;;  %2816 = vmatpush1.bf16.msra.mxu1 %v8345_v23  ;;  %v8413_v3 = vld [vmem:[%s12785_s2 + $0x20c] ss:$16 sps:$4 sm:$0xff]   ;;  %v8408_v5 = vld [vmem:[%s12785_s2 + $0x200] ss:$16 sps:$4 sm:$0xff]   ;;  %v8411_v6 = vld [vmem:[%s12785_s2 + $0x208] ss:$16 sps:$4 sm:$0xff]  }
  0x18   :  { %2530 = vmatprep.subr.bf16.mxu0 %v8346_v24  ;;  %2817 = vmatprep.subr.bf16.mxu1 %v8348_v25  ;;  %v8416_v7 = vld [vmem:[%s12785_s2 + $0x224] ss:$16 sps:$4 sm:$0xff]   ;;  %v8419_v8 = vld [vmem:[%s12785_s2 + $0x22c] ss:$16 sps:$4 sm:$0xff]   ;;  %v8414_v9 = vld [vmem:[%s12785_s2 + $0x220] ss:$16 sps:$4 sm:$0xff]  }
  0x19   :  { %v8417_v10 = vld [vmem:[%s12785_s2 + $0x228] ss:$16 sps:$4 sm:$0xff]   ;;  %v8422_v11 = vld [vmem:[%s12785_s2 + $0x244] ss:$16 sps:$4 sm:$0xff]   ;;  %v8425_v12 = vld [vmem:[%s12785_s2 + $0x24c] ss:$16 sps:$4 sm:$0xff]  }
  0x1a   :  { %v8420_v13 = vld [vmem:[%s12785_s2 + $0x240] ss:$16 sps:$4 sm:$0xff]   ;;  %v8423_v14 = vld [vmem:[%s12785_s2 + $0x248] ss:$16 sps:$4 sm:$0xff]   ;;  %v8428_v15 = vld [vmem:[%s12785_s2 + $0x264] ss:$16 sps:$4 sm:$0xff]  }
  0x1b   :  { %2531 = vmatpush1.bf16.msra.mxu0 %v8350_v26  ;;  %2818 = vmatpush1.bf16.msra.mxu1 %v8351_v27  ;;  %v8431_v16 = vld [vmem:[%s12785_s2 + $0x26c] ss:$16 sps:$4 sm:$0xff]   ;;  %v8426_v17 = vld [vmem:[%s12785_s2 + $0x260] ss:$16 sps:$4 sm:$0xff]   ;;  %v8429_v18 = vld [vmem:[%s12785_s2 + $0x268] ss:$16 sps:$4 sm:$0xff]  }
  0x1c   :  { %2532 = vmatprep.subr.bf16.mxu0 %v8352_v28  ;;  %2819 = vmatprep.subr.bf16.mxu1 %v8354_v29  ;;  %v8434_v19 = vld [vmem:[%s12785_s2 + $0x284] ss:$16 sps:$4 sm:$0xff]   ;;  %v8437_v20 = vld [vmem:[%s12785_s2 + $0x28c] ss:$16 sps:$4 sm:$0xff]   ;;  %v8432_v21 = vld [vmem:[%s12785_s2 + $0x280] ss:$16 sps:$4 sm:$0xff]  }
  0x1d   :  { %v8435_v22 = vld [vmem:[%s12785_s2 + $0x288] ss:$16 sps:$4 sm:$0xff]   ;;  %v8440_v23 = vld [vmem:[%s12785_s2 + $0x2a4] ss:$16 sps:$4 sm:$0xff]   ;;  %v8443_v24 = vld [vmem:[%s12785_s2 + $0x2ac] ss:$16 sps:$4 sm:$0xff]  }
  0x1e   :  { %v8438_v25 = vld [vmem:[%s12785_s2 + $0x2a0] ss:$16 sps:$4 sm:$0xff]   ;;  %v8441_v26 = vld [vmem:[%s12785_s2 + $0x2a8] ss:$16 sps:$4 sm:$0xff]   ;;  %v8446_v27 = vld [vmem:[%s12785_s2 + $0x2c4] ss:$16 sps:$4 sm:$0xff]  }
  0x1f   :  { %2533 = vmatpush1.bf16.msra.mxu0 %v8356_v30  ;;  %2820 = vmatpush1.bf16.msra.mxu1 %v8357_v31  ;;  %v8449_v28 = vld [vmem:[%s12785_s2 + $0x2cc] ss:$16 sps:$4 sm:$0xff]   ;;  %v8444_v31 = vld [vmem:[%s12785_s2 + $0x2c0] ss:$16 sps:$4 sm:$0xff]   ;;  %v8471_v48 = vld [vmem:[%s12785_s2 + $0x348] ss:$16 sps:$4 sm:$0xff]  }
  0x20   :  { %2534 = vmatprep.subr.bf16.mxu0 %v8358_v32  ;;  %2821 = vmatprep.subr.bf16.mxu1 %v8360_v33  ;;  %v10091_v29 = vld [vmem:[%s12783_s0 + $0x8] sm:$0xff]  ;;  %v8452_v33 = vld [vmem:[%s12785_s2 + $0x2e4] ss:$16 sps:$4 sm:$0xff]  }
  0x21   :  { %v7230_v30 = vcombine.high %v10091_v29, %v10091_v29  ;;  %v8447_v32 = vld [vmem:[%s12785_s2 + $0x2c8] ss:$16 sps:$4 sm:$0xff]   ;;  %v8473_v46 = vld [vmem:[%s12785_s2 + $0x34c] ss:$16 sps:$4 sm:$0xff]  }
  0x23   :  { %2535 = vmatpush1.bf16.msra.mxu0 %v8362_v34  ;;  %2822 = vmatpush1.bf16.msra.mxu1 %v8363_v35  ;;  %v8455_v34 = vld [vmem:[%s12785_s2 + $0x2ec] ss:$16 sps:$4 sm:$0xff]   ;;  %v8450_v35 = vld [vmem:[%s12785_s2 + $0x2e0] ss:$16 sps:$4 sm:$0xff]  }
  0x24   :  { %2536 = vmatprep.subr.bf16.mxu0 %v8364_v36  ;;  %2823 = vmatprep.subr.bf16.mxu1 %v8366_v37  ;;  %v8453_v36 = vld [vmem:[%s12785_s2 + $0x2e8] ss:$16 sps:$4 sm:$0xff]   ;;  %v8458_v37 = vld [vmem:[%s12785_s2 + $0x304] ss:$16 sps:$4 sm:$0xff]  }
  0x27   :  { %2537 = vmatpush1.bf16.msra.mxu0 %v8368_v38  ;;  %2824 = vmatpush1.bf16.msra.mxu1 %v8369_v39  ;;  %v8461_v38 = vld [vmem:[%s12785_s2 + $0x30c] ss:$16 sps:$4 sm:$0xff]   ;;  %v8456_v39 = vld [vmem:[%s12785_s2 + $0x300] ss:$16 sps:$4 sm:$0xff]  }
  0x28   :  { %2538 = vmatprep.subr.bf16.mxu0 %v8370_v40  ;;  %2825 = vmatprep.subr.bf16.mxu1 %v8372_v41  ;;  %v8459_v40 = vld [vmem:[%s12785_s2 + $0x308] ss:$16 sps:$4 sm:$0xff]   ;;  %v8464_v41 = vld [vmem:[%s12785_s2 + $0x324] ss:$16 sps:$4 sm:$0xff]  }
  0x2b   :  { %2539 = vmatpush1.bf16.msra.mxu0 %v8374_v42  ;;  %2826 = vmatpush1.bf16.msra.mxu1 %v8375_v43  ;;  %v8467_v42 = vld [vmem:[%s12785_s2 + $0x32c] ss:$16 sps:$4 sm:$0xff]   ;;  %v8462_v43 = vld [vmem:[%s12785_s2 + $0x320] ss:$16 sps:$4 sm:$0xff]  }
  0x2c   :  { %2540 = vmatprep.subr.bf16.mxu0 %v8376_v44  ;;  %2827 = vmatprep.subr.bf16.mxu1 %v8378_v45  ;;  %v8465_v44 = vld [vmem:[%s12785_s2 + $0x328] ss:$16 sps:$4 sm:$0xff]   ;;  %v8470_v45 = vld [vmem:[%s12785_s2 + $0x344] ss:$16 sps:$4 sm:$0xff]  }
  0x2f   :  { %2541 = vmatpush1.bf16.msra.mxu0 %v8380_v47  ;;  %2828 = vmatpush1.bf16.msra.mxu1 %v8381_v49  ;;  %v8468_v47 = vld [vmem:[%s12785_s2 + $0x340] ss:$16 sps:$4 sm:$0xff]   ;;  %v8476_v49 = vld [vmem:[%s12785_s2 + $0x364] ss:$16 sps:$4 sm:$0xff]  }
  0x30   :  { %2542 = vmatprep.subr.bf16.mxu0 %v8382_v50  ;;  %2829 = vmatprep.subr.bf16.mxu1 %v8384_v51  ;;  %v8479_v50 = vld [vmem:[%s12785_s2 + $0x36c] ss:$16 sps:$4 sm:$0xff]   ;;  %v8474_v51 = vld [vmem:[%s12785_s2 + $0x360] ss:$16 sps:$4 sm:$0xff]  }
  0x33   :  { %2543 = vmatpush1.bf16.msra.mxu0 %v8386_v52  ;;  %2830 = vmatpush1.bf16.msra.mxu1 %v8387_v53  ;;  %v8477_v52 = vld [vmem:[%s12785_s2 + $0x368] ss:$16 sps:$4 sm:$0xff]   ;;  %v8482_v53 = vld [vmem:[%s12785_s2 + $0x384] ss:$16 sps:$4 sm:$0xff]  }
  0x34   :  { %2544 = vmatprep.subr.bf16.mxu0 %v8388_v54  ;;  %2831 = vmatprep.subr.bf16.mxu1 %v8390_v55  ;;  %v8485_v54 = vld [vmem:[%s12785_s2 + $0x38c] ss:$16 sps:$4 sm:$0xff]   ;;  %v8480_v55 = vld [vmem:[%s12785_s2 + $0x380] ss:$16 sps:$4 sm:$0xff]  }
  0x37   :  { %2545 = vmatpush1.bf16.msra.mxu0 %v8392_v56  ;;  %2832 = vmatpush1.bf16.msra.mxu1 %v8393_v57  ;;  %v8483_v56 = vld [vmem:[%s12785_s2 + $0x388] ss:$16 sps:$4 sm:$0xff]   ;;  %v8488_v57 = vld [vmem:[%s12785_s2 + $0x3a4] ss:$16 sps:$4 sm:$0xff]  }
  0x38   :  { %2546 = vmatprep.subr.bf16.mxu0 %v8394_v58  ;;  %2833 = vmatprep.subr.bf16.mxu1 %v8396_v59  ;;  %v8491_v58 = vld [vmem:[%s12785_s2 + $0x3ac] ss:$16 sps:$4 sm:$0xff]   ;;  %v8486_v59 = vld [vmem:[%s12785_s2 + $0x3a0] ss:$16 sps:$4 sm:$0xff]  }
  0x3b   :  { %2547 = vmatpush1.bf16.msra.mxu0 %v8398_v60  ;;  %2834 = vmatpush1.bf16.msra.mxu1 %v8399_v61  ;;  %v8489_v60 = vld [vmem:[%s12785_s2 + $0x3a8] ss:$16 sps:$4 sm:$0xff]   ;;  %v8494_v61 = vld [vmem:[%s12785_s2 + $0x3c4] ss:$16 sps:$4 sm:$0xff]  }
  0x3c   :  { %2548 = vmatprep.subr.bf16.mxu0 %v8400_v62  ;;  %2835 = vmatprep.subr.bf16.mxu1 %v8402_v63  ;;  %v8497_v62 = vld [vmem:[%s12785_s2 + $0x3cc] ss:$16 sps:$4 sm:$0xff]   ;;  %v8492_v63 = vld [vmem:[%s12785_s2 + $0x3c0] ss:$16 sps:$4 sm:$0xff]  }
  0x3f   :  { %2549 = vmatpush1.bf16.msra.mxu0 %v8404_v0  ;;  %2836 = vmatpush1.bf16.msra.mxu1 %v8405_v1  ;;  %v8495_v0 = vld [vmem:[%s12785_s2 + $0x3c8] ss:$16 sps:$4 sm:$0xff]   ;;  %v8500_v1 = vld [vmem:[%s12785_s2 + $0x3e4] ss:$16 sps:$4 sm:$0xff]  }
  0x40   :  { %2559 = vmatprep.subr.bf16.mxu0 %v8410_v2  ;;  %2846 = vmatprep.subr.bf16.mxu1 %v8413_v3  ;;  %v8503_v2 = vld [vmem:[%s12785_s2 + $0x3ec] ss:$16 sps:$4 sm:$0xff]   ;;  %v8498_v3 = vld [vmem:[%s12785_s2 + $0x3e0] ss:$16 sps:$4 sm:$0xff]  }
  0x42   :  { %2551 = vmatmul.mubr.bf16.vlgmr.msra.gmra.mrb[0].mxu0 %v7227_v4  ;;  %2838 = vmatmul.mubr.bf16.vlgmr.msra.gmra.mrb[0].mxu1 %v7227_v4  ;;  %v8501_v4 = vld [vmem:[%s12785_s2 + $0x3e8] ss:$16 sps:$4 sm:$0xff]  }
  0x43   :  { %2560 = vmatpush1.bf16.msra.mxu0 %v8408_v5  ;;  %2847 = vmatpush1.bf16.msra.mxu1 %v8411_v6  ;;  %v8508_v5 = vld [vmem:[%s12785_s2 + $0x404] ss:$16 sps:$4 sm:$0xff]   ;;  %v8511_v6 = vld [vmem:[%s12785_s2 + $0x40c] ss:$16 sps:$4 sm:$0xff]  }
  0x44   :  { %2561 = vmatprep.subr.bf16.mxu0 %v8416_v7  ;;  %2848 = vmatprep.subr.bf16.mxu1 %v8419_v8  ;;  %v7229_v7 = vcombine.low %v10091_v29, %v10091_v29  ;;  %v8506_v8 = vld [vmem:[%s12785_s2 + $0x400] ss:$16 sps:$4 sm:$0xff]   ;;  %v8541_v29 = vld [vmem:[%s12785_s2 + $0x4ac] ss:$16 sps:$4 sm:$0xff]  }
  0x45   :  { %2591 = vmatprep.mubr.bf16.mxu0 %v7230_v30  ;;  %2878 = vmatprep.mubr.bf16.mxu1 %v7230_v30  ;;  %v8536_v30 = vld [vmem:[%s12785_s2 + $0x4a0] ss:$16 sps:$4 sm:$0xff]  }
  0x47   :  { %2562 = vmatpush1.bf16.msra.mxu0 %v8414_v9  ;;  %2849 = vmatpush1.bf16.msra.mxu1 %v8417_v10  ;;  %v8509_v9 = vld [vmem:[%s12785_s2 + $0x408] ss:$16 sps:$4 sm:$0xff]   ;;  %v8514_v10 = vld [vmem:[%s12785_s2 + $0x424] ss:$16 sps:$4 sm:$0xff]  }
  0x48   :  { %2563 = vmatprep.subr.bf16.mxu0 %v8422_v11  ;;  %2850 = vmatprep.subr.bf16.mxu1 %v8425_v12  ;;  %v10229_v11 = vld [vmem:[%s12783_s0 + $0x10] sm:$0xff]  ;;  %v8517_v12 = vld [vmem:[%s12785_s2 + $0x42c] ss:$16 sps:$4 sm:$0xff]  }
  0x4b   :  { %2564 = vmatpush1.bf16.msra.mxu0 %v8420_v13  ;;  %2851 = vmatpush1.bf16.msra.mxu1 %v8423_v14  ;;  %v7232_v13 = vcombine.high %v10229_v11, %v10229_v11  ;;  %v8512_v14 = vld [vmem:[%s12785_s2 + $0x420] ss:$16 sps:$4 sm:$0xff]  }
  0x4c   :  { %2565 = vmatprep.subr.bf16.mxu0 %v8428_v15  ;;  %2852 = vmatprep.subr.bf16.mxu1 %v8431_v16  ;;  %v8515_v15 = vld [vmem:[%s12785_s2 + $0x428] ss:$16 sps:$4 sm:$0xff]   ;;  %v8520_v16 = vld [vmem:[%s12785_s2 + $0x444] ss:$16 sps:$4 sm:$0xff]  }
  0x4f   :  { %2566 = vmatpush1.bf16.msra.mxu0 %v8426_v17  ;;  %2853 = vmatpush1.bf16.msra.mxu1 %v8429_v18  ;;  %v8523_v17 = vld [vmem:[%s12785_s2 + $0x44c] ss:$16 sps:$4 sm:$0xff]   ;;  %v8518_v18 = vld [vmem:[%s12785_s2 + $0x440] ss:$16 sps:$4 sm:$0xff]  }
  0x50   :  { %2567 = vmatprep.subr.bf16.mxu0 %v8434_v19  ;;  %2854 = vmatprep.subr.bf16.mxu1 %v8437_v20  ;;  %v8521_v19 = vld [vmem:[%s12785_s2 + $0x448] ss:$16 sps:$4 sm:$0xff]   ;;  %v8526_v20 = vld [vmem:[%s12785_s2 + $0x464] ss:$16 sps:$4 sm:$0xff]  }
  0x53   :  { %2568 = vmatpush1.bf16.msra.mxu0 %v8432_v21  ;;  %2855 = vmatpush1.bf16.msra.mxu1 %v8435_v22  ;;  %v8529_v21 = vld [vmem:[%s12785_s2 + $0x46c] ss:$16 sps:$4 sm:$0xff]   ;;  %v8524_v22 = vld [vmem:[%s12785_s2 + $0x460] ss:$16 sps:$4 sm:$0xff]  }
  0x54   :  { %2569 = vmatprep.subr.bf16.mxu0 %v8440_v23  ;;  %2856 = vmatprep.subr.bf16.mxu1 %v8443_v24  ;;  %v8527_v23 = vld [vmem:[%s12785_s2 + $0x468] ss:$16 sps:$4 sm:$0xff]   ;;  %v8532_v24 = vld [vmem:[%s12785_s2 + $0x484] ss:$16 sps:$4 sm:$0xff]  }
  0x57   :  { %2570 = vmatpush1.bf16.msra.mxu0 %v8438_v25  ;;  %2857 = vmatpush1.bf16.msra.mxu1 %v8441_v26  ;;  %v8535_v25 = vld [vmem:[%s12785_s2 + $0x48c] ss:$16 sps:$4 sm:$0xff]   ;;  %v8530_v26 = vld [vmem:[%s12785_s2 + $0x480] ss:$16 sps:$4 sm:$0xff]  }
  0x58   :  { %2571 = vmatprep.subr.bf16.mxu0 %v8446_v27  ;;  %2858 = vmatprep.subr.bf16.mxu1 %v8449_v28  ;;  %v8533_v27 = vld [vmem:[%s12785_s2 + $0x488] ss:$16 sps:$4 sm:$0xff]   ;;  %v8538_v28 = vld [vmem:[%s12785_s2 + $0x4a4] ss:$16 sps:$4 sm:$0xff]  }
  0x5b   :  { %2572 = vmatpush1.bf16.msra.mxu0 %v8444_v31  ;;  %2859 = vmatpush1.bf16.msra.mxu1 %v8447_v32  ;;  %v8539_v31 = vld [vmem:[%s12785_s2 + $0x4a8] ss:$16 sps:$4 sm:$0xff]   ;;  %v8544_v32 = vld [vmem:[%s12785_s2 + $0x4c4] ss:$16 sps:$4 sm:$0xff]  }
  0x5c   :  { %2573 = vmatprep.subr.bf16.mxu0 %v8452_v33  ;;  %2860 = vmatprep.subr.bf16.mxu1 %v8455_v34  ;;  %v8547_v33 = vld [vmem:[%s12785_s2 + $0x4cc] ss:$16 sps:$4 sm:$0xff]   ;;  %v8542_v34 = vld [vmem:[%s12785_s2 + $0x4c0] ss:$16 sps:$4 sm:$0xff]  }
  0x5f   :  { %2574 = vmatpush1.bf16.msra.mxu0 %v8450_v35  ;;  %2861 = vmatpush1.bf16.msra.mxu1 %v8453_v36  ;;  %v8545_v35 = vld [vmem:[%s12785_s2 + $0x4c8] ss:$16 sps:$4 sm:$0xff]   ;;  %v8550_v36 = vld [vmem:[%s12785_s2 + $0x4e4] ss:$16 sps:$4 sm:$0xff]  }
  0x60   :  { %2575 = vmatprep.subr.bf16.mxu0 %v8458_v37  ;;  %2862 = vmatprep.subr.bf16.mxu1 %v8461_v38  ;;  %v8553_v37 = vld [vmem:[%s12785_s2 + $0x4ec] ss:$16 sps:$4 sm:$0xff]   ;;  %v8548_v38 = vld [vmem:[%s12785_s2 + $0x4e0] ss:$16 sps:$4 sm:$0xff]  }
  0x63   :  { %2576 = vmatpush1.bf16.msra.mxu0 %v8456_v39  ;;  %2863 = vmatpush1.bf16.msra.mxu1 %v8459_v40  ;;  %v8551_v39 = vld [vmem:[%s12785_s2 + $0x4e8] ss:$16 sps:$4 sm:$0xff]   ;;  %v8556_v40 = vld [vmem:[%s12785_s2 + $0x504] ss:$16 sps:$4 sm:$0xff]  }
  0x64   :  { %2577 = vmatprep.subr.bf16.mxu0 %v8464_v41  ;;  %2864 = vmatprep.subr.bf16.mxu1 %v8467_v42  ;;  %v8559_v41 = vld [vmem:[%s12785_s2 + $0x50c] ss:$16 sps:$4 sm:$0xff]   ;;  %v8554_v42 = vld [vmem:[%s12785_s2 + $0x500] ss:$16 sps:$4 sm:$0xff]  }
  0x67   :  { %2578 = vmatpush1.bf16.msra.mxu0 %v8462_v43  ;;  %2865 = vmatpush1.bf16.msra.mxu1 %v8465_v44  ;;  %v8557_v43 = vld [vmem:[%s12785_s2 + $0x508] ss:$16 sps:$4 sm:$0xff]   ;;  %v8562_v44 = vld [vmem:[%s12785_s2 + $0x524] ss:$16 sps:$4 sm:$0xff]  }
  0x68   :  { %2579 = vmatprep.subr.bf16.mxu0 %v8470_v45  ;;  %2866 = vmatprep.subr.bf16.mxu1 %v8473_v46  ;;  %v8565_v45 = vld [vmem:[%s12785_s2 + $0x52c] ss:$16 sps:$4 sm:$0xff]   ;;  %v8560_v46 = vld [vmem:[%s12785_s2 + $0x520] ss:$16 sps:$4 sm:$0xff]  }
  0x6b   :  { %2580 = vmatpush1.bf16.msra.mxu0 %v8468_v47  ;;  %2867 = vmatpush1.bf16.msra.mxu1 %v8471_v48  ;;  %v8563_v47 = vld [vmem:[%s12785_s2 + $0x528] ss:$16 sps:$4 sm:$0xff]   ;;  %v8568_v48 = vld [vmem:[%s12785_s2 + $0x544] ss:$16 sps:$4 sm:$0xff]  }
  0x6c   :  { %2581 = vmatprep.subr.bf16.mxu0 %v8476_v49  ;;  %2868 = vmatprep.subr.bf16.mxu1 %v8479_v50  ;;  %v8571_v49 = vld [vmem:[%s12785_s2 + $0x54c] ss:$16 sps:$4 sm:$0xff]   ;;  %v8566_v50 = vld [vmem:[%s12785_s2 + $0x540] ss:$16 sps:$4 sm:$0xff]  }
  0x6f   :  { %2582 = vmatpush1.bf16.msra.mxu0 %v8474_v51  ;;  %2869 = vmatpush1.bf16.msra.mxu1 %v8477_v52  ;;  %v8569_v51 = vld [vmem:[%s12785_s2 + $0x548] ss:$16 sps:$4 sm:$0xff]   ;;  %v8574_v52 = vld [vmem:[%s12785_s2 + $0x564] ss:$16 sps:$4 sm:$0xff]  }
  0x70   :  { %2583 = vmatprep.subr.bf16.mxu0 %v8482_v53  ;;  %2870 = vmatprep.subr.bf16.mxu1 %v8485_v54  ;;  %v8577_v53 = vld [vmem:[%s12785_s2 + $0x56c] ss:$16 sps:$4 sm:$0xff]   ;;  %v8572_v54 = vld [vmem:[%s12785_s2 + $0x560] ss:$16 sps:$4 sm:$0xff]  }
  0x73   :  { %2584 = vmatpush1.bf16.msra.mxu0 %v8480_v55  ;;  %2871 = vmatpush1.bf16.msra.mxu1 %v8483_v56  ;;  %v8575_v55 = vld [vmem:[%s12785_s2 + $0x568] ss:$16 sps:$4 sm:$0xff]   ;;  %v8580_v56 = vld [vmem:[%s12785_s2 + $0x584] ss:$16 sps:$4 sm:$0xff]  }
  0x74   :  { %2585 = vmatprep.subr.bf16.mxu0 %v8488_v57  ;;  %2872 = vmatprep.subr.bf16.mxu1 %v8491_v58  ;;  %v8583_v57 = vld [vmem:[%s12785_s2 + $0x58c] ss:$16 sps:$4 sm:$0xff]   ;;  %v8578_v58 = vld [vmem:[%s12785_s2 + $0x580] ss:$16 sps:$4 sm:$0xff]  }
  0x77   :  { %2586 = vmatpush1.bf16.msra.mxu0 %v8486_v59  ;;  %2873 = vmatpush1.bf16.msra.mxu1 %v8489_v60  ;;  %v8581_v59 = vld [vmem:[%s12785_s2 + $0x588] ss:$16 sps:$4 sm:$0xff]   ;;  %v8586_v60 = vld [vmem:[%s12785_s2 + $0x5a4] ss:$16 sps:$4 sm:$0xff]  }
  0x78   :  { %2587 = vmatprep.subr.bf16.mxu0 %v8494_v61  ;;  %2874 = vmatprep.subr.bf16.mxu1 %v8497_v62  ;;  %v8589_v61 = vld [vmem:[%s12785_s2 + $0x5ac] ss:$16 sps:$4 sm:$0xff]   ;;  %v8584_v62 = vld [vmem:[%s12785_s2 + $0x5a0] ss:$16 sps:$4 sm:$0xff]  }
  0x7b   :  { %2588 = vmatpush1.bf16.msra.mxu0 %v8492_v63  ;;  %2875 = vmatpush1.bf16.msra.mxu1 %v8495_v0  ;;  %v8587_v63 = vld [vmem:[%s12785_s2 + $0x5a8] ss:$16 sps:$4 sm:$0xff]   ;;  %v8592_v0 = vld [vmem:[%s12785_s2 + $0x5c4] ss:$16 sps:$4 sm:$0xff]  }
  0x7c   :  { %2589 = vmatprep.subr.bf16.mxu0 %v8500_v1  ;;  %2876 = vmatprep.subr.bf16.mxu1 %v8503_v2  ;;  %v8595_v1 = vld [vmem:[%s12785_s2 + $0x5cc] ss:$16 sps:$4 sm:$0xff]   ;;  %v8590_v2 = vld [vmem:[%s12785_s2 + $0x5c0] ss:$16 sps:$4 sm:$0xff]  }
  0x7f   :  { %2590 = vmatpush1.bf16.msra.mxu0 %v8498_v3  ;;  %2877 = vmatpush1.bf16.msra.mxu1 %v8501_v4  ;;  %v8593_v3 = vld [vmem:[%s12785_s2 + $0x5c8] ss:$16 sps:$4 sm:$0xff]   ;;  %v8598_v4 = vld [vmem:[%s12785_s2 + $0x5e4] ss:$16 sps:$4 sm:$0xff]  }
  0x80   :  { %2600 = vmatprep.subr.bf16.mxu0 %v8508_v5  ;;  %2887 = vmatprep.subr.bf16.mxu1 %v8511_v6  ;;  %v8601_v5 = vld [vmem:[%s12785_s2 + $0x5ec] ss:$16 sps:$4 sm:$0xff]   ;;  %v8596_v6 = vld [vmem:[%s12785_s2 + $0x5e0] ss:$16 sps:$4 sm:$0xff]  }
  0x82   :  { %2592 = vmatmul.mubr.bf16.vlgmr.msra.gmra.mrb[0].mxu0 %v7229_v7  ;;  %2879 = vmatmul.mubr.bf16.vlgmr.msra.gmra.mrb[0].mxu1 %v7229_v7  ;;  %v8599_v7 = vld [vmem:[%s12785_s2 + $0x5e8] ss:$16 sps:$4 sm:$0xff]  }
  0x83   :  { %2601 = vmatpush1.bf16.msra.mxu0 %v8506_v8  ;;  %2888 = vmatpush1.bf16.msra.mxu1 %v8509_v9  ;;  %v8606_v8 = vld [vmem:[%s12785_s2 + $0x604] ss:$16 sps:$4 sm:$0xff]   ;;  %v8609_v9 = vld [vmem:[%s12785_s2 + $0x60c] ss:$16 sps:$4 sm:$0xff]  }
  0x84   :  { %2602 = vmatprep.subr.bf16.mxu0 %v8514_v10  ;;  %2889 = vmatprep.subr.bf16.mxu1 %v8517_v12  ;;  %v8604_v10 = vld [vmem:[%s12785_s2 + $0x600] ss:$16 sps:$4 sm:$0xff]   ;;  %v7231_v12 = vcombine.low %v10229_v11, %v10229_v11  ;;  %v8615_v11 = vld [vmem:[%s12785_s2 + $0x62c] ss:$16 sps:$4 sm:$0xff]  }
  0x85   :  { %2632 = vmatprep.mubr.bf16.mxu0 %v7232_v13  ;;  %2919 = vmatprep.mubr.bf16.mxu1 %v7232_v13  ;;  %v8607_v13 = vld [vmem:[%s12785_s2 + $0x608] ss:$16 sps:$4 sm:$0xff]  }
  0x87   :  { %2603 = vmatpush1.bf16.msra.mxu0 %v8512_v14  ;;  %2890 = vmatpush1.bf16.msra.mxu1 %v8515_v15  ;;  %v10427_v14 = vld [vmem:[%s12783_s0 + $0x18] sm:$0xff]  ;;  %v8612_v15 = vld [vmem:[%s12785_s2 + $0x624] ss:$16 sps:$4 sm:$0xff]  }
  0x88   :  { %2604 = vmatprep.subr.bf16.mxu0 %v8520_v16  ;;  %2891 = vmatprep.subr.bf16.mxu1 %v8523_v17  ;;  %v7234_v16 = vcombine.high %v10427_v14, %v10427_v14  ;;  %v8610_v17 = vld [vmem:[%s12785_s2 + $0x620] ss:$16 sps:$4 sm:$0xff]  }
  0x8b   :  { %2605 = vmatpush1.bf16.msra.mxu0 %v8518_v18  ;;  %2892 = vmatpush1.bf16.msra.mxu1 %v8521_v19  ;;  %v8613_v18 = vld [vmem:[%s12785_s2 + $0x628] ss:$16 sps:$4 sm:$0xff]   ;;  %v8618_v19 = vld [vmem:[%s12785_s2 + $0x644] ss:$16 sps:$4 sm:$0xff]  }
  0x8c   :  { %2606 = vmatprep.subr.bf16.mxu0 %v8526_v20  ;;  %2893 = vmatprep.subr.bf16.mxu1 %v8529_v21  ;;  %v8621_v20 = vld [vmem:[%s12785_s2 + $0x64c] ss:$16 sps:$4 sm:$0xff]   ;;  %v8616_v21 = vld [vmem:[%s12785_s2 + $0x640] ss:$16 sps:$4 sm:$0xff]  }
  0x8f   :  { %2607 = vmatpush1.bf16.msra.mxu0 %v8524_v22  ;;  %2894 = vmatpush1.bf16.msra.mxu1 %v8527_v23  ;;  %v8619_v22 = vld [vmem:[%s12785_s2 + $0x648] ss:$16 sps:$4 sm:$0xff]   ;;  %v8624_v23 = vld [vmem:[%s12785_s2 + $0x664] ss:$16 sps:$4 sm:$0xff]  }
  0x90   :  { %2608 = vmatprep.subr.bf16.mxu0 %v8532_v24  ;;  %2895 = vmatprep.subr.bf16.mxu1 %v8535_v25  ;;  %v8627_v24 = vld [vmem:[%s12785_s2 + $0x66c] ss:$16 sps:$4 sm:$0xff]   ;;  %v8622_v25 = vld [vmem:[%s12785_s2 + $0x660] ss:$16 sps:$4 sm:$0xff]  }
  0x93   :  { %2609 = vmatpush1.bf16.msra.mxu0 %v8530_v26  ;;  %2896 = vmatpush1.bf16.msra.mxu1 %v8533_v27  ;;  %v8625_v26 = vld [vmem:[%s12785_s2 + $0x668] ss:$16 sps:$4 sm:$0xff]   ;;  %v8630_v27 = vld [vmem:[%s12785_s2 + $0x684] ss:$16 sps:$4 sm:$0xff]  }
  0x94   :  { %2610 = vmatprep.subr.bf16.mxu0 %v8538_v28  ;;  %2897 = vmatprep.subr.bf16.mxu1 %v8541_v29  ;;  %v8633_v28 = vld [vmem:[%s12785_s2 + $0x68c] ss:$16 sps:$4 sm:$0xff]   ;;  %v8628_v29 = vld [vmem:[%s12785_s2 + $0x680] ss:$16 sps:$4 sm:$0xff]  }
  0x97   :  { %2611 = vmatpush1.bf16.msra.mxu0 %v8536_v30  ;;  %2898 = vmatpush1.bf16.msra.mxu1 %v8539_v31  ;;  %v8631_v30 = vld [vmem:[%s12785_s2 + $0x688] ss:$16 sps:$4 sm:$0xff]   ;;  %v8636_v31 = vld [vmem:[%s12785_s2 + $0x6a4] ss:$16 sps:$4 sm:$0xff]  }
  0x98   :  { %2612 = vmatprep.subr.bf16.mxu0 %v8544_v32  ;;  %2899 = vmatprep.subr.bf16.mxu1 %v8547_v33  ;;  %v8639_v32 = vld [vmem:[%s12785_s2 + $0x6ac] ss:$16 sps:$4 sm:$0xff]   ;;  %v8634_v33 = vld [vmem:[%s12785_s2 + $0x6a0] ss:$16 sps:$4 sm:$0xff]  }
  0x9b   :  { %2613 = vmatpush1.bf16.msra.mxu0 %v8542_v34  ;;  %2900 = vmatpush1.bf16.msra.mxu1 %v8545_v35  ;;  %v8637_v34 = vld [vmem:[%s12785_s2 + $0x6a8] ss:$16 sps:$4 sm:$0xff]   ;;  %v8642_v35 = vld [vmem:[%s12785_s2 + $0x6c4] ss:$16 sps:$4 sm:$0xff]  }
  0x9c   :  { %2614 = vmatprep.subr.bf16.mxu0 %v8550_v36  ;;  %2901 = vmatprep.subr.bf16.mxu1 %v8553_v37  ;;  %v8645_v36 = vld [vmem:[%s12785_s2 + $0x6cc] ss:$16 sps:$4 sm:$0xff]   ;;  %v8640_v37 = vld [vmem:[%s12785_s2 + $0x6c0] ss:$16 sps:$4 sm:$0xff]  }
  0x9f   :  { %2615 = vmatpush1.bf16.msra.mxu0 %v8548_v38  ;;  %2902 = vmatpush1.bf16.msra.mxu1 %v8551_v39  ;;  %v8643_v38 = vld [vmem:[%s12785_s2 + $0x6c8] ss:$16 sps:$4 sm:$0xff]   ;;  %v8648_v39 = vld [vmem:[%s12785_s2 + $0x6e4] ss:$16 sps:$4 sm:$0xff]  }
  0xa0   :  { %2616 = vmatprep.subr.bf16.mxu0 %v8556_v40  ;;  %2903 = vmatprep.subr.bf16.mxu1 %v8559_v41  ;;  %v8651_v40 = vld [vmem:[%s12785_s2 + $0x6ec] ss:$16 sps:$4 sm:$0xff]   ;;  %v8646_v41 = vld [vmem:[%s12785_s2 + $0x6e0] ss:$16 sps:$4 sm:$0xff]  }
  0xa3   :  { %2617 = vmatpush1.bf16.msra.mxu0 %v8554_v42  ;;  %2904 = vmatpush1.bf16.msra.mxu1 %v8557_v43  ;;  %v8649_v42 = vld [vmem:[%s12785_s2 + $0x6e8] ss:$16 sps:$4 sm:$0xff]   ;;  %v8654_v43 = vld [vmem:[%s12785_s2 + $0x704] ss:$16 sps:$4 sm:$0xff]  }
  0xa4   :  { %2618 = vmatprep.subr.bf16.mxu0 %v8562_v44  ;;  %2905 = vmatprep.subr.bf16.mxu1 %v8565_v45  ;;  %v8657_v44 = vld [vmem:[%s12785_s2 + $0x70c] ss:$16 sps:$4 sm:$0xff]   ;;  %v8652_v45 = vld [vmem:[%s12785_s2 + $0x700] ss:$16 sps:$4 sm:$0xff]  }
  0xa7   :  { %2619 = vmatpush1.bf16.msra.mxu0 %v8560_v46  ;;  %2906 = vmatpush1.bf16.msra.mxu1 %v8563_v47  ;;  %v8655_v46 = vld [vmem:[%s12785_s2 + $0x708] ss:$16 sps:$4 sm:$0xff]   ;;  %v8660_v47 = vld [vmem:[%s12785_s2 + $0x724] ss:$16 sps:$4 sm:$0xff]  }
  0xa8   :  { %2620 = vmatprep.subr.bf16.mxu0 %v8568_v48  ;;  %2907 = vmatprep.subr.bf16.mxu1 %v8571_v49  ;;  %v8663_v48 = vld [vmem:[%s12785_s2 + $0x72c] ss:$16 sps:$4 sm:$0xff]   ;;  %v8658_v49 = vld [vmem:[%s12785_s2 + $0x720] ss:$16 sps:$4 sm:$0xff]  }
  0xab   :  { %2621 = vmatpush1.bf16.msra.mxu0 %v8566_v50  ;;  %2908 = vmatpush1.bf16.msra.mxu1 %v8569_v51  ;;  %v8661_v50 = vld [vmem:[%s12785_s2 + $0x728] ss:$16 sps:$4 sm:$0xff]   ;;  %v8666_v51 = vld [vmem:[%s12785_s2 + $0x744] ss:$16 sps:$4 sm:$0xff]  }
  0xac   :  { %2622 = vmatprep.subr.bf16.mxu0 %v8574_v52  ;;  %2909 = vmatprep.subr.bf16.mxu1 %v8577_v53  ;;  %v8669_v52 = vld [vmem:[%s12785_s2 + $0x74c] ss:$16 sps:$4 sm:$0xff]   ;;  %v8664_v53 = vld [vmem:[%s12785_s2 + $0x740] ss:$16 sps:$4 sm:$0xff]  }
  0xaf   :  { %2623 = vmatpush1.bf16.msra.mxu0 %v8572_v54  ;;  %2910 = vmatpush1.bf16.msra.mxu1 %v8575_v55  ;;  %v8667_v54 = vld [vmem:[%s12785_s2 + $0x748] ss:$16 sps:$4 sm:$0xff]   ;;  %v8672_v55 = vld [vmem:[%s12785_s2 + $0x764] ss:$16 sps:$4 sm:$0xff]  }
  0xb0   :  { %2624 = vmatprep.subr.bf16.mxu0 %v8580_v56  ;;  %2911 = vmatprep.subr.bf16.mxu1 %v8583_v57  ;;  %v8675_v56 = vld [vmem:[%s12785_s2 + $0x76c] ss:$16 sps:$4 sm:$0xff]   ;;  %v8670_v57 = vld [vmem:[%s12785_s2 + $0x760] ss:$16 sps:$4 sm:$0xff]  }
  0xb3   :  { %2625 = vmatpush1.bf16.msra.mxu0 %v8578_v58  ;;  %2912 = vmatpush1.bf16.msra.mxu1 %v8581_v59  ;;  %v8673_v58 = vld [vmem:[%s12785_s2 + $0x768] ss:$16 sps:$4 sm:$0xff]   ;;  %v8678_v59 = vld [vmem:[%s12785_s2 + $0x784] ss:$16 sps:$4 sm:$0xff]  }
  0xb4   :  { %2626 = vmatprep.subr.bf16.mxu0 %v8586_v60  ;;  %2913 = vmatprep.subr.bf16.mxu1 %v8589_v61  ;;  %v8681_v60 = vld [vmem:[%s12785_s2 + $0x78c] ss:$16 sps:$4 sm:$0xff]   ;;  %v8676_v61 = vld [vmem:[%s12785_s2 + $0x780] ss:$16 sps:$4 sm:$0xff]  }
  0xb7   :  { %2627 = vmatpush1.bf16.msra.mxu0 %v8584_v62  ;;  %2914 = vmatpush1.bf16.msra.mxu1 %v8587_v63  ;;  %v8679_v62 = vld [vmem:[%s12785_s2 + $0x788] ss:$16 sps:$4 sm:$0xff]   ;;  %v8684_v63 = vld [vmem:[%s12785_s2 + $0x7a4] ss:$16 sps:$4 sm:$0xff]  }
  0xb8   :  { %2628 = vmatprep.subr.bf16.mxu0 %v8592_v0  ;;  %2915 = vmatprep.subr.bf16.mxu1 %v8595_v1  ;;  %v8687_v0 = vld [vmem:[%s12785_s2 + $0x7ac] ss:$16 sps:$4 sm:$0xff]   ;;  %v8682_v1 = vld [vmem:[%s12785_s2 + $0x7a0] ss:$16 sps:$4 sm:$0xff]  }
  0xbb   :  { %2629 = vmatpush1.bf16.msra.mxu0 %v8590_v2  ;;  %2916 = vmatpush1.bf16.msra.mxu1 %v8593_v3  ;;  %v8685_v2 = vld [vmem:[%s12785_s2 + $0x7a8] ss:$16 sps:$4 sm:$0xff]   ;;  %v8690_v3 = vld [vmem:[%s12785_s2 + $0x7c4] ss:$16 sps:$4 sm:$0xff]  }
  0xbc   :  { %2630 = vmatprep.subr.bf16.mxu0 %v8598_v4  ;;  %2917 = vmatprep.subr.bf16.mxu1 %v8601_v5  ;;  %v8693_v4 = vld [vmem:[%s12785_s2 + $0x7cc] ss:$16 sps:$4 sm:$0xff]   ;;  %v8688_v5 = vld [vmem:[%s12785_s2 + $0x7c0] ss:$16 sps:$4 sm:$0xff]  }
  0xbf   :  { %2631 = vmatpush1.bf16.msra.mxu0 %v8596_v6  ;;  %2918 = vmatpush1.bf16.msra.mxu1 %v8599_v7  ;;  %v8691_v6 = vld [vmem:[%s12785_s2 + $0x7c8] ss:$16 sps:$4 sm:$0xff]   ;;  %v8696_v7 = vld [vmem:[%s12785_s2 + $0x7e4] ss:$16 sps:$4 sm:$0xff]  }
  0xc0   :  { %2641 = vmatprep.subr.bf16.mxu0 %v8606_v8  ;;  %2928 = vmatprep.subr.bf16.mxu1 %v8609_v9  ;;  %v8699_v8 = vld [vmem:[%s12785_s2 + $0x7ec] ss:$16 sps:$4 sm:$0xff]   ;;  %v8694_v9 = vld [vmem:[%s12785_s2 + $0x7e0] ss:$16 sps:$4 sm:$0xff]  }
  0xc2   :  { %2633 = vmatmul.mubr.bf16.vlgmr.msra.gmra.mrb[0].mxu0 %v7231_v12  ;;  %2920 = vmatmul.mubr.bf16.vlgmr.msra.gmra.mrb[0].mxu1 %v7231_v12  ;;  %v8704_v12 = vld [vmem:[%s12785_s2 + $0x804] ss:$16 sps:$4 sm:$0xff]  }
  0xc3   :  { %2642 = vmatpush1.bf16.msra.mxu0 %v8604_v10  ;;  %2929 = vmatpush1.bf16.msra.mxu1 %v8607_v13  ;;  %v8697_v10 = vld [vmem:[%s12785_s2 + $0x7e8] ss:$16 sps:$4 sm:$0xff]   ;;  %v8707_v13 = vld [vmem:[%s12785_s2 + $0x80c] ss:$16 sps:$4 sm:$0xff]  }
  0xc4   :  { %2643 = vmatprep.subr.bf16.mxu0 %v8612_v15  ;;  %2930 = vmatprep.subr.bf16.mxu1 %v8615_v11  ;;  %v8702_v15 = vld [vmem:[%s12785_s2 + $0x800] ss:$16 sps:$4 sm:$0xff]   ;;  %v7233_v11 = vcombine.low %v10427_v14, %v10427_v14  ;;  %v8713_v14 = vld [vmem:[%s12785_s2 + $0x82c] ss:$16 sps:$4 sm:$0xff]  }
  0xc5   :  { %2673 = vmatprep.mubr.bf16.mxu0 %v7234_v16  ;;  %2960 = vmatprep.mubr.bf16.mxu1 %v7234_v16  ;;  %v10625_v16 = vld [vmem:[%s12783_s0 + $0x20] sm:$0xff] }
  0xc7   :  { %2644 = vmatpush1.bf16.msra.mxu0 %v8610_v17  ;;  %2931 = vmatpush1.bf16.msra.mxu1 %v8613_v18  ;;  %v8705_v17 = vld [vmem:[%s12785_s2 + $0x808] ss:$16 sps:$4 sm:$0xff]   ;;  %v8710_v18 = vld [vmem:[%s12785_s2 + $0x824] ss:$16 sps:$4 sm:$0xff]  }
  0xc8   :  { %2645 = vmatprep.subr.bf16.mxu0 %v8618_v19  ;;  %2932 = vmatprep.subr.bf16.mxu1 %v8621_v20  ;;  %v7236_v19 = vcombine.high %v10625_v16, %v10625_v16  ;;  %v8708_v20 = vld [vmem:[%s12785_s2 + $0x820] ss:$16 sps:$4 sm:$0xff]  }
  0xcb   :  { %2646 = vmatpush1.bf16.msra.mxu0 %v8616_v21  ;;  %2933 = vmatpush1.bf16.msra.mxu1 %v8619_v22  ;;  %v8711_v21 = vld [vmem:[%s12785_s2 + $0x828] ss:$16 sps:$4 sm:$0xff]   ;;  %v8716_v22 = vld [vmem:[%s12785_s2 + $0x844] ss:$16 sps:$4 sm:$0xff]  }
  0xcc   :  { %2647 = vmatprep.subr.bf16.mxu0 %v8624_v23  ;;  %2934 = vmatprep.subr.bf16.mxu1 %v8627_v24  ;;  %v8719_v23 = vld [vmem:[%s12785_s2 + $0x84c] ss:$16 sps:$4 sm:$0xff]   ;;  %v8714_v24 = vld [vmem:[%s12785_s2 + $0x840] ss:$16 sps:$4 sm:$0xff]  }
  0xcf   :  { %2648 = vmatpush1.bf16.msra.mxu0 %v8622_v25  ;;  %2935 = vmatpush1.bf16.msra.mxu1 %v8625_v26  ;;  %v8717_v25 = vld [vmem:[%s12785_s2 + $0x848] ss:$16 sps:$4 sm:$0xff]   ;;  %v8722_v26 = vld [vmem:[%s12785_s2 + $0x864] ss:$16 sps:$4 sm:$0xff]  }
  0xd0   :  { %2649 = vmatprep.subr.bf16.mxu0 %v8630_v27  ;;  %2936 = vmatprep.subr.bf16.mxu1 %v8633_v28  ;;  %v8725_v27 = vld [vmem:[%s12785_s2 + $0x86c] ss:$16 sps:$4 sm:$0xff]   ;;  %v8720_v28 = vld [vmem:[%s12785_s2 + $0x860] ss:$16 sps:$4 sm:$0xff]  }
  0xd3   :  { %2650 = vmatpush1.bf16.msra.mxu0 %v8628_v29  ;;  %2937 = vmatpush1.bf16.msra.mxu1 %v8631_v30  ;;  %v8723_v29 = vld [vmem:[%s12785_s2 + $0x868] ss:$16 sps:$4 sm:$0xff]   ;;  %v8728_v30 = vld [vmem:[%s12785_s2 + $0x884] ss:$16 sps:$4 sm:$0xff]  }
  0xd4   :  { %2651 = vmatprep.subr.bf16.mxu0 %v8636_v31  ;;  %2938 = vmatprep.subr.bf16.mxu1 %v8639_v32  ;;  %v8731_v31 = vld [vmem:[%s12785_s2 + $0x88c] ss:$16 sps:$4 sm:$0xff]   ;;  %v8726_v32 = vld [vmem:[%s12785_s2 + $0x880] ss:$16 sps:$4 sm:$0xff]  }
  0xd7   :  { %2652 = vmatpush1.bf16.msra.mxu0 %v8634_v33  ;;  %2939 = vmatpush1.bf16.msra.mxu1 %v8637_v34  ;;  %v8729_v33 = vld [vmem:[%s12785_s2 + $0x888] ss:$16 sps:$4 sm:$0xff]   ;;  %v8734_v34 = vld [vmem:[%s12785_s2 + $0x8a4] ss:$16 sps:$4 sm:$0xff]  }
  0xd8   :  { %2653 = vmatprep.subr.bf16.mxu0 %v8642_v35  ;;  %2940 = vmatprep.subr.bf16.mxu1 %v8645_v36  ;;  %v8737_v35 = vld [vmem:[%s12785_s2 + $0x8ac] ss:$16 sps:$4 sm:$0xff]   ;;  %v8732_v36 = vld [vmem:[%s12785_s2 + $0x8a0] ss:$16 sps:$4 sm:$0xff]  }
  0xdb   :  { %2654 = vmatpush1.bf16.msra.mxu0 %v8640_v37  ;;  %2941 = vmatpush1.bf16.msra.mxu1 %v8643_v38  ;;  %v8735_v37 = vld [vmem:[%s12785_s2 + $0x8a8] ss:$16 sps:$4 sm:$0xff]   ;;  %v8740_v38 = vld [vmem:[%s12785_s2 + $0x8c4] ss:$16 sps:$4 sm:$0xff]  }
  0xdc   :  { %2655 = vmatprep.subr.bf16.mxu0 %v8648_v39  ;;  %2942 = vmatprep.subr.bf16.mxu1 %v8651_v40  ;;  %v8743_v39 = vld [vmem:[%s12785_s2 + $0x8cc] ss:$16 sps:$4 sm:$0xff]   ;;  %v8738_v40 = vld [vmem:[%s12785_s2 + $0x8c0] ss:$16 sps:$4 sm:$0xff]  }
  0xdf   :  { %2656 = vmatpush1.bf16.msra.mxu0 %v8646_v41  ;;  %2943 = vmatpush1.bf16.msra.mxu1 %v8649_v42  ;;  %v8741_v41 = vld [vmem:[%s12785_s2 + $0x8c8] ss:$16 sps:$4 sm:$0xff]   ;;  %v8746_v42 = vld [vmem:[%s12785_s2 + $0x8e4] ss:$16 sps:$4 sm:$0xff]  }
  0xe0   :  { %2657 = vmatprep.subr.bf16.mxu0 %v8654_v43  ;;  %2944 = vmatprep.subr.bf16.mxu1 %v8657_v44  ;;  %v8749_v43 = vld [vmem:[%s12785_s2 + $0x8ec] ss:$16 sps:$4 sm:$0xff]   ;;  %v8744_v44 = vld [vmem:[%s12785_s2 + $0x8e0] ss:$16 sps:$4 sm:$0xff]  }
  0xe3   :  { %2658 = vmatpush1.bf16.msra.mxu0 %v8652_v45  ;;  %2945 = vmatpush1.bf16.msra.mxu1 %v8655_v46  ;;  %v8747_v45 = vld [vmem:[%s12785_s2 + $0x8e8] ss:$16 sps:$4 sm:$0xff]   ;;  %v8752_v46 = vld [vmem:[%s12785_s2 + $0x904] ss:$16 sps:$4 sm:$0xff]  }
  0xe4   :  { %2659 = vmatprep.subr.bf16.mxu0 %v8660_v47  ;;  %2946 = vmatprep.subr.bf16.mxu1 %v8663_v48  ;;  %v8755_v47 = vld [vmem:[%s12785_s2 + $0x90c] ss:$16 sps:$4 sm:$0xff]   ;;  %v8750_v48 = vld [vmem:[%s12785_s2 + $0x900] ss:$16 sps:$4 sm:$0xff]  }
  0xe7   :  { %2660 = vmatpush1.bf16.msra.mxu0 %v8658_v49  ;;  %2947 = vmatpush1.bf16.msra.mxu1 %v8661_v50  ;;  %v8753_v49 = vld [vmem:[%s12785_s2 + $0x908] ss:$16 sps:$4 sm:$0xff]   ;;  %v8758_v50 = vld [vmem:[%s12785_s2 + $0x924] ss:$16 sps:$4 sm:$0xff]  }
  0xe8   :  { %2661 = vmatprep.subr.bf16.mxu0 %v8666_v51  ;;  %2948 = vmatprep.subr.bf16.mxu1 %v8669_v52  ;;  %v8761_v51 = vld [vmem:[%s12785_s2 + $0x92c] ss:$16 sps:$4 sm:$0xff]   ;;  %v8756_v52 = vld [vmem:[%s12785_s2 + $0x920] ss:$16 sps:$4 sm:$0xff]  }
  0xeb   :  { %2662 = vmatpush1.bf16.msra.mxu0 %v8664_v53  ;;  %2949 = vmatpush1.bf16.msra.mxu1 %v8667_v54  ;;  %v8759_v53 = vld [vmem:[%s12785_s2 + $0x928] ss:$16 sps:$4 sm:$0xff]   ;;  %v8764_v54 = vld [vmem:[%s12785_s2 + $0x944] ss:$16 sps:$4 sm:$0xff]  }
  0xec   :  { %2663 = vmatprep.subr.bf16.mxu0 %v8672_v55  ;;  %2950 = vmatprep.subr.bf16.mxu1 %v8675_v56  ;;  %v8767_v55 = vld [vmem:[%s12785_s2 + $0x94c] ss:$16 sps:$4 sm:$0xff]   ;;  %v8762_v56 = vld [vmem:[%s12785_s2 + $0x940] ss:$16 sps:$4 sm:$0xff]  }
  0xef   :  { %2664 = vmatpush1.bf16.msra.mxu0 %v8670_v57  ;;  %2951 = vmatpush1.bf16.msra.mxu1 %v8673_v58  ;;  %v8765_v57 = vld [vmem:[%s12785_s2 + $0x948] ss:$16 sps:$4 sm:$0xff]   ;;  %v8770_v58 = vld [vmem:[%s12785_s2 + $0x964] ss:$16 sps:$4 sm:$0xff]  }
  0xf0   :  { %2665 = vmatprep.subr.bf16.mxu0 %v8678_v59  ;;  %2952 = vmatprep.subr.bf16.mxu1 %v8681_v60  ;;  %v8773_v59 = vld [vmem:[%s12785_s2 + $0x96c] ss:$16 sps:$4 sm:$0xff]   ;;  %v8768_v60 = vld [vmem:[%s12785_s2 + $0x960] ss:$16 sps:$4 sm:$0xff]  }
  0xf3   :  { %2666 = vmatpush1.bf16.msra.mxu0 %v8676_v61  ;;  %2953 = vmatpush1.bf16.msra.mxu1 %v8679_v62  ;;  %v8771_v61 = vld [vmem:[%s12785_s2 + $0x968] ss:$16 sps:$4 sm:$0xff]   ;;  %v8776_v62 = vld [vmem:[%s12785_s2 + $0x984] ss:$16 sps:$4 sm:$0xff]  }
  0xf4   :  { %2667 = vmatprep.subr.bf16.mxu0 %v8684_v63  ;;  %2954 = vmatprep.subr.bf16.mxu1 %v8687_v0  ;;  %v8779_v63 = vld [vmem:[%s12785_s2 + $0x98c] ss:$16 sps:$4 sm:$0xff]   ;;  %v8774_v0 = vld [vmem:[%s12785_s2 + $0x980] ss:$16 sps:$4 sm:$0xff]  }
  0xf7   :  { %2668 = vmatpush1.bf16.msra.mxu0 %v8682_v1  ;;  %2955 = vmatpush1.bf16.msra.mxu1 %v8685_v2  ;;  %v8777_v1 = vld [vmem:[%s12785_s2 + $0x988] ss:$16 sps:$4 sm:$0xff]   ;;  %v8782_v2 = vld [vmem:[%s12785_s2 + $0x9a4] ss:$16 sps:$4 sm:$0xff]  }
  0xf8   :  { %2669 = vmatprep.subr.bf16.mxu0 %v8690_v3  ;;  %2956 = vmatprep.subr.bf16.mxu1 %v8693_v4  ;;  %v8785_v3 = vld [vmem:[%s12785_s2 + $0x9ac] ss:$16 sps:$4 sm:$0xff]   ;;  %v8780_v4 = vld [vmem:[%s12785_s2 + $0x9a0] ss:$16 sps:$4 sm:$0xff]  }
  0xfb   :  { %2670 = vmatpush1.bf16.msra.mxu0 %v8688_v5  ;;  %2957 = vmatpush1.bf16.msra.mxu1 %v8691_v6  ;;  %v8783_v5 = vld [vmem:[%s12785_s2 + $0x9a8] ss:$16 sps:$4 sm:$0xff]   ;;  %v8788_v6 = vld [vmem:[%s12785_s2 + $0x9c4] ss:$16 sps:$4 sm:$0xff]  }
  0xfc   :  { %2671 = vmatprep.subr.bf16.mxu0 %v8696_v7  ;;  %2958 = vmatprep.subr.bf16.mxu1 %v8699_v8  ;;  %v8791_v7 = vld [vmem:[%s12785_s2 + $0x9cc] ss:$16 sps:$4 sm:$0xff]   ;;  %v8786_v8 = vld [vmem:[%s12785_s2 + $0x9c0] ss:$16 sps:$4 sm:$0xff]  }
  0xff   :  { %2672 = vmatpush1.bf16.msra.mxu0 %v8694_v9  ;;  %2959 = vmatpush1.bf16.msra.mxu1 %v8697_v10  ;;  %v8789_v9 = vld [vmem:[%s12785_s2 + $0x9c8] ss:$16 sps:$4 sm:$0xff]   ;;  %v8794_v10 = vld [vmem:[%s12785_s2 + $0x9e4] ss:$16 sps:$4 sm:$0xff]  }
 0x100   :  { %2682 = vmatprep.subr.bf16.mxu0 %v8704_v12  ;;  %2969 = vmatprep.subr.bf16.mxu1 %v8707_v13  ;;  %v8797_v12 = vld [vmem:[%s12785_s2 + $0x9ec] ss:$16 sps:$4 sm:$0xff]   ;;  %v8792_v13 = vld [vmem:[%s12785_s2 + $0x9e0] ss:$16 sps:$4 sm:$0xff]  }
 0x102   :  { %2674 = vmatmul.mubr.bf16.vlgmr.msra.gmra.mrb[0].mxu0 %v7233_v11  ;;  %2961 = vmatmul.mubr.bf16.vlgmr.msra.gmra.mrb[0].mxu1 %v7233_v11  ;;  %v8802_v11 = vld [vmem:[%s12785_s2 + $0xa04] ss:$16 sps:$4 sm:$0xff]  }
 0x103   :  { %2683 = vmatpush1.bf16.msra.mxu0 %v8702_v15  ;;  %2970 = vmatpush1.bf16.msra.mxu1 %v8705_v17  ;;  %v8795_v15 = vld [vmem:[%s12785_s2 + $0x9e8] ss:$16 sps:$4 sm:$0xff]   ;;  %v8805_v17 = vld [vmem:[%s12785_s2 + $0xa0c] ss:$16 sps:$4 sm:$0xff]  }
 0x104   :  { %2684 = vmatprep.subr.bf16.mxu0 %v8710_v18  ;;  %2971 = vmatprep.subr.bf16.mxu1 %v8713_v14  ;;  %v10821_v18 = vld [vmem:[%s12783_s0 + $0x28] sm:$0xff]  ;;  %v8800_v14 = vld [vmem:[%s12785_s2 + $0xa00] ss:$16 sps:$4 sm:$0xff]  }
 0x105   :  { %2714 = vmatprep.mubr.bf16.mxu0 %v7236_v19  ;;  %3001 = vmatprep.mubr.bf16.mxu1 %v7236_v19  ;;  %v8803_v19 = vld [vmem:[%s12785_s2 + $0xa08] ss:$16 sps:$4 sm:$0xff]  }
 0x107   :  { %2685 = vmatpush1.bf16.msra.mxu0 %v8708_v20  ;;  %2972 = vmatpush1.bf16.msra.mxu1 %v8711_v21  ;;  %v7235_v20 = vcombine.low %v10625_v16, %v10625_v16  ;;  %v8808_v21 = vld [vmem:[%s12785_s2 + $0xa24] ss:$16 sps:$4 sm:$0xff]   ;;  %v8809_v16 = vld [vmem:[%s12785_s2 + $0xa28] ss:$16 sps:$4 sm:$0xff]  }
 0x108   :  { %2686 = vmatprep.subr.bf16.mxu0 %v8716_v22  ;;  %2973 = vmatprep.subr.bf16.mxu1 %v8719_v23  ;;  %v8811_v22 = vld [vmem:[%s12785_s2 + $0xa2c] ss:$16 sps:$4 sm:$0xff]   ;;  %v8806_v23 = vld [vmem:[%s12785_s2 + $0xa20] ss:$16 sps:$4 sm:$0xff]  }
 0x10b   :  { %2687 = vmatpush1.bf16.msra.mxu0 %v8714_v24  ;;  %2974 = vmatpush1.bf16.msra.mxu1 %v8717_v25  ;;  %v7238_v24 = vcombine.high %v10821_v18, %v10821_v18  ;;  %v8814_v25 = vld [vmem:[%s12785_s2 + $0xa44] ss:$16 sps:$4 sm:$0xff]  }
 0x10c   :  { %2688 = vmatprep.subr.bf16.mxu0 %v8722_v26  ;;  %2975 = vmatprep.subr.bf16.mxu1 %v8725_v27  ;;  %v8817_v26 = vld [vmem:[%s12785_s2 + $0xa4c] ss:$16 sps:$4 sm:$0xff]   ;;  %v8812_v27 = vld [vmem:[%s12785_s2 + $0xa40] ss:$16 sps:$4 sm:$0xff]  }
 0x10f   :  { %2689 = vmatpush1.bf16.msra.mxu0 %v8720_v28  ;;  %2976 = vmatpush1.bf16.msra.mxu1 %v8723_v29  ;;  %v8815_v28 = vld [vmem:[%s12785_s2 + $0xa48] ss:$16 sps:$4 sm:$0xff]   ;;  %v8820_v29 = vld [vmem:[%s12785_s2 + $0xa64] ss:$16 sps:$4 sm:$0xff]  }
 0x110   :  { %2690 = vmatprep.subr.bf16.mxu0 %v8728_v30  ;;  %2977 = vmatprep.subr.bf16.mxu1 %v8731_v31  ;;  %v8823_v30 = vld [vmem:[%s12785_s2 + $0xa6c] ss:$16 sps:$4 sm:$0xff]   ;;  %v8818_v31 = vld [vmem:[%s12785_s2 + $0xa60] ss:$16 sps:$4 sm:$0xff]  }
 0x113   :  { %2691 = vmatpush1.bf16.msra.mxu0 %v8726_v32  ;;  %2978 = vmatpush1.bf16.msra.mxu1 %v8729_v33  ;;  %v8821_v32 = vld [vmem:[%s12785_s2 + $0xa68] ss:$16 sps:$4 sm:$0xff]   ;;  %v8826_v33 = vld [vmem:[%s12785_s2 + $0xa84] ss:$16 sps:$4 sm:$0xff]  }
 0x114   :  { %2692 = vmatprep.subr.bf16.mxu0 %v8734_v34  ;;  %2979 = vmatprep.subr.bf16.mxu1 %v8737_v35  ;;  %v8829_v34 = vld [vmem:[%s12785_s2 + $0xa8c] ss:$16 sps:$4 sm:$0xff]   ;;  %v8824_v35 = vld [vmem:[%s12785_s2 + $0xa80] ss:$16 sps:$4 sm:$0xff]  }
 0x117   :  { %2693 = vmatpush1.bf16.msra.mxu0 %v8732_v36  ;;  %2980 = vmatpush1.bf16.msra.mxu1 %v8735_v37  ;;  %v8827_v36 = vld [vmem:[%s12785_s2 + $0xa88] ss:$16 sps:$4 sm:$0xff]   ;;  %v8832_v37 = vld [vmem:[%s12785_s2 + $0xaa4] ss:$16 sps:$4 sm:$0xff]  }
 0x118   :  { %2694 = vmatprep.subr.bf16.mxu0 %v8740_v38  ;;  %2981 = vmatprep.subr.bf16.mxu1 %v8743_v39  ;;  %v8835_v38 = vld [vmem:[%s12785_s2 + $0xaac] ss:$16 sps:$4 sm:$0xff]   ;;  %v8830_v39 = vld [vmem:[%s12785_s2 + $0xaa0] ss:$16 sps:$4 sm:$0xff]  }
 0x11b   :  { %2695 = vmatpush1.bf16.msra.mxu0 %v8738_v40  ;;  %2982 = vmatpush1.bf16.msra.mxu1 %v8741_v41  ;;  %v8833_v40 = vld [vmem:[%s12785_s2 + $0xaa8] ss:$16 sps:$4 sm:$0xff]   ;;  %v8838_v41 = vld [vmem:[%s12785_s2 + $0xac4] ss:$16 sps:$4 sm:$0xff]  }
 0x11c   :  { %2696 = vmatprep.subr.bf16.mxu0 %v8746_v42  ;;  %2983 = vmatprep.subr.bf16.mxu1 %v8749_v43  ;;  %v8841_v42 = vld [vmem:[%s12785_s2 + $0xacc] ss:$16 sps:$4 sm:$0xff]   ;;  %v8836_v43 = vld [vmem:[%s12785_s2 + $0xac0] ss:$16 sps:$4 sm:$0xff]  }
 0x11f   :  { %2697 = vmatpush1.bf16.msra.mxu0 %v8744_v44  ;;  %2984 = vmatpush1.bf16.msra.mxu1 %v8747_v45  ;;  %v8839_v44 = vld [vmem:[%s12785_s2 + $0xac8] ss:$16 sps:$4 sm:$0xff]   ;;  %v8844_v45 = vld [vmem:[%s12785_s2 + $0xae4] ss:$16 sps:$4 sm:$0xff]  }
 0x120   :  { %2698 = vmatprep.subr.bf16.mxu0 %v8752_v46  ;;  %2985 = vmatprep.subr.bf16.mxu1 %v8755_v47  ;;  %v8847_v46 = vld [vmem:[%s12785_s2 + $0xaec] ss:$16 sps:$4 sm:$0xff]   ;;  %v8842_v47 = vld [vmem:[%s12785_s2 + $0xae0] ss:$16 sps:$4 sm:$0xff]  }
 0x123   :  { %2699 = vmatpush1.bf16.msra.mxu0 %v8750_v48  ;;  %2986 = vmatpush1.bf16.msra.mxu1 %v8753_v49  ;;  %v8845_v48 = vld [vmem:[%s12785_s2 + $0xae8] ss:$16 sps:$4 sm:$0xff]   ;;  %v8850_v49 = vld [vmem:[%s12785_s2 + $0xb04] ss:$16 sps:$4 sm:$0xff]  }
 0x124   :  { %2700 = vmatprep.subr.bf16.mxu0 %v8758_v50  ;;  %2987 = vmatprep.subr.bf16.mxu1 %v8761_v51  ;;  %v8853_v50 = vld [vmem:[%s12785_s2 + $0xb0c] ss:$16 sps:$4 sm:$0xff]   ;;  %v8848_v51 = vld [vmem:[%s12785_s2 + $0xb00] ss:$16 sps:$4 sm:$0xff]  }
 0x127   :  { %2701 = vmatpush1.bf16.msra.mxu0 %v8756_v52  ;;  %2988 = vmatpush1.bf16.msra.mxu1 %v8759_v53  ;;  %v8851_v52 = vld [vmem:[%s12785_s2 + $0xb08] ss:$16 sps:$4 sm:$0xff]   ;;  %v8856_v53 = vld [vmem:[%s12785_s2 + $0xb24] ss:$16 sps:$4 sm:$0xff]  }
 0x128   :  { %2702 = vmatprep.subr.bf16.mxu0 %v8764_v54  ;;  %2989 = vmatprep.subr.bf16.mxu1 %v8767_v55  ;;  %v8859_v54 = vld [vmem:[%s12785_s2 + $0xb2c] ss:$16 sps:$4 sm:$0xff]   ;;  %v8854_v55 = vld [vmem:[%s12785_s2 + $0xb20] ss:$16 sps:$4 sm:$0xff]  }
 0x12b   :  { %2703 = vmatpush1.bf16.msra.mxu0 %v8762_v56  ;;  %2990 = vmatpush1.bf16.msra.mxu1 %v8765_v57  ;;  %v8857_v56 = vld [vmem:[%s12785_s2 + $0xb28] ss:$16 sps:$4 sm:$0xff]   ;;  %v8862_v57 = vld [vmem:[%s12785_s2 + $0xb44] ss:$16 sps:$4 sm:$0xff]  }
 0x12c   :  { %2704 = vmatprep.subr.bf16.mxu0 %v8770_v58  ;;  %2991 = vmatprep.subr.bf16.mxu1 %v8773_v59  ;;  %v8865_v58 = vld [vmem:[%s12785_s2 + $0xb4c] ss:$16 sps:$4 sm:$0xff]   ;;  %v8860_v59 = vld [vmem:[%s12785_s2 + $0xb40] ss:$16 sps:$4 sm:$0xff]  }
 0x12f   :  { %2705 = vmatpush1.bf16.msra.mxu0 %v8768_v60  ;;  %2992 = vmatpush1.bf16.msra.mxu1 %v8771_v61  ;;  %v8863_v60 = vld [vmem:[%s12785_s2 + $0xb48] ss:$16 sps:$4 sm:$0xff]   ;;  %v8868_v61 = vld [vmem:[%s12785_s2 + $0xb64] ss:$16 sps:$4 sm:$0xff]  }
 0x130   :  { %2706 = vmatprep.subr.bf16.mxu0 %v8776_v62  ;;  %2993 = vmatprep.subr.bf16.mxu1 %v8779_v63  ;;  %v8871_v62 = vld [vmem:[%s12785_s2 + $0xb6c] ss:$16 sps:$4 sm:$0xff]   ;;  %v8866_v63 = vld [vmem:[%s12785_s2 + $0xb60] ss:$16 sps:$4 sm:$0xff]  }
 0x133   :  { %2707 = vmatpush1.bf16.msra.mxu0 %v8774_v0  ;;  %2994 = vmatpush1.bf16.msra.mxu1 %v8777_v1  ;;  %v8869_v0 = vld [vmem:[%s12785_s2 + $0xb68] ss:$16 sps:$4 sm:$0xff]   ;;  %v8874_v1 = vld [vmem:[%s12785_s2 + $0xb84] ss:$16 sps:$4 sm:$0xff]  }
 0x134   :  { %2708 = vmatprep.subr.bf16.mxu0 %v8782_v2  ;;  %2995 = vmatprep.subr.bf16.mxu1 %v8785_v3  ;;  %v8877_v2 = vld [vmem:[%s12785_s2 + $0xb8c] ss:$16 sps:$4 sm:$0xff]   ;;  %v8872_v3 = vld [vmem:[%s12785_s2 + $0xb80] ss:$16 sps:$4 sm:$0xff]  }
 0x137   :  { %2709 = vmatpush1.bf16.msra.mxu0 %v8780_v4  ;;  %2996 = vmatpush1.bf16.msra.mxu1 %v8783_v5  ;;  %v8875_v4 = vld [vmem:[%s12785_s2 + $0xb88] ss:$16 sps:$4 sm:$0xff]   ;;  %v8880_v5 = vld [vmem:[%s12785_s2 + $0xba4] ss:$16 sps:$4 sm:$0xff]  }
 0x138   :  { %2710 = vmatprep.subr.bf16.mxu0 %v8788_v6  ;;  %2997 = vmatprep.subr.bf16.mxu1 %v8791_v7  ;;  %v8883_v6 = vld [vmem:[%s12785_s2 + $0xbac] ss:$16 sps:$4 sm:$0xff]   ;;  %v8878_v7 = vld [vmem:[%s12785_s2 + $0xba0] ss:$16 sps:$4 sm:$0xff]  }
 0x13b   :  { %2711 = vmatpush1.bf16.msra.mxu0 %v8786_v8  ;;  %2998 = vmatpush1.bf16.msra.mxu1 %v8789_v9  ;;  %v8881_v8 = vld [vmem:[%s12785_s2 + $0xba8] ss:$16 sps:$4 sm:$0xff]   ;;  %v8886_v9 = vld [vmem:[%s12785_s2 + $0xbc4] ss:$16 sps:$4 sm:$0xff]  }
 0x13c   :  { %2712 = vmatprep.subr.bf16.mxu0 %v8794_v10  ;;  %2999 = vmatprep.subr.bf16.mxu1 %v8797_v12  ;;  %v8889_v10 = vld [vmem:[%s12785_s2 + $0xbcc] ss:$16 sps:$4 sm:$0xff]   ;;  %v8884_v12 = vld [vmem:[%s12785_s2 + $0xbc0] ss:$16 sps:$4 sm:$0xff]  }
 0x13f   :  { %2713 = vmatpush1.bf16.msra.mxu0 %v8792_v13  ;;  %3000 = vmatpush1.bf16.msra.mxu1 %v8795_v15  ;;  %v8887_v13 = vld [vmem:[%s12785_s2 + $0xbc8] ss:$16 sps:$4 sm:$0xff]   ;;  %v8892_v15 = vld [vmem:[%s12785_s2 + $0xbe4] ss:$16 sps:$4 sm:$0xff]  }
 0x140   :  { %2723 = vmatprep.subr.bf16.mxu0 %v8802_v11  ;;  %3010 = vmatprep.subr.bf16.mxu1 %v8805_v17  ;;  %v8895_v11 = vld [vmem:[%s12785_s2 + $0xbec] ss:$16 sps:$4 sm:$0xff]   ;;  %v8890_v17 = vld [vmem:[%s12785_s2 + $0xbe0] ss:$16 sps:$4 sm:$0xff]  }
 0x142   :  { %2715 = vmatmul.mubr.bf16.vlgmr.msra.gmra.mrb[0].mxu0 %v7235_v20  ;;  %3002 = vmatmul.mubr.bf16.vlgmr.msra.gmra.mrb[0].mxu1 %v7235_v20  ;;  %v8903_v20 = vld [vmem:[%s12785_s2 + $0xc0c] ss:$16 sps:$4 sm:$0xff]  }
 0x143   :  { %2724 = vmatpush1.bf16.msra.mxu0 %v8800_v14  ;;  %3011 = vmatpush1.bf16.msra.mxu1 %v8803_v19  ;;  %v8893_v14 = vld [vmem:[%s12785_s2 + $0xbe8] ss:$16 sps:$4 sm:$0xff]   ;;  %v8900_v19 = vld [vmem:[%s12785_s2 + $0xc04] ss:$16 sps:$4 sm:$0xff]  }
 0x144   :  { %2725 = vmatprep.subr.bf16.mxu0 %v8808_v21  ;;  %3012 = vmatprep.subr.bf16.mxu1 %v8811_v22  ;;  %v8898_v21 = vld [vmem:[%s12785_s2 + $0xc00] ss:$16 sps:$4 sm:$0xff]   ;;  %v8901_v22 = vld [vmem:[%s12785_s2 + $0xc08] ss:$16 sps:$4 sm:$0xff]  }
 0x145   :  { %2755 = vmatprep.mubr.bf16.mxu0 %v7238_v24  ;;  %3042 = vmatprep.mubr.bf16.mxu1 %v7238_v24  ;;  %v8909_v24 = vld [vmem:[%s12785_s2 + $0xc2c] ss:$16 sps:$4 sm:$0xff]  }
 0x147   :  { %2726 = vmatpush1.bf16.msra.mxu0 %v8806_v23  ;;  %3013 = vmatpush1.bf16.msra.mxu1 %v8809_v16  ;;  %v7237_v23 = vcombine.low %v10821_v18, %v10821_v18  ;;  %v8906_v16 = vld [vmem:[%s12785_s2 + $0xc24] ss:$16 sps:$4 sm:$0xff]   ;;  %v8907_v18 = vld [vmem:[%s12785_s2 + $0xc28] ss:$16 sps:$4 sm:$0xff]  }
 0x148   :  { %2727 = vmatprep.subr.bf16.mxu0 %v8814_v25  ;;  %3014 = vmatprep.subr.bf16.mxu1 %v8817_v26  ;;  %v8904_v25 = vld [vmem:[%s12785_s2 + $0xc20] ss:$16 sps:$4 sm:$0xff]   ;;  %v8912_v26 = vld [vmem:[%s12785_s2 + $0xc44] ss:$16 sps:$4 sm:$0xff]  }
 0x14b   :  { %2728 = vmatpush1.bf16.msra.mxu0 %v8812_v27  ;;  %3015 = vmatpush1.bf16.msra.mxu1 %v8815_v28  ;;  %v8915_v27 = vld [vmem:[%s12785_s2 + $0xc4c] ss:$16 sps:$4 sm:$0xff]   ;;  %v8910_v28 = vld [vmem:[%s12785_s2 + $0xc40] ss:$16 sps:$4 sm:$0xff]  }
 0x14c   :  { %2729 = vmatprep.subr.bf16.mxu0 %v8820_v29  ;;  %3016 = vmatprep.subr.bf16.mxu1 %v8823_v30  ;;  %v8913_v29 = vld [vmem:[%s12785_s2 + $0xc48] ss:$16 sps:$4 sm:$0xff]   ;;  %v9753_v30 = vmov 0  }
 0x14f   :  { %2730 = vmatpush1.bf16.msra.mxu0 %v8818_v31  ;;  %3017 = vmatpush1.bf16.msra.mxu1 %v8821_v32  ;;  %v8918_v31 = vld [vmem:[%s12785_s2 + $0xc64] ss:$16 sps:$4 sm:$0xff]   ;;  %v8921_v32 = vld [vmem:[%s12785_s2 + $0xc6c] ss:$16 sps:$4 sm:$0xff]  }
 0x150   :  { %2731 = vmatprep.subr.bf16.mxu0 %v8826_v33  ;;  %3018 = vmatprep.subr.bf16.mxu1 %v8829_v34  ;;  %v8916_v33 = vld [vmem:[%s12785_s2 + $0xc60] ss:$16 sps:$4 sm:$0xff]   ;;  %v8919_v34 = vld [vmem:[%s12785_s2 + $0xc68] ss:$16 sps:$4 sm:$0xff]  }
 0x153   :  { %2732 = vmatpush1.bf16.msra.mxu0 %v8824_v35  ;;  %3019 = vmatpush1.bf16.msra.mxu1 %v8827_v36  ;;  %v8925_v35 = vld [vmem:[%s12787_s4 + $0x4] ss:$8 sps:$4 sm:$0xff]   ;;  %v8922_v36 = vld [vmem:[%s12783_s0 + $0x30] ss:$0 sps:$4 sm:$0xff]  }
 0x154   :  { %2733 = vmatprep.subr.bf16.mxu0 %v8832_v37  ;;  %3020 = vmatprep.subr.bf16.mxu1 %v8835_v38  ;;  %v8923_v37 = vld [vmem:[%s12787_s4] ss:$8 sps:$4 sm:$0xff]   ;;  %v8928_v38 = vld [vmem:[%s12787_s4 + $0x14] ss:$8 sps:$4 sm:$0xff]  }
 0x157   :  { %2734 = vmatpush1.bf16.msra.mxu0 %v8830_v39  ;;  %3021 = vmatpush1.bf16.msra.mxu1 %v8833_v40  ;;  %v8926_v39 = vld [vmem:[%s12787_s4 + $0x10] ss:$8 sps:$4 sm:$0xff]   ;;  %v8931_v40 = vld [vmem:[%s12787_s4 + $0x24] ss:$8 sps:$4 sm:$0xff]  }
 0x158   :  { %2735 = vmatprep.subr.bf16.mxu0 %v8838_v41  ;;  %3022 = vmatprep.subr.bf16.mxu1 %v8841_v42  ;;  %v8929_v41 = vld [vmem:[%s12787_s4 + $0x20] ss:$8 sps:$4 sm:$0xff]   ;;  %v8934_v42 = vld [vmem:[%s12787_s4 + $0x34] ss:$8 sps:$4 sm:$0xff]  }
 0x15b   :  { %2736 = vmatpush1.bf16.msra.mxu0 %v8836_v43  ;;  %3023 = vmatpush1.bf16.msra.mxu1 %v8839_v44  ;;  %v8932_v43 = vld [vmem:[%s12787_s4 + $0x30] ss:$8 sps:$4 sm:$0xff]   ;;  %v8937_v44 = vld [vmem:[%s12787_s4 + $0x44] ss:$8 sps:$4 sm:$0xff]  }
 0x15c   :  { %2737 = vmatprep.subr.bf16.mxu0 %v8844_v45  ;;  %3024 = vmatprep.subr.bf16.mxu1 %v8847_v46  ;;  %v8935_v45 = vld [vmem:[%s12787_s4 + $0x40] ss:$8 sps:$4 sm:$0xff]   ;;  %v8940_v46 = vld [vmem:[%s12787_s4 + $0x54] ss:$8 sps:$4 sm:$0xff]  }
 0x15f   :  { %2738 = vmatpush1.bf16.msra.mxu0 %v8842_v47  ;;  %3025 = vmatpush1.bf16.msra.mxu1 %v8845_v48  ;;  %v8938_v47 = vld [vmem:[%s12787_s4 + $0x50] ss:$8 sps:$4 sm:$0xff]   ;;  %v8943_v48 = vld [vmem:[%s12787_s4 + $0x64] ss:$8 sps:$4 sm:$0xff]  }
 0x160   :  { %2739 = vmatprep.subr.bf16.mxu0 %v8850_v49  ;;  %3026 = vmatprep.subr.bf16.mxu1 %v8853_v50  ;;  %v8941_v49 = vld [vmem:[%s12787_s4 + $0x60] ss:$8 sps:$4 sm:$0xff]   ;;  %v8946_v50 = vld [vmem:[%s12787_s4 + $0x74] ss:$8 sps:$4 sm:$0xff]  }
 0x163   :  { %2740 = vmatpush1.bf16.msra.mxu0 %v8848_v51  ;;  %3027 = vmatpush1.bf16.msra.mxu1 %v8851_v52  ;;  %v8944_v51 = vld [vmem:[%s12787_s4 + $0x70] ss:$8 sps:$4 sm:$0xff]   ;;  %v8949_v52 = vld [vmem:[%s12787_s4 + $0x84] ss:$8 sps:$4 sm:$0xff]  }
 0x164   :  { %2741 = vmatprep.subr.bf16.mxu0 %v8856_v53  ;;  %3028 = vmatprep.subr.bf16.mxu1 %v8859_v54  ;;  %v8947_v53 = vld [vmem:[%s12787_s4 + $0x80] ss:$8 sps:$4 sm:$0xff]   ;;  %v8952_v54 = vld [vmem:[%s12787_s4 + $0x94] ss:$8 sps:$4 sm:$0xff]  }
 0x167   :  { %2742 = vmatpush1.bf16.msra.mxu0 %v8854_v55  ;;  %3029 = vmatpush1.bf16.msra.mxu1 %v8857_v56  ;;  %v8950_v55 = vld [vmem:[%s12787_s4 + $0x90] ss:$8 sps:$4 sm:$0xff]   ;;  %v8955_v56 = vld [vmem:[%s12787_s4 + $0xa4] ss:$8 sps:$4 sm:$0xff]  }
 0x168   :  { %2743 = vmatprep.subr.bf16.mxu0 %v8862_v57  ;;  %3030 = vmatprep.subr.bf16.mxu1 %v8865_v58  ;;  %v8953_v57 = vld [vmem:[%s12787_s4 + $0xa0] ss:$8 sps:$4 sm:$0xff]   ;;  %v8958_v58 = vld [vmem:[%s12787_s4 + $0xb4] ss:$8 sps:$4 sm:$0xff]  }
 0x16b   :  { %2744 = vmatpush1.bf16.msra.mxu0 %v8860_v59  ;;  %3031 = vmatpush1.bf16.msra.mxu1 %v8863_v60  ;;  %v8956_v59 = vld [vmem:[%s12787_s4 + $0xb0] ss:$8 sps:$4 sm:$0xff]   ;;  %v8961_v60 = vld [vmem:[%s12787_s4 + $0xc4] ss:$8 sps:$4 sm:$0xff]  }
 0x16c   :  { %2745 = vmatprep.subr.bf16.mxu0 %v8868_v61  ;;  %3032 = vmatprep.subr.bf16.mxu1 %v8871_v62  ;;  %v8959_v61 = vld [vmem:[%s12787_s4 + $0xc0] ss:$8 sps:$4 sm:$0xff]   ;;  %v8964_v62 = vld [vmem:[%s12787_s4 + $0xd4] ss:$8 sps:$4 sm:$0xff]  }
 0x16f   :  { %2746 = vmatpush1.bf16.msra.mxu0 %v8866_v63  ;;  %3033 = vmatpush1.bf16.msra.mxu1 %v8869_v0  ;;  %v8962_v63 = vld [vmem:[%s12787_s4 + $0xd0] ss:$8 sps:$4 sm:$0xff]  }
 0x170   :  { %2747 = vmatprep.subr.bf16.mxu0 %v8874_v1  ;;  %3034 = vmatprep.subr.bf16.mxu1 %v8877_v2 }
 0x173   :  { %2748 = vmatpush1.bf16.msra.mxu0 %v8872_v3  ;;  %3035 = vmatpush1.bf16.msra.mxu1 %v8875_v4 }
 0x174   :  { %2749 = vmatprep.subr.bf16.mxu0 %v8880_v5  ;;  %3036 = vmatprep.subr.bf16.mxu1 %v8883_v6 }
 0x177   :  { %2750 = vmatpush1.bf16.msra.mxu0 %v8878_v7  ;;  %3037 = vmatpush1.bf16.msra.mxu1 %v8881_v8 }
 0x178   :  { %2751 = vmatprep.subr.bf16.mxu0 %v8886_v9  ;;  %3038 = vmatprep.subr.bf16.mxu1 %v8889_v10 }
 0x17b   :  { %2752 = vmatpush1.bf16.msra.mxu0 %v8884_v12  ;;  %3039 = vmatpush1.bf16.msra.mxu1 %v8887_v13 }
 0x17c   :  { %2753 = vmatprep.subr.bf16.mxu0 %v8892_v15  ;;  %3040 = vmatprep.subr.bf16.mxu1 %v8895_v11 }
 0x17f   :  { %2754 = vmatpush1.bf16.msra.mxu0 %v8890_v17  ;;  %3041 = vmatpush1.bf16.msra.mxu1 %v8893_v14 }
 0x180   :  { %2764 = vmatprep.subr.bf16.mxu0 %v8900_v19  ;;  %3051 = vmatprep.subr.bf16.mxu1 %v8903_v20 }
 0x182   :  { %2756 = vmatmul.mubr.bf16.vlgmr.msra.gmra.mrb[0].mxu0 %v7237_v23  ;;  %3043 = vmatmul.mubr.bf16.vlgmr.msra.gmra.mrb[0].mxu1 %v7237_v23 }
 0x183   :  { %2765 = vmatpush1.bf16.msra.mxu0 %v8898_v21  ;;  %3052 = vmatpush1.bf16.msra.mxu1 %v8901_v22 }
 0x184   :  { %2766 = vmatprep.subr.bf16.mxu0 %v8906_v16  ;;  %3053 = vmatprep.subr.bf16.mxu1 %v8909_v24 }
 0x185   :  { %2796 = vmatprep.mubr.bf16.mxu0 %v9753_v30  ;;  %3083 = vmatprep.mubr.bf16.mxu1 %v9753_v30 }
 0x187   :  { %2767 = vmatpush1.bf16.msra.mxu0 %v8904_v25  ;;  %3054 = vmatpush1.bf16.msra.mxu1 %v8907_v18 }
 0x188   :  { %2768 = vmatprep.subr.bf16.mxu0 %v8912_v26  ;;  %3055 = vmatprep.subr.bf16.mxu1 %v8915_v27 }
 0x18b   :  { %2769 = vmatpush1.bf16.msra.mxu0 %v8910_v28  ;;  %3056 = vmatpush1.bf16.msra.mxu1 %v8913_v29 }
 0x18c   :  { %2770 = vmatprep.subr.bf16.mxu0 %v8918_v31  ;;  %3057 = vmatprep.subr.bf16.mxu1 %v8921_v32 }
 0x18f   :  { %2771 = vmatpush1.bf16.msra.mxu0 %v8916_v33  ;;  %3058 = vmatpush1.bf16.msra.mxu1 %v8919_v34 }
 0x190   :  { %3496 = vmatprep.subr.bf16.mxu0 %v8925_v35 }
 0x192   :  { %7640 = vmatmul.mubr.msk.bf16.vlgmr.msra.gmra.mrb[0].mxu0 %vm2514_vm0, %v8922_v36  ;;  %7641 = vmatmul.mubr.msk.bf16.vlgmr.msra.gmra.mrb[0].mxu1 %vm2514_vm0, %v8922_v36 }
 0x193   :  { %3497 = vmatpush1.bf16.msra.mxu0 %v8923_v37  ;;  %3859 = vmatprep.mubr.bf16.mxu1 %v9753_v30 }
 0x194   :  { %3498 = vmatprep.subr.bf16.mxu0 %v8928_v38 }
 0x197   :  { %3499 = vmatpush1.bf16.msra.mxu0 %v8926_v39 }
 0x198   :  { %3500 = vmatprep.subr.bf16.mxu0 %v8931_v40 }
 0x19b   :  { %3501 = vmatpush1.bf16.msra.mxu0 %v8929_v41 }
 0x19c   :  { %3502 = vmatprep.subr.bf16.mxu0 %v8934_v42 }
 0x19f   :  { %3503 = vmatpush1.bf16.msra.mxu0 %v8932_v43 }
 0x1a0   :  { %3504 = vmatprep.subr.bf16.mxu0 %v8937_v44 }
 0x1a3   :  { %3505 = vmatpush1.bf16.msra.mxu0 %v8935_v45 }
 0x1a4   :  { %3506 = vmatprep.subr.bf16.mxu0 %v8940_v46 }
 0x1a7   :  { %3507 = vmatpush1.bf16.msra.mxu0 %v8938_v47 }
 0x1a8   :  { %3508 = vmatprep.subr.bf16.mxu0 %v8943_v48 }
 0x1ab   :  { %3509 = vmatpush1.bf16.msra.mxu0 %v8941_v49 }
 0x1ac   :  { %3510 = vmatprep.subr.bf16.mxu0 %v8946_v50 }
 0x1af   :  { %3511 = vmatpush1.bf16.msra.mxu0 %v8944_v51 }
 0x1b0   :  { %3512 = vmatprep.subr.bf16.mxu0 %v8949_v52 }
 0x1b3   :  { %3513 = vmatpush1.bf16.msra.mxu0 %v8947_v53 }
 0x1b4   :  { %3514 = vmatprep.subr.bf16.mxu0 %v8952_v54 }
 0x1b7   :  { %3515 = vmatpush1.bf16.msra.mxu0 %v8950_v55 }
 0x1b8   :  { %3516 = vmatprep.subr.bf16.mxu0 %v8955_v56 }
 0x1bb   :  { %3517 = vmatpush1.bf16.msra.mxu0 %v8953_v57 }
 0x1bc   :  { %3518 = vmatprep.subr.bf16.mxu0 %v8958_v58 }
 0x1bf   :  { %3519 = vmatpush1.bf16.msra.mxu0 %v8956_v59 }
 0x1c0   :  { %3520 = vmatprep.subr.bf16.mxu0 %v8961_v60 }
 0x1c3   :  { %3521 = vmatpush1.bf16.msra.mxu0 %v8959_v61 }
 0x1c4   :  { %3522 = vmatprep.subr.bf16.mxu0 %v8964_v62 }
 0x1c7   :  { %3523 = vmatpush1.bf16.msra.mxu0 %v8962_v63 }
 0x1c8   :  { %17 = vsyncpa [#allocation3], 0  ;;  %v8967_v0 = vld [vmem:[%s12787_s4 + $0xe4] ss:$8 sps:$4 sm:$0xff]   ;;  %v8965_v1 = vld [vmem:[%s12787_s4 + $0xe0] ss:$8 sps:$4 sm:$0xff]   ;;  %v449_v12 = vlaneseq }
 0x1c9   :  { %3524 = vmatprep.subr.bf16.mxu0 %v8967_v0  ;;  %v8970_v2 = vld [vmem:[%s12787_s4 + $0xf4] ss:$8 sps:$4 sm:$0xff]   ;;  %v8968_v3 = vld [vmem:[%s12787_s4 + $0xf0] ss:$8 sps:$4 sm:$0xff]   ;;  %v8973_v4 = vld [vmem:[%s12787_s4 + $0x104] ss:$8 sps:$4 sm:$0xff]  }
 0x1ca   :  { %v9019_v5 = vld [vmem:[%s12789_s6] ss:$16 sps:$4 sm:$0xff]   ;;  %v9021_v6 = vld [vmem:[%s12789_s6 + $0x4] ss:$16 sps:$4 sm:$0xff]   ;;  %v11188_v13 = vshrl.u32 %v449_v12, 7  ;;  %vm3598_vm2 = vcmask 7168  }
 0x1cb   :  { %3525 = vmatpush1.bf16.msra.mxu0 %v8965_v1  ;;  %v9024_v7 = vld [vmem:[%s12789_s6 + $0x24] ss:$16 sps:$4 sm:$0xff]   ;;  %3827 = vmatprep.subr.bf16.mxu1 %v9021_v6  ;;  %v9022_v8 = vld [vmem:[%s12789_s6 + $0x20] ss:$16 sps:$4 sm:$0xff]   ;;  %vm3610_vm3 = vcmask 0   ;;  %s9754_s26 = smov [#allocation2]  }
 0x1cc   :  { %3526 = vmatprep.subr.bf16.mxu0 %v8970_v2  ;;  %3828 = vmatpush1.bf16.msra.mxu1 %v9019_v5  ;;  %v9027_v9 = vld [vmem:[%s12789_s6 + $0x44] ss:$16 sps:$4 sm:$0xff]   ;;  %v9025_v10 = vld [vmem:[%s12789_s6 + $0x40] ss:$16 sps:$4 sm:$0xff]   ;;  %v11191_v15 = vsub.s32 0, %v11188_v13  ;;  %v11199_v17 = vsub.s32 1, %v11188_v13 }
 0x1cd   :  { %3829 = vmatprep.subr.bf16.mxu1 %v9024_v7  ;;  %v11196_v11 = vld [vmem:[%s12786_s3] sm:$0xf]  ;;  %v11202_v14 = vsub.s32 3, %v11188_v13  ;;  %v8976_v38 = vld [vmem:[%s12787_s4 + $0x114] ss:$8 sps:$4 sm:$0xff]   ;;  %v11288_v63 = vsub.s32 2, %v11188_v13 }
 0x1ce   :  { %v452_v19 = vrot.slane %v11196_v11, %v11191_v15  ;;  %v456_v20 = vrot.slane %v11196_v11, %v11199_v17  ;;  %v8971_v36 = vld [vmem:[%s12787_s4 + $0x100] ss:$8 sps:$4 sm:$0xff]   ;;  %v8974_v40 = vld [vmem:[%s12787_s4 + $0x110] ss:$8 sps:$4 sm:$0xff]   ;;  %v8979_v41 = vld [vmem:[%s12787_s4 + $0x124] ss:$8 sps:$4 sm:$0xff]  }
 0x1cf   :  { %3527 = vmatpush1.bf16.msra.mxu0 %v8968_v3  ;;  %v464_v21 = vrot.slane %v11196_v11, %v11202_v14  ;;  %v8977_v42 = vld [vmem:[%s12787_s4 + $0x120] ss:$8 sps:$4 sm:$0xff]   ;;  %v8982_v43 = vld [vmem:[%s12787_s4 + $0x134] ss:$8 sps:$4 sm:$0xff]   ;;  %v8980_v44 = vld [vmem:[%s12787_s4 + $0x130] ss:$8 sps:$4 sm:$0xff]   ;;  %v460_v2 = vrot.slane %v11196_v11, %v11288_v63 }
 0x1d0   :  { %3537 = vmatprep.subr.bf16.mxu0 %v8973_v4  ;;  %3830 = vmatpush1.bf16.msra.mxu1 %v9022_v8  ;;  %v8985_v45 = vld [vmem:[%s12787_s4 + $0x144] ss:$8 sps:$4 sm:$0xff]   ;;  %v8983_v46 = vld [vmem:[%s12787_s4 + $0x140] ss:$8 sps:$4 sm:$0xff]   ;;  %v8988_v47 = vld [vmem:[%s12787_s4 + $0x154] ss:$8 sps:$4 sm:$0xff]  }
 0x1d1   :  { %3831 = vmatprep.subr.bf16.mxu1 %v9027_v9  ;;  %v8986_v48 = vld [vmem:[%s12787_s4 + $0x150] ss:$8 sps:$4 sm:$0xff]   ;;  %v8991_v49 = vld [vmem:[%s12787_s4 + $0x164] ss:$8 sps:$4 sm:$0xff]   ;;  %v8989_v50 = vld [vmem:[%s12787_s4 + $0x160] ss:$8 sps:$4 sm:$0xff]  }
 0x1d2   :  { %v8994_v51 = vld [vmem:[%s12787_s4 + $0x174] ss:$8 sps:$4 sm:$0xff]   ;;  %v8992_v52 = vld [vmem:[%s12787_s4 + $0x170] ss:$8 sps:$4 sm:$0xff]   ;;  %v8997_v53 = vld [vmem:[%s12787_s4 + $0x184] ss:$8 sps:$4 sm:$0xff]  }
 0x1d3   :  { %v8995_v54 = vld [vmem:[%s12787_s4 + $0x180] ss:$8 sps:$4 sm:$0xff]   ;;  %v9000_v55 = vld [vmem:[%s12787_s4 + $0x194] ss:$8 sps:$4 sm:$0xff]   ;;  %v8998_v56 = vld [vmem:[%s12787_s4 + $0x190] ss:$8 sps:$4 sm:$0xff]  }
 0x1d4   :  { %3832 = vmatpush1.bf16.msra.mxu1 %v9025_v10  ;;  %v9003_v57 = vld [vmem:[%s12787_s4 + $0x1a4] ss:$8 sps:$4 sm:$0xff]   ;;  %v9001_v58 = vld [vmem:[%s12787_s4 + $0x1a0] ss:$8 sps:$4 sm:$0xff]   ;;  %v9006_v59 = vld [vmem:[%s12787_s4 + $0x1b4] ss:$8 sps:$4 sm:$0xff]  }
 0x1d5   :  { %v9004_v60 = vld [vmem:[%s12787_s4 + $0x1b0] ss:$8 sps:$4 sm:$0xff]   ;;  %v9009_v61 = vld [vmem:[%s12787_s4 + $0x1c4] ss:$8 sps:$4 sm:$0xff]   ;;  %v9007_v62 = vld [vmem:[%s12787_s4 + $0x1c0] ss:$8 sps:$4 sm:$0xff]  }
 0x1d6   :  { %v9012_v0 = vld [vmem:[%s12787_s4 + $0x1d4] ss:$8 sps:$4 sm:$0xff]   ;;  %v9010_v1 = vld [vmem:[%s12787_s4 + $0x1d0] ss:$8 sps:$4 sm:$0xff]   ;;  %v9015_v3 = vld [vmem:[%s12787_s4 + $0x1e4] ss:$8 sps:$4 sm:$0xff]  }
 0x1d7   :  { %v9013_v4 = vld [vmem:[%s12787_s4 + $0x1e0] ss:$8 sps:$4 sm:$0xff]   ;;  %v9018_v6 = vld [vmem:[%s12787_s4 + $0x1f4] ss:$8 sps:$4 sm:$0xff]   ;;  %v9016_v7 = vld [vmem:[%s12787_s4 + $0x1f0] ss:$8 sps:$4 sm:$0xff]  }
 0x1d8   :  { %v9030_v10 = vld [vmem:[%s12789_s6 + $0x64] ss:$16 sps:$4 sm:$0xff]   ;;  %v9028_v12 = vld [vmem:[%s12789_s6 + $0x60] ss:$16 sps:$4 sm:$0xff]   ;;  %vm3596_vm1 = vcmp.lt.s32.totalorder %v11188_v13, 2  ;;  %s7217_s27 = sshll.u32 %s9754_s26, 4  ;;  %s7218_s27 = int_to_ptr.vmem [resolvable:$true] %s7217_s27 }
 0x1d9   :  { %3833 = vmatprep.subr.bf16.mxu1 %v9030_v10  ;;  %v9033_v11 = vld [vmem:[%s12789_s6 + $0x84] ss:$16 sps:$4 sm:$0xff]   ;;  %v9096_v10 = vld [vmem:[%s12791_s8 + $0x1ac] ss:$52 sps:$4 sm:$0xff]   ;;  %s9733_s28 = scalar_lea.vmem %s7218_s27, 32  ;;  %p9734_p1 = scmp.lt.s32.totalorder %s7218_s27, %s7218_s27 }
 0x1da   :  { %3834 = vmatpush1.bf16.msra.mxu1 %v9028_v12  ;;  %v9081_v12 = vld [vmem:[%s12791_s8 + $0xd4] ss:$52 sps:$4 sm:$0xff]  }
 0x1db   :  { %3835 = vmatprep.subr.bf16.mxu1 %v9033_v11  ;;  %v9094_v11 = vld [vmem:[%s12791_s8 + $0x1a8] ss:$52 sps:$4 sm:$0xff]  }
 0x265   :  { %v2798_v22 = vpop.f32.mrb[0].mxu0  ;;  %v11210_v23 = vpop.f32.mrb[0].mxu1 }
 0x266   :  { %v8212_v16 = vadd.f32 %v2798_v22, %v452_v19  ;;  %v2800_v24 = vpop.f32.mrb[1].mxu0  ;;  %v3087_v25 = vpop.f32.mrb[1].mxu1  ;;  %v8214_v5 = vadd.f32 %v11210_v23, %v460_v2  ;;  %v9031_v19 = vld [vmem:[%s12789_s6 + $0x80] ss:$16 sps:$4 sm:$0xff]   ;;  %v9039_v22 = vld [vmem:[%s12789_s6 + $0xc4] ss:$16 sps:$4 sm:$0xff]  }
 0x267   :  { %v8213_v18 = vadd.f32 %v2800_v24, %v456_v20  ;;  %v8215_v26 = vadd.f32 %v3087_v25, %v464_v21  ;;  %v2802_v27 = vpop.f32.mrb[2].mxu0  ;;  %v3089_v28 = vpop.f32.mrb[2].mxu1  ;;  %v9036_v20 = vld [vmem:[%s12789_s6 + $0xa4] ss:$16 sps:$4 sm:$0xff]   ;;  %3836 = vmatpush1.bf16.msra.mxu1 %v9031_v19  ;;  %v9034_v21 = vld [vmem:[%s12789_s6 + $0xa0] ss:$16 sps:$4 sm:$0xff]  }
 0x268   :  { %v3092_v29 = vmax.f32 %v8212_v16, 0.0  ;;  %v2803_v31 = vpop.f32.mrb[3].mxu0  ;;  %v3090_v32 = vpop.f32.mrb[3].mxu1  ;;  %v3094_v8 = vmax.f32 %v8214_v5, 0.0  ;;  %3837 = vmatprep.subr.bf16.mxu1 %v9036_v20  ;;  %v9037_v23 = vld [vmem:[%s12789_s6 + $0xc0] ss:$16 sps:$4 sm:$0xff]  }
 0x269   :  { %v3093_v33 = vmax.f32 %v8213_v18, 0.0  ;;  %v3095_v34 = vmax.f32 %v8215_v26, 0.0  ;;  %v9042_v16 = vld [vmem:[%s12789_s6 + $0xe4] ss:$16 sps:$4 sm:$0xff]   ;;  %v9040_v24 = vld [vmem:[%s12789_s6 + $0xe0] ss:$16 sps:$4 sm:$0xff]  }
 0x26a   :  { %v3096_v37 = vpack.c.bf16 %v3092_v29, %v3092_v29  ;;  %v3098_v9 = vpack.c.bf16 %v3094_v8, %v3094_v8  ;;  %v9045_v25 = vld [vmem:[%s12789_s6 + $0xc] ss:$16 sps:$4 sm:$0xff]   ;;  %v3164_v18 = vld [vmem:[%s12788_s5] sm:$0x3]  ;;  %v9079_v19 = vld [vmem:[%s12791_s8 + $0xd0] ss:$52 sps:$4 sm:$0xff]  }
 0x26b   :  { %v3097_v35 = vpack.c.bf16 %v3093_v33, %v3093_v33  ;;  %v3099_v39 = vpack.c.bf16 %v3095_v34, %v3095_v34  ;;  %3838 = vmatpush1.bf16.msra.mxu1 %v9034_v21  ;;  %v3173_v26 = vrot.slane %v3164_v18, %v11199_v17  ;;  %v3169_v34 = vrot.slane %v3164_v18, %v11191_v15  ;;  %v9084_v2 = vld [vmem:[%s12791_s8 + $0xdc] ss:$52 sps:$4 sm:$0xff]   ;;  %v9067_v5 = vld [vmem:[%s12791_s8] ss:$52 sps:$4 sm:$0xff]   ;;  %s9729_s5 = scalar_lea.vmem %s7218_s27, 16 }
 0x26c   :  { %3839 = vmatprep.subr.bf16.mxu1 %v9039_v22  ;;  %v9088_v8 = vld [vmem:[%s12791_s8 + $0x140] ss:$52 sps:$4 sm:$0xff]   ;;  %v9087_v21 = vld [vmem:[%s12791_s8 + $0x13c] ss:$52 sps:$4 sm:$0xff]   ;;  %p9730_p0 = scmp.ne.s32.totalorder %s7218_s27, %s9729_s5  ;;  %p9735_p2 = scmp.lt.s32.totalorder %s9733_s28, %s9729_s5 }
 0x26d   :  { %3528 = vmatprep.mubr.bf16.mxu0 %v3097_v35  ;;  %v9102_v20 = vld [vmem:[%s12791_s8 + $0x214] ss:$52 sps:$4 sm:$0xff]   ;;  %v9100_v22 = vld [vmem:[%s12791_s8 + $0x210] ss:$52 sps:$4 sm:$0xff]  }
 0x26e   :  { %3529 = vmatmul.mubr.bf16.vlgmr.msra.gmra.mrb[4].mxu0 %v3096_v37  ;;  %v9091_v18 = vld [vmem:[%s12791_s8 + $0x1a0] ss:$52 sps:$4 sm:$0xff]   ;;  %p9736_p3 = por %p9735_p2, %p9734_p1 }
 0x26f   :  { %3538 = vmatpush1.bf16.msra.mxu0 %v8971_v36  ;;  %3569 = vmatprep.mubr.bf16.mxu0 %v3099_v39  ;;  %v46_v36 = vld [vmem:[%s12784_s1] sm:$0xff] }
 0x270   :  { %3539 = vmatprep.subr.bf16.mxu0 %v8976_v38  ;;  %3840 = vmatpush1.bf16.msra.mxu1 %v9037_v23  ;;  %v9085_v23 = vld [vmem:[%s12791_s8 + $0x138] ss:$52 sps:$4 sm:$0xff]   ;;  %p9737_p4 = pnand %p9736_p3, %p9730_p0 }
 0x271   :  { %3841 = vmatprep.subr.bf16.mxu1 %v9042_v16  ;;  %v9108_v16 = vld [vmem:[%s12791_s8 + $0x27c] ss:$52 sps:$4 sm:$0xff]  }
 0x273   :  { %3540 = vmatpush1.bf16.msra.mxu0 %v8974_v40 }
 0x274   :  { %3541 = vmatprep.subr.bf16.mxu0 %v8979_v41  ;;  %3842 = vmatpush1.bf16.msra.mxu1 %v9040_v24  ;;  %v9093_v24 = vld [vmem:[%s12791_s8 + $0x1a4] ss:$52 sps:$4 sm:$0xff]  }
 0x275   :  { %3868 = vmatprep.subr.bf16.mxu1 %v9045_v25  ;;  %v9106_v25 = vld [vmem:[%s12791_s8 + $0x278] ss:$52 sps:$4 sm:$0xff]  }
 0x277   :  { %3542 = vmatpush1.bf16.msra.mxu0 %v8977_v42 }
 0x278   :  { %3543 = vmatprep.subr.bf16.mxu0 %v8982_v43 }
 0x27b   :  { %3544 = vmatpush1.bf16.msra.mxu0 %v8980_v44  ;;  %v9043_v44 = vld [vmem:[%s12789_s6 + $0x8] ss:$16 sps:$4 sm:$0xff]  }
 0x27c   :  { %3545 = vmatprep.subr.bf16.mxu0 %v8985_v45 }
 0x27f   :  { %3546 = vmatpush1.bf16.msra.mxu0 %v8983_v46 }
 0x280   :  { %3547 = vmatprep.subr.bf16.mxu0 %v8988_v47  ;;  %v9048_v47 = vld [vmem:[%s12789_s6 + $0x2c] ss:$16 sps:$4 sm:$0xff]  }
 0x283   :  { %3548 = vmatpush1.bf16.msra.mxu0 %v8986_v48 }
 0x284   :  { %3549 = vmatprep.subr.bf16.mxu0 %v8991_v49  ;;  %v9046_v49 = vld [vmem:[%s12789_s6 + $0x28] ss:$16 sps:$4 sm:$0xff]  }
 0x287   :  { %3550 = vmatpush1.bf16.msra.mxu0 %v8989_v50  ;;  %v9051_v50 = vld [vmem:[%s12789_s6 + $0x4c] ss:$16 sps:$4 sm:$0xff]  }
 0x288   :  { %3551 = vmatprep.subr.bf16.mxu0 %v8994_v51  ;;  %v9049_v51 = vld [vmem:[%s12789_s6 + $0x48] ss:$16 sps:$4 sm:$0xff]  }
 0x28b   :  { %3552 = vmatpush1.bf16.msra.mxu0 %v8992_v52  ;;  %v9054_v52 = vld [vmem:[%s12789_s6 + $0x6c] ss:$16 sps:$4 sm:$0xff]  }
 0x28c   :  { %3553 = vmatprep.subr.bf16.mxu0 %v8997_v53  ;;  %v9057_v53 = vld [vmem:[%s12789_s6 + $0x8c] ss:$16 sps:$4 sm:$0xff]  }
 0x28f   :  { %3554 = vmatpush1.bf16.msra.mxu0 %v8995_v54  ;;  %v9055_v54 = vld [vmem:[%s12789_s6 + $0x88] ss:$16 sps:$4 sm:$0xff]  }
 0x290   :  { %3555 = vmatprep.subr.bf16.mxu0 %v9000_v55  ;;  %v9060_v55 = vld [vmem:[%s12789_s6 + $0xac] ss:$16 sps:$4 sm:$0xff]  }
 0x293   :  { %3556 = vmatpush1.bf16.msra.mxu0 %v8998_v56  ;;  %v9058_v56 = vld [vmem:[%s12789_s6 + $0xa8] ss:$16 sps:$4 sm:$0xff]  }
 0x294   :  { %3557 = vmatprep.subr.bf16.mxu0 %v9003_v57  ;;  %v9063_v57 = vld [vmem:[%s12789_s6 + $0xcc] ss:$16 sps:$4 sm:$0xff]  }
 0x297   :  { %3558 = vmatpush1.bf16.msra.mxu0 %v9001_v58  ;;  %v9070_v58 = vld [vmem:[%s12791_s8 + $0x8] ss:$52 sps:$4 sm:$0xff]  }
 0x298   :  { %3559 = vmatprep.subr.bf16.mxu0 %v9006_v59  ;;  %v9061_v59 = vld [vmem:[%s12789_s6 + $0xc8] ss:$16 sps:$4 sm:$0xff]  }
 0x29b   :  { %3560 = vmatpush1.bf16.msra.mxu0 %v9004_v60  ;;  %v9072_v60 = vld [vmem:[%s12791_s8 + $0xc] ss:$52 sps:$4 sm:$0xff]  }
 0x29c   :  { %3561 = vmatprep.subr.bf16.mxu0 %v9009_v61  ;;  %v9066_v61 = vld [vmem:[%s12789_s6 + $0xec] ss:$16 sps:$4 sm:$0xff]  }
 0x29f   :  { %3562 = vmatpush1.bf16.msra.mxu0 %v9007_v62  ;;  %v9078_v62 = vld [vmem:[%s12791_s8 + $0x74] ss:$52 sps:$4 sm:$0xff]  }
 0x2a0   :  { %3563 = vmatprep.subr.bf16.mxu0 %v9012_v0  ;;  %v9076_v0 = vld [vmem:[%s12791_s8 + $0x70] ss:$52 sps:$4 sm:$0xff]  }
 0x2a3   :  { %3564 = vmatpush1.bf16.msra.mxu0 %v9010_v1  ;;  %v9064_v1 = vld [vmem:[%s12789_s6 + $0xe8] ss:$16 sps:$4 sm:$0xff]  }
 0x2a4   :  { %3565 = vmatprep.subr.bf16.mxu0 %v9015_v3  ;;  %v9069_v3 = vld [vmem:[%s12791_s8 + $0x4] ss:$52 sps:$4 sm:$0xff]  }
 0x2a7   :  { %3566 = vmatpush1.bf16.msra.mxu0 %v9013_v4  ;;  %v9082_v4 = vld [vmem:[%s12791_s8 + $0xd8] ss:$52 sps:$4 sm:$0xff]  }
 0x2a8   :  { %3567 = vmatprep.subr.bf16.mxu0 %v9018_v6  ;;  %v9090_v6 = vld [vmem:[%s12791_s8 + $0x144] ss:$52 sps:$4 sm:$0xff]  }
 0x2ab   :  { %3568 = vmatpush1.bf16.msra.mxu0 %v9016_v7  ;;  %v9075_v7 = vld [vmem:[%s12791_s8 + $0x6c] ss:$52 sps:$4 sm:$0xff]  }
 0x2ac   :  { %6628 = vmatprep.subr.bf16.mxu0 %v9072_v60  ;;  %v9154_v60 = vld [vmem:[%s12791_s8 + $0x5b8] ss:$52 sps:$4 sm:$0xff]  }
 0x2ae   :  { %3570 = vmatmul.mubr.bf16.vlgmr.msra.gmra.mrb[4].mxu0 %v3098_v9  ;;  %v9073_v9 = vld [vmem:[%s12791_s8 + $0x68] ss:$52 sps:$4 sm:$0xff]  }
 0x2af   :  { %6629 = vmatpush1.bf16.msra.mxu0 %v9070_v58  ;;  %v9153_v58 = vld [vmem:[%s12791_s8 + $0x5b4] ss:$52 sps:$4 sm:$0xff]  }
 0x2b0   :  { %6630 = vmatprep.subr.bf16.mxu0 %v9078_v62  ;;  %v9159_v62 = vld [vmem:[%s12791_s8 + $0x61c] ss:$52 sps:$4 sm:$0xff]  }
 0x2b3   :  { %6631 = vmatpush1.bf16.msra.mxu0 %v9076_v0  ;;  %v9162_v0 = vld [vmem:[%s12791_s8 + $0x624] ss:$52 sps:$4 sm:$0xff]  }
 0x2b4   :  { %6632 = vmatprep.subr.bf16.mxu0 %v9084_v2  ;;  %v9157_v2 = vld [vmem:[%s12791_s8 + $0x618] ss:$52 sps:$4 sm:$0xff]  }
 0x2b7   :  { %6633 = vmatpush1.bf16.msra.mxu0 %v9082_v4  ;;  %v9168_v4 = vld [vmem:[%s12791_s8 + $0x68c] ss:$52 sps:$4 sm:$0xff]  }
 0x2b8   :  { %6634 = vmatprep.subr.bf16.mxu0 %v9090_v6 }
 0x2bb   :  { %6635 = vmatpush1.bf16.msra.mxu0 %v9088_v8 }
 0x2bc   :  { %6636 = vmatprep.subr.bf16.mxu0 %v9096_v10 }
 0x2bf   :  { %6637 = vmatpush1.bf16.msra.mxu0 %v9094_v11 }
 0x2c0   :  { %6638 = vmatprep.subr.bf16.mxu0 %v9102_v20 }
 0x2c3   :  { %6639 = vmatpush1.bf16.msra.mxu0 %v9100_v22 }
 0x2c4   :  { %6640 = vmatprep.subr.bf16.mxu0 %v9108_v16 }
 0x2c7   :  { %6641 = vmatpush1.bf16.msra.mxu0 %v9106_v25 }
 0x381   :  { %v3571_v27 = vpop.f32.mrb[4].mxu0 }
 0x382   :  { %v3573_v28 = vpop.f32.mrb[5].mxu0  ;;  %v8216_v35 = vadd.f32 %v3571_v27, %v3169_v34  ;;  %v9099_v27 = vld [vmem:[%s12791_s8 + $0x20c] ss:$52 sps:$4 sm:$0xff]   ;;  %v9103_v34 = vld [vmem:[%s12791_s8 + $0x270] ss:$52 sps:$4 sm:$0xff]  }
 0x383   :  { %v8217_v29 = vadd.f32 %v3573_v28, %v3173_v26  ;;  %v3575_v31 = vpop.f32.mrb[6].mxu0  ;;  %v9114_v26 = vld [vmem:[%s12791_s8 + $0x2e4] ss:$52 sps:$4 sm:$0xff]   ;;  %v9112_v28 = vld [vmem:[%s12791_s8 + $0x2e0] ss:$52 sps:$4 sm:$0xff]  }
 0x384   :  { %v3576_v32 = vpop.f32.mrb[7].mxu0  ;;  %v3583_v38 = vmul.f32 %v8216_v35, %v8216_v35  ;;  %6642 = vmatprep.subr.bf16.mxu0 %v9114_v26  ;;  %v9120_v31 = vld [vmem:[%s12791_s8 + $0x34c] ss:$52 sps:$4 sm:$0xff]   ;;  %v9166_v26 = vld [vmem:[%s12791_s8 + $0x688] ss:$52 sps:$4 sm:$0xff]  }
 0x385   :  { %v3578_v33 = vmul.f32 1.442695, %v8217_v29  ;;  %v3585_v43 = vmul.f32 2.0, %v8217_v29  ;;  %v9097_v29 = vld [vmem:[%s12791_s8 + $0x208] ss:$52 sps:$4 sm:$0xff]   ;;  %6643 = vmatpush1.bf16.msra.mxu0 %v9112_v28 }
 0x386   :  { %v9105_v32 = vld [vmem:[%s12791_s8 + $0x274] ss:$52 sps:$4 sm:$0xff]   ;;  %6644 = vmatprep.subr.bf16.mxu0 %v9120_v31  ;;  %v9171_v28 = vld [vmem:[%s12791_s8 + $0x6ec] ss:$52 sps:$4 sm:$0xff]  }
 0x387   :  { %9675 = vpow2.f32 %v3578_v33  ;;  %v9118_v33 = vld [vmem:[%s12791_s8 + $0x348] ss:$52 sps:$4 sm:$0xff]  }
 0x388   :  { %v9169_v31 = vld [vmem:[%s12791_s8 + $0x6e8] ss:$52 sps:$4 sm:$0xff]  }
 0x389   :  { %6645 = vmatpush1.bf16.msra.mxu0 %v9118_v33  ;;  %v9177_v33 = vld [vmem:[%s12791_s8 + $0x754] ss:$52 sps:$4 sm:$0xff]  }
 0x391   :  { %v9676_v37 = vpop.eup %9675 }
 0x392   :  { %v3580_v39 = vmul.f32 %v9676_v37, %v46_v36  ;;  %v3582_v40 = vmul.f32 %v9676_v37, %v9676_v37  ;;  %v9111_v36 = vld [vmem:[%s12791_s8 + $0x2dc] ss:$52 sps:$4 sm:$0xff]  }
 0x393   :  { %v9124_v37 = vld [vmem:[%s12791_s8 + $0x3b0] ss:$52 sps:$4 sm:$0xff]  }
 0x394   :  { %v3581_v41 = vadd.f32 %v8216_v35, %v3580_v39  ;;  %v3584_v42 = vadd.f32 %v3583_v38, %v3582_v40  ;;  %v9126_v35 = vld [vmem:[%s12791_s8 + $0x3b4] ss:$52 sps:$4 sm:$0xff]   ;;  %v9109_v38 = vld [vmem:[%s12791_s8 + $0x2d8] ss:$52 sps:$4 sm:$0xff]   ;;  %v9132_v39 = vld [vmem:[%s12791_s8 + $0x41c] ss:$52 sps:$4 sm:$0xff]  }
 0x395   :  { %6646 = vmatprep.subr.bf16.mxu0 %v9126_v35  ;;  %v9117_v40 = vld [vmem:[%s12791_s8 + $0x344] ss:$52 sps:$4 sm:$0xff]  }
 0x396   :  { %v3612_v45 = vpack.c.bf16 %v3581_v41, %v3581_v41  ;;  %v3586_v46 = vsub.f32 %v3584_v42, %v3585_v43  ;;  %6647 = vmatpush1.bf16.msra.mxu0 %v9124_v37  ;;  %v9130_v41 = vld [vmem:[%s12791_s8 + $0x418] ss:$52 sps:$4 sm:$0xff]   ;;  %v9115_v42 = vld [vmem:[%s12791_s8 + $0x340] ss:$52 sps:$4 sm:$0xff]   ;;  %v9175_v35 = vld [vmem:[%s12791_s8 + $0x750] ss:$52 sps:$4 sm:$0xff]  }
 0x397   :  { %6648 = vmatprep.subr.bf16.mxu0 %v9132_v39  ;;  %v9138_v43 = vld [vmem:[%s12791_s8 + $0x484] ss:$52 sps:$4 sm:$0xff]   ;;  %v9183_v37 = vld [vmem:[%s12791_s8 + $0x7bc] ss:$52 sps:$4 sm:$0xff]  }
 0x398   :  { %3860 = vmatmul.mubr.bf16.vlgmr.msra.gmra.mrb[4].mxu1 %v3612_v45  ;;  %v7706_v48 = vadd.f32 -1.0, %v3586_v46  ;;  %v9121_v46 = vld [vmem:[%s12791_s8 + $0x3a8] ss:$52 sps:$4 sm:$0xff]   ;;  %v9181_v39 = vld [vmem:[%s12791_s8 + $0x7b8] ss:$52 sps:$4 sm:$0xff]  }
 0x399   :  { %3869 = vmatpush1.bf16.msra.mxu1 %v9043_v44  ;;  %3900 = vmatprep.mubr.bf16.mxu1 %v9753_v30  ;;  %v9052_v30 = vld [vmem:[%s12789_s6 + $0x68] ss:$16 sps:$4 sm:$0xff]   ;;  %v9123_v44 = vld [vmem:[%s12791_s8 + $0x3ac] ss:$52 sps:$4 sm:$0xff]  }
 0x39a   :  { %3588 = vadd.xlane.f32.xlu0 %v7706_v48  ;;  %3870 = vmatprep.subr.bf16.mxu1 %v9048_v47  ;;  %v9144_v47 = vld [vmem:[%s12791_s8 + $0x4ec] ss:$52 sps:$4 sm:$0xff]   ;;  %v9129_v48 = vld [vmem:[%s12791_s8 + $0x414] ss:$52 sps:$4 sm:$0xff]  }
 0x39b   :  { %6649 = vmatpush1.bf16.msra.mxu0 %v9130_v41  ;;  %v9189_v41 = vld [vmem:[%s12791_s8 + $0x824] ss:$52 sps:$4 sm:$0xff]  }
 0x39c   :  { %6650 = vmatprep.subr.bf16.mxu0 %v9138_v43  ;;  %v9187_v43 = vld [vmem:[%s12791_s8 + $0x820] ss:$52 sps:$4 sm:$0xff]  }
 0x39d   :  { %3871 = vmatpush1.bf16.msra.mxu1 %v9046_v49  ;;  %v9142_v49 = vld [vmem:[%s12791_s8 + $0x4e8] ss:$52 sps:$4 sm:$0xff]  }
 0x39e   :  { %3872 = vmatprep.subr.bf16.mxu1 %v9051_v50  ;;  %v9127_v50 = vld [vmem:[%s12791_s8 + $0x410] ss:$52 sps:$4 sm:$0xff]  }
 0x3a1   :  { %3873 = vmatpush1.bf16.msra.mxu1 %v9049_v51  ;;  %v9150_v51 = vld [vmem:[%s12791_s8 + $0x554] ss:$52 sps:$4 sm:$0xff]  }
 0x3a2   :  { %3874 = vmatprep.subr.bf16.mxu1 %v9054_v52  ;;  %v9135_v52 = vld [vmem:[%s12791_s8 + $0x47c] ss:$52 sps:$4 sm:$0xff]  }
 0x3a5   :  { %3875 = vmatpush1.bf16.msra.mxu1 %v9052_v30  ;;  %v9148_v30 = vld [vmem:[%s12791_s8 + $0x550] ss:$52 sps:$4 sm:$0xff]  }
 0x3a6   :  { %3876 = vmatprep.subr.bf16.mxu1 %v9057_v53  ;;  %v9133_v53 = vld [vmem:[%s12791_s8 + $0x478] ss:$52 sps:$4 sm:$0xff]  }
 0x3a9   :  { %3877 = vmatpush1.bf16.msra.mxu1 %v9055_v54  ;;  %v9141_v54 = vld [vmem:[%s12791_s8 + $0x4e4] ss:$52 sps:$4 sm:$0xff]  }
 0x3aa   :  { %3878 = vmatprep.subr.bf16.mxu1 %v9060_v55  ;;  %v9139_v55 = vld [vmem:[%s12791_s8 + $0x4e0] ss:$52 sps:$4 sm:$0xff]  }
 0x3ad   :  { %3879 = vmatpush1.bf16.msra.mxu1 %v9058_v56  ;;  %v9147_v56 = vld [vmem:[%s12791_s8 + $0x54c] ss:$52 sps:$4 sm:$0xff]  }
 0x3ae   :  { %3880 = vmatprep.subr.bf16.mxu1 %v9063_v57  ;;  %v9145_v57 = vld [vmem:[%s12791_s8 + $0x548] ss:$52 sps:$4 sm:$0xff]  }
 0x3b1   :  { %3881 = vmatpush1.bf16.msra.mxu1 %v9061_v59  ;;  %v9156_v59 = vld [vmem:[%s12791_s8 + $0x5bc] ss:$52 sps:$4 sm:$0xff]  }
 0x3b2   :  { %3882 = vmatprep.subr.bf16.mxu1 %v9066_v61  ;;  %v9151_v61 = vld [vmem:[%s12791_s8 + $0x5b0] ss:$52 sps:$4 sm:$0xff]  }
 0x3b5   :  { %3883 = vmatpush1.bf16.msra.mxu1 %v9064_v1  ;;  %v9160_v1 = vld [vmem:[%s12791_s8 + $0x620] ss:$52 sps:$4 sm:$0xff]  }
 0x3b6   :  { %6546 = vmatprep.subr.bf16.mxu1 %v9069_v3  ;;  %v9165_v3 = vld [vmem:[%s12791_s8 + $0x684] ss:$52 sps:$4 sm:$0xff]  }
 0x3b8   :  { %3901 = vmatmul.mubr.bf16.vlgmr.msra.gmra.mrb[8].mxu1 %v3612_v45  ;;  %v9136_v45 = vld [vmem:[%s12791_s8 + $0x480] ss:$52 sps:$4 sm:$0xff]  }
 0x3b9   :  { %6547 = vmatpush1.bf16.msra.mxu1 %v9067_v5  ;;  %6651 = vmatpush1.bf16.msra.mxu0 %v9136_v45  ;;  %v9195_v45 = vld [vmem:[%s12791_s8 + $0x88c] ss:$52 sps:$4 sm:$0xff]  }
 0x3ba   :  { %6548 = vmatprep.subr.bf16.mxu1 %v9075_v7  ;;  %6652 = vmatprep.subr.bf16.mxu0 %v9144_v47  ;;  %v9193_v47 = vld [vmem:[%s12791_s8 + $0x888] ss:$52 sps:$4 sm:$0xff]  }
 0x3bd   :  { %6549 = vmatpush1.bf16.msra.mxu1 %v9073_v9  ;;  %6653 = vmatpush1.bf16.msra.mxu0 %v9142_v49  ;;  %v11600_v9 = vld [vmem:[%s12790_s7] sm:$0xf]  ;;  %v9201_v49 = vld [vmem:[%s12791_s8 + $0x8f4] ss:$52 sps:$4 sm:$0xff]  }
 0x3be   :  { %6550 = vmatprep.subr.bf16.mxu1 %v9081_v12  ;;  %6654 = vmatprep.subr.bf16.mxu0 %v9150_v51  ;;  %v3650_v10 = vrot.slane %v11600_v9, %v11191_v15  ;;  %v3654_v12 = vrot.slane %v11600_v9, %v11199_v17  ;;  %v3662_v51 = vrot.slane %v11600_v9, %v11202_v14 }
 0x3c1   :  { %6551 = vmatpush1.bf16.msra.mxu1 %v9079_v19  ;;  %6655 = vmatpush1.bf16.msra.mxu0 %v9148_v30  ;;  %v9202_v30 = vld [vmem:[%s12791_s8 + $0x8f8] ss:$52 sps:$4 sm:$0xff]  }
 0x3c2   :  { %6552 = vmatprep.subr.bf16.mxu1 %v9087_v21  ;;  %6656 = vmatprep.subr.bf16.mxu0 %v9156_v59  ;;  %v9205_v59 = vld [vmem:[%s12791_s8 + $0x958] ss:$52 sps:$4 sm:$0xff]  }
 0x3c5   :  { %6553 = vmatpush1.bf16.msra.mxu1 %v9085_v23  ;;  %6657 = vmatpush1.bf16.msra.mxu0 %v9154_v60  ;;  %v9208_v60 = vld [vmem:[%s12791_s8 + $0x960] ss:$52 sps:$4 sm:$0xff]  }
 0x3c6   :  { %6554 = vmatprep.subr.bf16.mxu1 %v9093_v24  ;;  %6658 = vmatprep.subr.bf16.mxu0 %v9162_v0  ;;  %v9216_v0 = vld [vmem:[%s12791_s8 + $0x9cc] ss:$52 sps:$4 sm:$0xff]  }
 0x3c9   :  { %6555 = vmatpush1.bf16.msra.mxu1 %v9091_v18  ;;  %6659 = vmatpush1.bf16.msra.mxu0 %v9160_v1  ;;  %v9163_v18 = vld [vmem:[%s12791_s8 + $0x680] ss:$52 sps:$4 sm:$0xff]  }
 0x3ca   :  { %6556 = vmatprep.subr.bf16.mxu1 %v9099_v27  ;;  %6669 = vmatprep.subr.bf16.mxu0 %v9168_v4  ;;  %v9214_v4 = vld [vmem:[%s12791_s8 + $0x9c8] ss:$52 sps:$4 sm:$0xff]  }
 0x3cd   :  { %6557 = vmatpush1.bf16.msra.mxu1 %v9097_v29  ;;  %v9174_v29 = vld [vmem:[%s12791_s8 + $0x6f4] ss:$52 sps:$4 sm:$0xff]  }
 0x3ce   :  { %6558 = vmatprep.subr.bf16.mxu1 %v9105_v32  ;;  %v9172_v32 = vld [vmem:[%s12791_s8 + $0x6f0] ss:$52 sps:$4 sm:$0xff]  }
 0x3d1   :  { %6559 = vmatpush1.bf16.msra.mxu1 %v9103_v34  ;;  %v9180_v34 = vld [vmem:[%s12791_s8 + $0x75c] ss:$52 sps:$4 sm:$0xff]  }
 0x3d2   :  { %6560 = vmatprep.subr.bf16.mxu1 %v9111_v36  ;;  %v9178_v36 = vld [vmem:[%s12791_s8 + $0x758] ss:$52 sps:$4 sm:$0xff]  }
 0x3d5   :  { %6561 = vmatpush1.bf16.msra.mxu1 %v9109_v38  ;;  %v9186_v38 = vld [vmem:[%s12791_s8 + $0x7c4] ss:$52 sps:$4 sm:$0xff]  }
 0x3d6   :  { %6562 = vmatprep.subr.bf16.mxu1 %v9117_v40  ;;  %v9184_v40 = vld [vmem:[%s12791_s8 + $0x7c0] ss:$52 sps:$4 sm:$0xff]  }
 0x3d9   :  { %6563 = vmatpush1.bf16.msra.mxu1 %v9115_v42  ;;  %v9192_v42 = vld [vmem:[%s12791_s8 + $0x82c] ss:$52 sps:$4 sm:$0xff]  }
 0x3da   :  { %6564 = vmatprep.subr.bf16.mxu1 %v9123_v44  ;;  %v9190_v44 = vld [vmem:[%s12791_s8 + $0x828] ss:$52 sps:$4 sm:$0xff]  }
 0x3dd   :  { %6565 = vmatpush1.bf16.msra.mxu1 %v9121_v46  ;;  %v9198_v46 = vld [vmem:[%s12791_s8 + $0x894] ss:$52 sps:$4 sm:$0xff]  }
 0x3de   :  { %6566 = vmatprep.subr.bf16.mxu1 %v9129_v48  ;;  %v9196_v48 = vld [vmem:[%s12791_s8 + $0x890] ss:$52 sps:$4 sm:$0xff]  }
 0x3e1   :  { %6567 = vmatpush1.bf16.msra.mxu1 %v9127_v50  ;;  %v9204_v50 = vld [vmem:[%s12791_s8 + $0x8fc] ss:$52 sps:$4 sm:$0xff]  }
 0x3e2   :  { %6568 = vmatprep.subr.bf16.mxu1 %v9135_v52  ;;  %v9199_v52 = vld [vmem:[%s12791_s8 + $0x8f0] ss:$52 sps:$4 sm:$0xff]  }
 0x3e5   :  { %6569 = vmatpush1.bf16.msra.mxu1 %v9133_v53  ;;  %v9207_v53 = vld [vmem:[%s12791_s8 + $0x95c] ss:$52 sps:$4 sm:$0xff]  }
 0x3e6   :  { %6570 = vmatprep.subr.bf16.mxu1 %v9141_v54  ;;  %v9210_v54 = vld [vmem:[%s12791_s8 + $0x964] ss:$52 sps:$4 sm:$0xff]  }
 0x3e9   :  { %6571 = vmatpush1.bf16.msra.mxu1 %v9139_v55 }
 0x3ea   :  { %6572 = vmatprep.subr.bf16.mxu1 %v9147_v56 }
 0x3ed   :  { %6573 = vmatpush1.bf16.msra.mxu1 %v9145_v57 }
 0x3ee   :  { %6574 = vmatprep.subr.bf16.mxu1 %v9153_v58 }
 0x3f1   :  { %6575 = vmatpush1.bf16.msra.mxu1 %v9151_v61 }
 0x3f2   :  { %6576 = vmatprep.subr.bf16.mxu1 %v9159_v62  ;;  %v9213_v62 = vld [vmem:[%s12791_s8 + $0x9c4] ss:$52 sps:$4 sm:$0xff]  }
 0x3f5   :  { %6577 = vmatpush1.bf16.msra.mxu1 %v9157_v2 }
 0x3f6   :  { %6587 = vmatprep.subr.bf16.mxu1 %v9165_v3  ;;  %v9211_v3 = vld [vmem:[%s12791_s8 + $0x9c0] ss:$52 sps:$4 sm:$0xff]  }
 0x427   :  { %v3589_v5 = vpop.xlane.xlu0 %3588 }
 0x428   :  { %v3590_v6 = vmul.f32 0.5, %v3589_v5  ;;  %v9219_v5 = vld [vmem:[%s12791_s8 + $0xa2c] ss:$52 sps:$4 sm:$0xff]  }
 0x42a   :  { %v3597_v7 = vsel %vm3596_vm1, %v3590_v6, 0.0  ;;  %v9222_v6 = vld [vmem:[%s12791_s8 + $0xa34] ss:$52 sps:$4 sm:$0xff]  }
 0x42b   :  { %v3599_v8 = vsel %vm3598_vm2, %v3597_v7, 0.0  ;;  %v9217_v7 = vld [vmem:[%s12791_s8 + $0xa28] ss:$52 sps:$4 sm:$0xff]  }
 0x42c   :  { %3600 = vadd.xlane.f32.xlu0 %v3599_v8  ;;  %v9220_v8 = vld [vmem:[%s12791_s8 + $0xa30] ss:$52 sps:$4 sm:$0xff]  }
 0x46b   :  { %v3861_v11 = vpop.f32.mrb[4].mxu1 }
 0x46c   :  { %v3862_v19 = vadd.f32 %v3861_v11, %v3650_v10  ;;  %v3863_v20 = vpop.f32.mrb[5].mxu1  ;;  %v9225_v10 = vld [vmem:[%s12791_s8 + $0xa94] ss:$52 sps:$4 sm:$0xff]   ;;  %v9223_v11 = vld [vmem:[%s12791_s8 + $0xa90] ss:$52 sps:$4 sm:$0xff]  }
 0x46d   :  { %v3864_v21 = vadd.f32 %v3863_v20, %v3654_v12  ;;  %v3865_v22 = vpop.f32.mrb[6].mxu1  ;;  %v9228_v12 = vld [vmem:[%s12791_s8 + $0xa9c] ss:$52 sps:$4 sm:$0xff]  }
 0x46e   :  { %v3909_v23 = vmax.f32 %v3862_v19, 0.0  ;;  %v3866_v16 = vpop.f32.mrb[7].mxu1  ;;  %v9226_v19 = vld [vmem:[%s12791_s8 + $0xa98] ss:$52 sps:$4 sm:$0xff]   ;;  %v9231_v20 = vld [vmem:[%s12791_s8 + $0xafc] ss:$52 sps:$4 sm:$0xff]  }
 0x46f   :  { %v3910_v24 = vmax.f32 %v3864_v21, 0.0  ;;  %v9234_v21 = vld [vmem:[%s12791_s8 + $0xb04] ss:$52 sps:$4 sm:$0xff]  }
 0x470   :  { %v11614_v27 = vpack.c.bf16 %v3909_v23, %v3909_v23  ;;  %v9229_v22 = vld [vmem:[%s12791_s8 + $0xaf8] ss:$52 sps:$4 sm:$0xff]   ;;  %v9232_v23 = vld [vmem:[%s12791_s8 + $0xb00] ss:$52 sps:$4 sm:$0xff]  }
 0x471   :  { %v11606_v25 = vpack.c.bf16 %v3910_v24, %v3910_v24  ;;  %v9237_v16 = vld [vmem:[%s12791_s8 + $0xb64] ss:$52 sps:$4 sm:$0xff]   ;;  %v9240_v24 = vld [vmem:[%s12791_s8 + $0xb6c] ss:$52 sps:$4 sm:$0xff]  }
 0x473   :  { %6578 = vmatprep.mubr.bf16.mxu1 %v11606_v25  ;;  %6660 = vmatprep.mubr.bf16.mxu0 %v11606_v25 }
 0x474   :  { %6579 = vmatmul.mubr.bf16.vlgmr.msra.gmra.mrb[12].mxu1 %v11614_v27  ;;  %6661 = vmatmul.mubr.bf16.vlgmr.msra.gmra.mrb[8].mxu0 %v11614_v27 }
 0x475   :  { %6588 = vmatpush1.bf16.msra.mxu1 %v9163_v18  ;;  %6670 = vmatpush1.bf16.msra.mxu0 %v9166_v26  ;;  %v9235_v18 = vld [vmem:[%s12791_s8 + $0xb60] ss:$52 sps:$4 sm:$0xff]   ;;  %v9238_v26 = vld [vmem:[%s12791_s8 + $0xb68] ss:$52 sps:$4 sm:$0xff]  }
 0x476   :  { %6589 = vmatprep.subr.bf16.mxu1 %v9171_v28  ;;  %6671 = vmatprep.subr.bf16.mxu0 %v9174_v29  ;;  %v9243_v28 = vld [vmem:[%s12791_s8 + $0xbcc] ss:$52 sps:$4 sm:$0xff]   ;;  %v9246_v29 = vld [vmem:[%s12791_s8 + $0xbd4] ss:$52 sps:$4 sm:$0xff]  }
 0x479   :  { %6590 = vmatpush1.bf16.msra.mxu1 %v9169_v31  ;;  %6672 = vmatpush1.bf16.msra.mxu0 %v9172_v32  ;;  %v9241_v31 = vld [vmem:[%s12791_s8 + $0xbc8] ss:$52 sps:$4 sm:$0xff]   ;;  %v9244_v32 = vld [vmem:[%s12791_s8 + $0xbd0] ss:$52 sps:$4 sm:$0xff]  }
 0x47a   :  { %6591 = vmatprep.subr.bf16.mxu1 %v9177_v33  ;;  %6673 = vmatprep.subr.bf16.mxu0 %v9180_v34  ;;  %v3658_v33 = vrot.slane %v11600_v9, %v11288_v63  ;;  %v9249_v34 = vld [vmem:[%s12791_s8 + $0xc34] ss:$52 sps:$4 sm:$0xff]   ;;  %v9250_v9 = vld [vmem:[%s12791_s8 + $0xc38] ss:$52 sps:$4 sm:$0xff]  }
 0x47d   :  { %6592 = vmatpush1.bf16.msra.mxu1 %v9175_v35  ;;  %6674 = vmatpush1.bf16.msra.mxu0 %v9178_v36  ;;  %v9252_v35 = vld [vmem:[%s12791_s8 + $0xc3c] ss:$52 sps:$4 sm:$0xff]  }
 0x47e   :  { %6593 = vmatprep.subr.bf16.mxu1 %v9183_v37  ;;  %6675 = vmatprep.subr.bf16.mxu0 %v9186_v38  ;;  %v9247_v36 = vld [vmem:[%s12791_s8 + $0xc30] ss:$52 sps:$4 sm:$0xff]  }
 0x47f   :  { %v9255_v38 = vld [vmem:[%s12791_s8 + $0xc9c] ss:$52 sps:$4 sm:$0xff]  }
 0x481   :  { %6594 = vmatpush1.bf16.msra.mxu1 %v9181_v39  ;;  %6676 = vmatpush1.bf16.msra.mxu0 %v9184_v40  ;;  %v9258_v39 = vld [vmem:[%s12791_s8 + $0xca4] ss:$52 sps:$4 sm:$0xff]  }
 0x482   :  { %6595 = vmatprep.subr.bf16.mxu1 %v9189_v41  ;;  %6677 = vmatprep.subr.bf16.mxu0 %v9192_v42  ;;  %v9253_v40 = vld [vmem:[%s12791_s8 + $0xc98] ss:$52 sps:$4 sm:$0xff]   ;;  %v9256_v41 = vld [vmem:[%s12791_s8 + $0xca0] ss:$52 sps:$4 sm:$0xff]  }
 0x485   :  { %6596 = vmatpush1.bf16.msra.mxu1 %v9187_v43  ;;  %6678 = vmatpush1.bf16.msra.mxu0 %v9190_v44  ;;  %v9261_v43 = vld [vmem:[%s12791_s8 + $0x14] ss:$52 sps:$4 sm:$0xff]   ;;  %v9264_v44 = vld [vmem:[%s12791_s8 + $0x1c] ss:$52 sps:$4 sm:$0xff]  }
 0x486   :  { %6597 = vmatprep.subr.bf16.mxu1 %v9195_v45  ;;  %6679 = vmatprep.subr.bf16.mxu0 %v9198_v46  ;;  %v9259_v45 = vld [vmem:[%s12791_s8 + $0x10] ss:$52 sps:$4 sm:$0xff]  }
 0x489   :  { %6598 = vmatpush1.bf16.msra.mxu1 %v9193_v47  ;;  %6680 = vmatpush1.bf16.msra.mxu0 %v9196_v48  ;;  %v9262_v47 = vld [vmem:[%s12791_s8 + $0x18] ss:$52 sps:$4 sm:$0xff]   ;;  %v9267_v48 = vld [vmem:[%s12791_s8 + $0x7c] ss:$52 sps:$4 sm:$0xff]  }
 0x48a   :  { %6599 = vmatprep.subr.bf16.mxu1 %v9201_v49  ;;  %6681 = vmatprep.subr.bf16.mxu0 %v9204_v50  ;;  %v9270_v49 = vld [vmem:[%s12791_s8 + $0x84] ss:$52 sps:$4 sm:$0xff]  }
 0x48b   :  { %v11700_v55 = vpop.f32.mrb[8].mxu1  ;;  %v9265_v50 = vld [vmem:[%s12791_s8 + $0x78] ss:$52 sps:$4 sm:$0xff]  }
 0x48c   :  { %v3904_v56 = vpop.f32.mrb[9].mxu1  ;;  %v3903_v37 = vadd.f32 %v11700_v55, %v3658_v33  ;;  %v9318_v33 = vld [vmem:[%s12791_s8 + $0x3c4] ss:$52 sps:$4 sm:$0xff]  }
 0x48d   :  { %v3905_v57 = vadd.f32 %v3904_v56, %v3662_v51  ;;  %v3906_v58 = vpop.f32.mrb[10].mxu1  ;;  %6600 = vmatpush1.bf16.msra.mxu1 %v9199_v52  ;;  %6682 = vmatpush1.bf16.msra.mxu0 %v9202_v30  ;;  %v9268_v51 = vld [vmem:[%s12791_s8 + $0x80] ss:$52 sps:$4 sm:$0xff]   ;;  %v9273_v52 = vld [vmem:[%s12791_s8 + $0xe4] ss:$52 sps:$4 sm:$0xff]  }
 0x48e   :  { %v3907_v61 = vpop.f32.mrb[11].mxu1  ;;  %6601 = vmatprep.subr.bf16.mxu1 %v9207_v53  ;;  %6683 = vmatprep.subr.bf16.mxu0 %v9210_v54  ;;  %v3911_v42 = vmax.f32 %v3903_v37, 0.0  ;;  %v9276_v30 = vld [vmem:[%s12791_s8 + $0xec] ss:$52 sps:$4 sm:$0xff]   ;;  %v9274_v56 = vld [vmem:[%s12791_s8 + $0xe8] ss:$52 sps:$4 sm:$0xff]  }
 0x48f   :  { %v3912_v1 = vmax.f32 %v3905_v57, 0.0  ;;  %v9271_v54 = vld [vmem:[%s12791_s8 + $0xe0] ss:$52 sps:$4 sm:$0xff]  }
 0x490   :  { %v11820_v46 = vpack.c.bf16 %v3911_v42, %v3911_v42  ;;  %v9279_v57 = vld [vmem:[%s12791_s8 + $0x14c] ss:$52 sps:$4 sm:$0xff]   ;;  %v9282_v58 = vld [vmem:[%s12791_s8 + $0x154] ss:$52 sps:$4 sm:$0xff]   ;;  %v9328_v42 = vld [vmem:[%s12791_s8 + $0x490] ss:$52 sps:$4 sm:$0xff]  }
 0x491   :  { %v11714_v2 = vpack.c.bf16 %v3912_v1, %v3912_v1  ;;  %6602 = vmatpush1.bf16.msra.mxu1 %v9205_v59  ;;  %6684 = vmatpush1.bf16.msra.mxu0 %v9208_v60  ;;  %v9277_v60 = vld [vmem:[%s12791_s8 + $0x148] ss:$52 sps:$4 sm:$0xff]   ;;  %v9319_v37 = vld [vmem:[%s12791_s8 + $0x420] ss:$52 sps:$4 sm:$0xff]  }
 0x492   :  { %6603 = vmatprep.subr.bf16.mxu1 %v9213_v62  ;;  %6685 = vmatprep.subr.bf16.mxu0 %v9216_v0  ;;  %v9280_v62 = vld [vmem:[%s12791_s8 + $0x150] ss:$52 sps:$4 sm:$0xff]   ;;  %v9285_v0 = vld [vmem:[%s12791_s8 + $0x1b4] ss:$52 sps:$4 sm:$0xff]  }
 0x493   :  { %6619 = vmatprep.mubr.bf16.mxu1 %v11714_v2  ;;  %6701 = vmatprep.mubr.bf16.mxu0 %v11714_v2  ;;  %v9288_v1 = vld [vmem:[%s12791_s8 + $0x1bc] ss:$52 sps:$4 sm:$0xff]  }
 0x495   :  { %6604 = vmatpush1.bf16.msra.mxu1 %v9211_v3  ;;  %6686 = vmatpush1.bf16.msra.mxu0 %v9214_v4  ;;  %v9283_v4 = vld [vmem:[%s12791_s8 + $0x1b0] ss:$52 sps:$4 sm:$0xff]  }
 0x496   :  { %6605 = vmatprep.subr.bf16.mxu1 %v9219_v5  ;;  %6687 = vmatprep.subr.bf16.mxu0 %v9222_v6  ;;  %v9286_v5 = vld [vmem:[%s12791_s8 + $0x1b8] ss:$52 sps:$4 sm:$0xff]  }
 0x499   :  { %6606 = vmatpush1.bf16.msra.mxu1 %v9217_v7  ;;  %6688 = vmatpush1.bf16.msra.mxu0 %v9220_v8  ;;  %v9291_v7 = vld [vmem:[%s12791_s8 + $0x21c] ss:$52 sps:$4 sm:$0xff]   ;;  %v9294_v8 = vld [vmem:[%s12791_s8 + $0x224] ss:$52 sps:$4 sm:$0xff]  }
 0x49a   :  { %6607 = vmatprep.subr.bf16.mxu1 %v9225_v10  ;;  %6689 = vmatprep.subr.bf16.mxu0 %v9228_v12  ;;  %v9289_v12 = vld [vmem:[%s12791_s8 + $0x218] ss:$52 sps:$4 sm:$0xff]  }
 0x49d   :  { %6608 = vmatpush1.bf16.msra.mxu1 %v9223_v11  ;;  %6690 = vmatpush1.bf16.msra.mxu0 %v9226_v19  ;;  %v9292_v11 = vld [vmem:[%s12791_s8 + $0x220] ss:$52 sps:$4 sm:$0xff]   ;;  %v9297_v19 = vld [vmem:[%s12791_s8 + $0x284] ss:$52 sps:$4 sm:$0xff]  }
 0x49e   :  { %6609 = vmatprep.subr.bf16.mxu1 %v9231_v20  ;;  %6691 = vmatprep.subr.bf16.mxu0 %v9234_v21  ;;  %v9300_v20 = vld [vmem:[%s12791_s8 + $0x28c] ss:$52 sps:$4 sm:$0xff]  }
 0x49f   :  { %v9295_v21 = vld [vmem:[%s12791_s8 + $0x280] ss:$52 sps:$4 sm:$0xff]  }
 0x4a1   :  { %6610 = vmatpush1.bf16.msra.mxu1 %v9229_v22  ;;  %6692 = vmatpush1.bf16.msra.mxu0 %v9232_v23  ;;  %v9298_v22 = vld [vmem:[%s12791_s8 + $0x288] ss:$52 sps:$4 sm:$0xff]   ;;  %v9303_v23 = vld [vmem:[%s12791_s8 + $0x2ec] ss:$52 sps:$4 sm:$0xff]  }
 0x4a2   :  { %6611 = vmatprep.subr.bf16.mxu1 %v9237_v16  ;;  %6693 = vmatprep.subr.bf16.mxu0 %v9240_v24  ;;  %v9306_v16 = vld [vmem:[%s12791_s8 + $0x2f4] ss:$52 sps:$4 sm:$0xff]  }
 0x4a3   :  { %v9301_v24 = vld [vmem:[%s12791_s8 + $0x2e8] ss:$52 sps:$4 sm:$0xff]  }
 0x4a5   :  { %6612 = vmatpush1.bf16.msra.mxu1 %v9235_v18  ;;  %6694 = vmatpush1.bf16.msra.mxu0 %v9238_v26  ;;  %v9304_v18 = vld [vmem:[%s12791_s8 + $0x2f0] ss:$52 sps:$4 sm:$0xff]   ;;  %v9309_v26 = vld [vmem:[%s12791_s8 + $0x354] ss:$52 sps:$4 sm:$0xff]  }
 0x4a6   :  { %6613 = vmatprep.subr.bf16.mxu1 %v9243_v28  ;;  %6695 = vmatprep.subr.bf16.mxu0 %v9246_v29  ;;  %v9312_v28 = vld [vmem:[%s12791_s8 + $0x35c] ss:$52 sps:$4 sm:$0xff]  }
 0x4a7   :  { %v9307_v29 = vld [vmem:[%s12791_s8 + $0x350] ss:$52 sps:$4 sm:$0xff]  }
 0x4a9   :  { %6614 = vmatpush1.bf16.msra.mxu1 %v9241_v31  ;;  %6696 = vmatpush1.bf16.msra.mxu0 %v9244_v32  ;;  %v9310_v31 = vld [vmem:[%s12791_s8 + $0x358] ss:$52 sps:$4 sm:$0xff]   ;;  %v9315_v32 = vld [vmem:[%s12791_s8 + $0x3bc] ss:$52 sps:$4 sm:$0xff]  }
 0x4aa   :  { %6615 = vmatprep.subr.bf16.mxu1 %v9249_v34  ;;  %6697 = vmatprep.subr.bf16.mxu0 %v9252_v35  ;;  %v9313_v34 = vld [vmem:[%s12791_s8 + $0x3b8] ss:$52 sps:$4 sm:$0xff]   ;;  %v9316_v35 = vld [vmem:[%s12791_s8 + $0x3c0] ss:$52 sps:$4 sm:$0xff]  }
 0x4ad   :  { %6616 = vmatpush1.bf16.msra.mxu1 %v9247_v36  ;;  %6698 = vmatpush1.bf16.msra.mxu0 %v9250_v9  ;;  %v9321_v36 = vld [vmem:[%s12791_s8 + $0x424] ss:$52 sps:$4 sm:$0xff]   ;;  %v9324_v9 = vld [vmem:[%s12791_s8 + $0x42c] ss:$52 sps:$4 sm:$0xff]  }
 0x4ae   :  { %6617 = vmatprep.subr.bf16.mxu1 %v9255_v38  ;;  %6699 = vmatprep.subr.bf16.mxu0 %v9258_v39  ;;  %v9322_v38 = vld [vmem:[%s12791_s8 + $0x428] ss:$52 sps:$4 sm:$0xff]   ;;  %v9327_v39 = vld [vmem:[%s12791_s8 + $0x48c] ss:$52 sps:$4 sm:$0xff]  }
 0x4b1   :  { %6618 = vmatpush1.bf16.msra.mxu1 %v9253_v40  ;;  %6700 = vmatpush1.bf16.msra.mxu0 %v9256_v41  ;;  %v9330_v40 = vld [vmem:[%s12791_s8 + $0x494] ss:$52 sps:$4 sm:$0xff]  }
 0x4b2   :  { %6710 = vmatprep.subr.bf16.mxu1 %v9261_v43  ;;  %6792 = vmatprep.subr.bf16.mxu0 %v9264_v44  ;;  %v9325_v41 = vld [vmem:[%s12791_s8 + $0x488] ss:$52 sps:$4 sm:$0xff]  }
 0x4b3   :  { %v9333_v43 = vld [vmem:[%s12791_s8 + $0x4f4] ss:$52 sps:$4 sm:$0xff]   ;;  %v9336_v44 = vld [vmem:[%s12791_s8 + $0x4fc] ss:$52 sps:$4 sm:$0xff]  }
 0x4b4   :  { %6620 = vmatmul.mubr.bf16.vlgmr.msra.gmra.mrb[12].mxu1 %v11820_v46  ;;  %6702 = vmatmul.mubr.bf16.vlgmr.msra.gmra.mrb[8].mxu0 %v11820_v46 }
 0x4b5   :  { %6711 = vmatpush1.bf16.msra.mxu1 %v9259_v45  ;;  %6742 = vmatprep.mubr.bf16.mxu1 %v11606_v25  ;;  %v9331_v45 = vld [vmem:[%s12791_s8 + $0x4f0] ss:$52 sps:$4 sm:$0xff]  }
 0x4b6   :  { %6793 = vmatpush1.bf16.msra.mxu0 %v9262_v47  ;;  %6824 = vmatprep.mubr.bf16.mxu0 %v11606_v25  ;;  %v9334_v47 = vld [vmem:[%s12791_s8 + $0x4f8] ss:$52 sps:$4 sm:$0xff]  }
 0x4b7   :  { %6712 = vmatprep.subr.bf16.mxu1 %v9267_v48  ;;  %6794 = vmatprep.subr.bf16.mxu0 %v9270_v49  ;;  %v9339_v48 = vld [vmem:[%s12791_s8 + $0x55c] ss:$52 sps:$4 sm:$0xff]   ;;  %v9342_v49 = vld [vmem:[%s12791_s8 + $0x564] ss:$52 sps:$4 sm:$0xff]  }
 0x4b9   :  { %6713 = vmatpush1.bf16.msra.mxu1 %v9265_v50  ;;  %v3601_v53 = vpop.xlane.xlu0 %3600  ;;  %v9337_v50 = vld [vmem:[%s12791_s8 + $0x558] ss:$52 sps:$4 sm:$0xff]  }
 0x4ba   :  { %6795 = vmatpush1.bf16.msra.mxu0 %v9268_v51  ;;  %v3602_v55 = vrot.slane %v3601_v53, 4  ;;  %6714 = vmatprep.subr.bf16.mxu1 %v9273_v52  ;;  %v9340_v51 = vld [vmem:[%s12791_s8 + $0x560] ss:$52 sps:$4 sm:$0xff]   ;;  %v9345_v52 = vld [vmem:[%s12791_s8 + $0x5c4] ss:$52 sps:$4 sm:$0xff]  }
 0x4bb   :  { %6796 = vmatprep.subr.bf16.mxu0 %v9276_v30  ;;  %v9348_v30 = vld [vmem:[%s12791_s8 + $0x5cc] ss:$52 sps:$4 sm:$0xff]  }
 0x4bc   :  { %v3603_v59 = vadd.f32 %v3602_v55, %v3601_v53  ;;  %v9343_v53 = vld [vmem:[%s12791_s8 + $0x5c0] ss:$52 sps:$4 sm:$0xff]  }
 0x4bd   :  { %6715 = vmatpush1.bf16.msra.mxu1 %v9271_v54  ;;  %v9346_v54 = vld [vmem:[%s12791_s8 + $0x5c8] ss:$52 sps:$4 sm:$0xff]   ;;  %v9351_v55 = vld [vmem:[%s12791_s8 + $0x62c] ss:$52 sps:$4 sm:$0xff]  }
 0x4be   :  { %v3604_v61 = vrot.slane %v3603_v59, 2  ;;  %6797 = vmatpush1.bf16.msra.mxu0 %v9274_v56  ;;  %6716 = vmatprep.subr.bf16.mxu1 %v9279_v57  ;;  %v9354_v56 = vld [vmem:[%s12791_s8 + $0x634] ss:$52 sps:$4 sm:$0xff]  }
 0x4bf   :  { %6798 = vmatprep.subr.bf16.mxu0 %v9282_v58  ;;  %v9349_v57 = vld [vmem:[%s12791_s8 + $0x628] ss:$52 sps:$4 sm:$0xff]   ;;  %v9352_v58 = vld [vmem:[%s12791_s8 + $0x630] ss:$52 sps:$4 sm:$0xff]  }
 0x4c0   :  { %v3605_v3 = vadd.f32 %v3604_v61, %v3603_v59  ;;  %v9357_v59 = vld [vmem:[%s12791_s8 + $0x694] ss:$52 sps:$4 sm:$0xff]   ;;  %v9355_v61 = vld [vmem:[%s12791_s8 + $0x690] ss:$52 sps:$4 sm:$0xff]  }
 0x4c1   :  { %6717 = vmatpush1.bf16.msra.mxu1 %v9277_v60  ;;  %v9360_v60 = vld [vmem:[%s12791_s8 + $0x69c] ss:$52 sps:$4 sm:$0xff]  }
 0x4c2   :  { %6799 = vmatpush1.bf16.msra.mxu0 %v9280_v62  ;;  %6718 = vmatprep.subr.bf16.mxu1 %v9285_v0  ;;  %v3606_v6 = vrot.slane %v3605_v3, 1  ;;  %v9358_v62 = vld [vmem:[%s12791_s8 + $0x698] ss:$52 sps:$4 sm:$0xff]   ;;  %v9363_v0 = vld [vmem:[%s12791_s8 + $0x6fc] ss:$52 sps:$4 sm:$0xff]  }
 0x4c3   :  { %6800 = vmatprep.subr.bf16.mxu0 %v9288_v1  ;;  %v9366_v1 = vld [vmem:[%s12791_s8 + $0x704] ss:$52 sps:$4 sm:$0xff]  }
 0x4c4   :  { %v3607_v10 = vadd.f32 %v3606_v6, %v3605_v3  ;;  %v9361_v3 = vld [vmem:[%s12791_s8 + $0x6f8] ss:$52 sps:$4 sm:$0xff]  }
 0x4c5   :  { %6719 = vmatpush1.bf16.msra.mxu1 %v9283_v4  ;;  %v9364_v4 = vld [vmem:[%s12791_s8 + $0x700] ss:$52 sps:$4 sm:$0xff]  }
 0x4c6   :  { %6801 = vmatpush1.bf16.msra.mxu0 %v9286_v5  ;;  %8306 = vpush %v3607_v10  ;;  %6720 = vmatprep.subr.bf16.mxu1 %v9291_v7  ;;  %v9369_v5 = vld [vmem:[%s12791_s8 + $0x764] ss:$52 sps:$4 sm:$0xff]   ;;  %v9372_v6 = vld [vmem:[%s12791_s8 + $0x76c] ss:$52 sps:$4 sm:$0xff]   ;;  %v9370_v10 = vld [vmem:[%s12791_s8 + $0x768] ss:$52 sps:$4 sm:$0xff]  }
 0x4c7   :  { %6802 = vmatprep.subr.bf16.mxu0 %v9294_v8  ;;  %v9367_v8 = vld [vmem:[%s12791_s8 + $0x760] ss:$52 sps:$4 sm:$0xff]  }
 0x4c9   :  { %6721 = vmatpush1.bf16.msra.mxu1 %v9289_v12  ;;  %v9375_v12 = vld [vmem:[%s12791_s8 + $0x7cc] ss:$52 sps:$4 sm:$0xff]  }
 0x4ca   :  { %6803 = vmatpush1.bf16.msra.mxu0 %v9292_v11  ;;  %6722 = vmatprep.subr.bf16.mxu1 %v9297_v19  ;;  %v9378_v11 = vld [vmem:[%s12791_s8 + $0x7d4] ss:$52 sps:$4 sm:$0xff]  }
 0x4cb   :  { %6804 = vmatprep.subr.bf16.mxu0 %v9300_v20  ;;  %v9373_v19 = vld [vmem:[%s12791_s8 + $0x7c8] ss:$52 sps:$4 sm:$0xff]   ;;  %v9376_v20 = vld [vmem:[%s12791_s8 + $0x7d0] ss:$52 sps:$4 sm:$0xff]  }
 0x4cd   :  { %6723 = vmatpush1.bf16.msra.mxu1 %v9295_v21  ;;  %v9381_v21 = vld [vmem:[%s12791_s8 + $0x834] ss:$52 sps:$4 sm:$0xff]  }
 0x4ce   :  { %6805 = vmatpush1.bf16.msra.mxu0 %v9298_v22  ;;  %6724 = vmatprep.subr.bf16.mxu1 %v9303_v23  ;;  %v9384_v22 = vld [vmem:[%s12791_s8 + $0x83c] ss:$52 sps:$4 sm:$0xff]  }
 0x4cf   :  { %6806 = vmatprep.subr.bf16.mxu0 %v9306_v16  ;;  %v9379_v23 = vld [vmem:[%s12791_s8 + $0x830] ss:$52 sps:$4 sm:$0xff]   ;;  %v9382_v16 = vld [vmem:[%s12791_s8 + $0x838] ss:$52 sps:$4 sm:$0xff]  }
 0x4d1   :  { %6725 = vmatpush1.bf16.msra.mxu1 %v9301_v24  ;;  %v9387_v24 = vld [vmem:[%s12791_s8 + $0x89c] ss:$52 sps:$4 sm:$0xff]  }
 0x4d2   :  { %6807 = vmatpush1.bf16.msra.mxu0 %v9304_v18  ;;  %6726 = vmatprep.subr.bf16.mxu1 %v9309_v26  ;;  %v9390_v18 = vld [vmem:[%s12791_s8 + $0x8a4] ss:$52 sps:$4 sm:$0xff]  }
 0x4d3   :  { %6808 = vmatprep.subr.bf16.mxu0 %v9312_v28  ;;  %v9385_v26 = vld [vmem:[%s12791_s8 + $0x898] ss:$52 sps:$4 sm:$0xff]   ;;  %v9388_v28 = vld [vmem:[%s12791_s8 + $0x8a0] ss:$52 sps:$4 sm:$0xff]  }
 0x4d5   :  { %6727 = vmatpush1.bf16.msra.mxu1 %v9307_v29  ;;  %v9393_v29 = vld [vmem:[%s12791_s8 + $0x904] ss:$52 sps:$4 sm:$0xff]  }
 0x4d6   :  { %6809 = vmatpush1.bf16.msra.mxu0 %v9310_v31  ;;  %6728 = vmatprep.subr.bf16.mxu1 %v9315_v32  ;;  %v9396_v31 = vld [vmem:[%s12791_s8 + $0x90c] ss:$52 sps:$4 sm:$0xff]  }
 0x4d7   :  { %6810 = vmatprep.subr.bf16.mxu0 %v9318_v33  ;;  %v9391_v32 = vld [vmem:[%s12791_s8 + $0x900] ss:$52 sps:$4 sm:$0xff]   ;;  %v9394_v33 = vld [vmem:[%s12791_s8 + $0x908] ss:$52 sps:$4 sm:$0xff]  }
 0x4d9   :  { %6729 = vmatpush1.bf16.msra.mxu1 %v9313_v34  ;;  %v9399_v34 = vld [vmem:[%s12791_s8 + $0x96c] ss:$52 sps:$4 sm:$0xff]  }
 0x4da   :  { %6811 = vmatpush1.bf16.msra.mxu0 %v9316_v35  ;;  %6730 = vmatprep.subr.bf16.mxu1 %v9321_v36  ;;  %v9402_v35 = vld [vmem:[%s12791_s8 + $0x974] ss:$52 sps:$4 sm:$0xff]  }
 0x4db   :  { %6812 = vmatprep.subr.bf16.mxu0 %v9324_v9  ;;  %v9397_v36 = vld [vmem:[%s12791_s8 + $0x968] ss:$52 sps:$4 sm:$0xff]   ;;  %v9400_v9 = vld [vmem:[%s12791_s8 + $0x970] ss:$52 sps:$4 sm:$0xff]  }
 0x4dd   :  { %6731 = vmatpush1.bf16.msra.mxu1 %v9319_v37  ;;  %v9405_v37 = vld [vmem:[%s12791_s8 + $0x9d4] ss:$52 sps:$4 sm:$0xff]  }
 0x4de   :  { %6813 = vmatpush1.bf16.msra.mxu0 %v9322_v38  ;;  %6732 = vmatprep.subr.bf16.mxu1 %v9327_v39  ;;  %v9408_v38 = vld [vmem:[%s12791_s8 + $0x9dc] ss:$52 sps:$4 sm:$0xff]  }
 0x4df   :  { %6814 = vmatprep.subr.bf16.mxu0 %v9330_v40  ;;  %v9403_v39 = vld [vmem:[%s12791_s8 + $0x9d0] ss:$52 sps:$4 sm:$0xff]   ;;  %v9406_v40 = vld [vmem:[%s12791_s8 + $0x9d8] ss:$52 sps:$4 sm:$0xff]  }
 0x4e1   :  { %6733 = vmatpush1.bf16.msra.mxu1 %v9325_v41  ;;  %v9411_v41 = vld [vmem:[%s12791_s8 + $0xa3c] ss:$52 sps:$4 sm:$0xff]  }
 0x4e2   :  { %6815 = vmatpush1.bf16.msra.mxu0 %v9328_v42  ;;  %6734 = vmatprep.subr.bf16.mxu1 %v9333_v43  ;;  %v9414_v42 = vld [vmem:[%s12791_s8 + $0xa44] ss:$52 sps:$4 sm:$0xff]  }
 0x4e3   :  { %6816 = vmatprep.subr.bf16.mxu0 %v9336_v44  ;;  %v9409_v43 = vld [vmem:[%s12791_s8 + $0xa38] ss:$52 sps:$4 sm:$0xff]   ;;  %v9412_v44 = vld [vmem:[%s12791_s8 + $0xa40] ss:$52 sps:$4 sm:$0xff]  }
 0x4e5   :  { %6735 = vmatpush1.bf16.msra.mxu1 %v9331_v45  ;;  %v9417_v45 = vld [vmem:[%s12791_s8 + $0xaa4] ss:$52 sps:$4 sm:$0xff]  }
 0x4e6   :  { %6817 = vmatpush1.bf16.msra.mxu0 %v9334_v47  ;;  %6736 = vmatprep.subr.bf16.mxu1 %v9339_v48  ;;  %v9420_v47 = vld [vmem:[%s12791_s8 + $0xaac] ss:$52 sps:$4 sm:$0xff]  }
 0x4e7   :  { %6818 = vmatprep.subr.bf16.mxu0 %v9342_v49  ;;  %v9415_v48 = vld [vmem:[%s12791_s8 + $0xaa0] ss:$52 sps:$4 sm:$0xff]   ;;  %v9418_v49 = vld [vmem:[%s12791_s8 + $0xaa8] ss:$52 sps:$4 sm:$0xff]  }
 0x4e9   :  { %6737 = vmatpush1.bf16.msra.mxu1 %v9337_v50  ;;  %v9423_v50 = vld [vmem:[%s12791_s8 + $0xb0c] ss:$52 sps:$4 sm:$0xff]  }
 0x4ea   :  { %6819 = vmatpush1.bf16.msra.mxu0 %v9340_v51  ;;  %6738 = vmatprep.subr.bf16.mxu1 %v9345_v52  ;;  %v9426_v51 = vld [vmem:[%s12791_s8 + $0xb14] ss:$52 sps:$4 sm:$0xff]  }
 0x4eb   :  { %6820 = vmatprep.subr.bf16.mxu0 %v9348_v30  ;;  %v9421_v52 = vld [vmem:[%s12791_s8 + $0xb08] ss:$52 sps:$4 sm:$0xff]   ;;  %v9424_v30 = vld [vmem:[%s12791_s8 + $0xb10] ss:$52 sps:$4 sm:$0xff]  }
 0x4ed   :  { %6739 = vmatpush1.bf16.msra.mxu1 %v9343_v53  ;;  %v9429_v53 = vld [vmem:[%s12791_s8 + $0xb74] ss:$52 sps:$4 sm:$0xff]  }
 0x4ee   :  { %6821 = vmatpush1.bf16.msra.mxu0 %v9346_v54  ;;  %6740 = vmatprep.subr.bf16.mxu1 %v9351_v55  ;;  %v9432_v54 = vld [vmem:[%s12791_s8 + $0xb7c] ss:$52 sps:$4 sm:$0xff]  }
 0x4ef   :  { %6822 = vmatprep.subr.bf16.mxu0 %v9354_v56  ;;  %v9427_v55 = vld [vmem:[%s12791_s8 + $0xb70] ss:$52 sps:$4 sm:$0xff]   ;;  %v9430_v56 = vld [vmem:[%s12791_s8 + $0xb78] ss:$52 sps:$4 sm:$0xff]  }
 0x4f1   :  { %6741 = vmatpush1.bf16.msra.mxu1 %v9349_v57  ;;  %v9435_v57 = vld [vmem:[%s12791_s8 + $0xbdc] ss:$52 sps:$4 sm:$0xff]  }
 0x4f2   :  { %6823 = vmatpush1.bf16.msra.mxu0 %v9352_v58  ;;  %6751 = vmatprep.subr.bf16.mxu1 %v9357_v59  ;;  %v9438_v58 = vld [vmem:[%s12791_s8 + $0xbe4] ss:$52 sps:$4 sm:$0xff]  }
 0x4f3   :  { %6833 = vmatprep.subr.bf16.mxu0 %v9360_v60  ;;  %v9433_v59 = vld [vmem:[%s12791_s8 + $0xbd8] ss:$52 sps:$4 sm:$0xff]   ;;  %v9436_v60 = vld [vmem:[%s12791_s8 + $0xbe0] ss:$52 sps:$4 sm:$0xff]  }
 0x4f4   :  { %6743 = vmatmul.mubr.bf16.vlgmr.msra.gmra.mrb[16].mxu1 %v11614_v27 }
 0x4f5   :  { %6825 = vmatmul.mubr.bf16.vlgmr.msra.gmra.mrb[12].mxu0 %v11614_v27  ;;  %6752 = vmatpush1.bf16.msra.mxu1 %v9355_v61  ;;  %v9441_v61 = vld [vmem:[%s12791_s8 + $0xc44] ss:$52 sps:$4 sm:$0xff]  }
 0x4f6   :  { %6783 = vmatprep.mubr.bf16.mxu1 %v11714_v2  ;;  %6834 = vmatpush1.bf16.msra.mxu0 %v9358_v62  ;;  %v9444_v62 = vld [vmem:[%s12791_s8 + $0xc4c] ss:$52 sps:$4 sm:$0xff]  }
 0x4f7   :  { %6865 = vmatprep.mubr.bf16.mxu0 %v11714_v2  ;;  %s8307_s14 = spop %8306  ;;  %6753 = vmatprep.subr.bf16.mxu1 %v9363_v0  ;;  %v9439_v0 = vld [vmem:[%s12791_s8 + $0xc40] ss:$52 sps:$4 sm:$0xff]  }
 0x4f8   :  { %v3609_v7 = vstv %s8307_s14  ;;  %6835 = vmatprep.subr.bf16.mxu0 %v9366_v1  ;;  %v9442_v1 = vld [vmem:[%s12791_s8 + $0xc48] ss:$52 sps:$4 sm:$0xff]  }
 0x4f9   :  { %3611 = vst.msk [vmem:[#allocation2] sm:$0x1] %vm3610_vm3, %v3609_v7  ;;  %6754 = vmatpush1.bf16.msra.mxu1 %v9361_v3  ;;  %v9447_v3 = vld [vmem:[%s12791_s8 + $0xcac] ss:$52 sps:$4 sm:$0xff]   ;;  %v9453_v7 = vld [vmem:[%s12791_s8 + $0x24] ss:$52 sps:$4 sm:$0xff]  }
 0x4fa   :  { %6836 = vmatpush1.bf16.msra.mxu0 %v9364_v4  ;;  %6755 = vmatprep.subr.bf16.mxu1 %v9369_v5  ;;  %v9450_v4 = vld [vmem:[%s12791_s8 + $0xcb4] ss:$52 sps:$4 sm:$0xff]  }
 0x4fb   :  { %6837 = vmatprep.subr.bf16.mxu0 %v9372_v6  ;;  %v9445_v5 = vld [vmem:[%s12791_s8 + $0xca8] ss:$52 sps:$4 sm:$0xff]   ;;  %v9448_v6 = vld [vmem:[%s12791_s8 + $0xcb0] ss:$52 sps:$4 sm:$0xff]  }
 0x4fd   :  { %6756 = vmatpush1.bf16.msra.mxu1 %v9367_v8  ;;  %v9456_v8 = vld [vmem:[%s12791_s8 + $0x2c] ss:$52 sps:$4 sm:$0xff]  }
 0x4fe   :  { %6838 = vmatpush1.bf16.msra.mxu0 %v9370_v10  ;;  %6757 = vmatprep.subr.bf16.mxu1 %v9375_v12  ;;  %v9451_v10 = vld [vmem:[%s12791_s8 + $0x20] ss:$52 sps:$4 sm:$0xff]   ;;  %v9454_v12 = vld [vmem:[%s12791_s8 + $0x28] ss:$52 sps:$4 sm:$0xff]  }
 0x4ff   :  { %6839 = vmatprep.subr.bf16.mxu0 %v9378_v11  ;;  %v9459_v11 = vld [vmem:[%s12791_s8 + $0x8c] ss:$52 sps:$4 sm:$0xff]  }
 0x501   :  { %6758 = vmatpush1.bf16.msra.mxu1 %v9373_v19  ;;  %v9462_v19 = vld [vmem:[%s12791_s8 + $0x94] ss:$52 sps:$4 sm:$0xff]  }
 0x502   :  { %6840 = vmatpush1.bf16.msra.mxu0 %v9376_v20  ;;  %6759 = vmatprep.subr.bf16.mxu1 %v9381_v21  ;;  %v9457_v20 = vld [vmem:[%s12791_s8 + $0x88] ss:$52 sps:$4 sm:$0xff]   ;;  %v9460_v21 = vld [vmem:[%s12791_s8 + $0x90] ss:$52 sps:$4 sm:$0xff]  }
 0x503   :  { %6841 = vmatprep.subr.bf16.mxu0 %v9384_v22  ;;  %v9465_v22 = vld [vmem:[%s12791_s8 + $0xf4] ss:$52 sps:$4 sm:$0xff]  }
 0x505   :  { %6760 = vmatpush1.bf16.msra.mxu1 %v9379_v23  ;;  %v9468_v23 = vld [vmem:[%s12791_s8 + $0xfc] ss:$52 sps:$4 sm:$0xff]  }
 0x506   :  { %6842 = vmatpush1.bf16.msra.mxu0 %v9382_v16  ;;  %6761 = vmatprep.subr.bf16.mxu1 %v9387_v24  ;;  %v9463_v16 = vld [vmem:[%s12791_s8 + $0xf0] ss:$52 sps:$4 sm:$0xff]   ;;  %v9466_v24 = vld [vmem:[%s12791_s8 + $0xf8] ss:$52 sps:$4 sm:$0xff]  }
 0x507   :  { %6843 = vmatprep.subr.bf16.mxu0 %v9390_v18  ;;  %v9471_v18 = vld [vmem:[%s12791_s8 + $0x15c] ss:$52 sps:$4 sm:$0xff]  }
 0x509   :  { %6762 = vmatpush1.bf16.msra.mxu1 %v9385_v26  ;;  %v9474_v26 = vld [vmem:[%s12791_s8 + $0x164] ss:$52 sps:$4 sm:$0xff]  }
 0x50a   :  { %6844 = vmatpush1.bf16.msra.mxu0 %v9388_v28  ;;  %6763 = vmatprep.subr.bf16.mxu1 %v9393_v29  ;;  %v9469_v28 = vld [vmem:[%s12791_s8 + $0x158] ss:$52 sps:$4 sm:$0xff]   ;;  %v9472_v29 = vld [vmem:[%s12791_s8 + $0x160] ss:$52 sps:$4 sm:$0xff]  }
 0x50b   :  { %6845 = vmatprep.subr.bf16.mxu0 %v9396_v31  ;;  %v9477_v31 = vld [vmem:[%s12791_s8 + $0x1c4] ss:$52 sps:$4 sm:$0xff]  }
 0x50d   :  { %6764 = vmatpush1.bf16.msra.mxu1 %v9391_v32  ;;  %v9480_v32 = vld [vmem:[%s12791_s8 + $0x1cc] ss:$52 sps:$4 sm:$0xff]  }
 0x50e   :  { %6846 = vmatpush1.bf16.msra.mxu0 %v9394_v33  ;;  %6765 = vmatprep.subr.bf16.mxu1 %v9399_v34  ;;  %v9475_v33 = vld [vmem:[%s12791_s8 + $0x1c0] ss:$52 sps:$4 sm:$0xff]   ;;  %v9478_v34 = vld [vmem:[%s12791_s8 + $0x1c8] ss:$52 sps:$4 sm:$0xff]  }
 0x50f   :  { %6847 = vmatprep.subr.bf16.mxu0 %v9402_v35  ;;  %v9483_v35 = vld [vmem:[%s12791_s8 + $0x22c] ss:$52 sps:$4 sm:$0xff]  }
 0x511   :  { %6766 = vmatpush1.bf16.msra.mxu1 %v9397_v36  ;;  %v9486_v36 = vld [vmem:[%s12791_s8 + $0x234] ss:$52 sps:$4 sm:$0xff]  }
 0x512   :  { %6848 = vmatpush1.bf16.msra.mxu0 %v9400_v9  ;;  %6767 = vmatprep.subr.bf16.mxu1 %v9405_v37  ;;  %v9481_v9 = vld [vmem:[%s12791_s8 + $0x228] ss:$52 sps:$4 sm:$0xff]   ;;  %v9484_v37 = vld [vmem:[%s12791_s8 + $0x230] ss:$52 sps:$4 sm:$0xff]  }
 0x513   :  { %6849 = vmatprep.subr.bf16.mxu0 %v9408_v38  ;;  %v9489_v38 = vld [vmem:[%s12791_s8 + $0x294] ss:$52 sps:$4 sm:$0xff]  }
 0x515   :  { %6768 = vmatpush1.bf16.msra.mxu1 %v9403_v39  ;;  %v9492_v39 = vld [vmem:[%s12791_s8 + $0x29c] ss:$52 sps:$4 sm:$0xff]  }
 0x516   :  { %6850 = vmatpush1.bf16.msra.mxu0 %v9406_v40  ;;  %6769 = vmatprep.subr.bf16.mxu1 %v9411_v41  ;;  %v9487_v40 = vld [vmem:[%s12791_s8 + $0x290] ss:$52 sps:$4 sm:$0xff]   ;;  %v9490_v41 = vld [vmem:[%s12791_s8 + $0x298] ss:$52 sps:$4 sm:$0xff]  }
 0x517   :  { %6851 = vmatprep.subr.bf16.mxu0 %v9414_v42  ;;  %v9495_v42 = vld [vmem:[%s12791_s8 + $0x2fc] ss:$52 sps:$4 sm:$0xff]  }
 0x519   :  { %6770 = vmatpush1.bf16.msra.mxu1 %v9409_v43  ;;  %v9498_v43 = vld [vmem:[%s12791_s8 + $0x304] ss:$52 sps:$4 sm:$0xff]  }
 0x51a   :  { %6852 = vmatpush1.bf16.msra.mxu0 %v9412_v44  ;;  %6771 = vmatprep.subr.bf16.mxu1 %v9417_v45  ;;  %v9493_v44 = vld [vmem:[%s12791_s8 + $0x2f8] ss:$52 sps:$4 sm:$0xff]   ;;  %v9496_v45 = vld [vmem:[%s12791_s8 + $0x300] ss:$52 sps:$4 sm:$0xff]  }
 0x51b   :  { %6853 = vmatprep.subr.bf16.mxu0 %v9420_v47  ;;  %v9501_v47 = vld [vmem:[%s12791_s8 + $0x364] ss:$52 sps:$4 sm:$0xff]  }
 0x51d   :  { %6772 = vmatpush1.bf16.msra.mxu1 %v9415_v48  ;;  %v9504_v48 = vld [vmem:[%s12791_s8 + $0x36c] ss:$52 sps:$4 sm:$0xff]  }
 0x51e   :  { %6854 = vmatpush1.bf16.msra.mxu0 %v9418_v49  ;;  %6773 = vmatprep.subr.bf16.mxu1 %v9423_v50  ;;  %v9499_v49 = vld [vmem:[%s12791_s8 + $0x360] ss:$52 sps:$4 sm:$0xff]   ;;  %v9502_v50 = vld [vmem:[%s12791_s8 + $0x368] ss:$52 sps:$4 sm:$0xff]  }
 0x51f   :  { %6855 = vmatprep.subr.bf16.mxu0 %v9426_v51  ;;  %v9507_v51 = vld [vmem:[%s12791_s8 + $0x3cc] ss:$52 sps:$4 sm:$0xff]  }
 0x521   :  { %6774 = vmatpush1.bf16.msra.mxu1 %v9421_v52  ;;  %v9510_v52 = vld [vmem:[%s12791_s8 + $0x3d4] ss:$52 sps:$4 sm:$0xff]  }
 0x522   :  { %6856 = vmatpush1.bf16.msra.mxu0 %v9424_v30  ;;  %6775 = vmatprep.subr.bf16.mxu1 %v9429_v53  ;;  %v9505_v30 = vld [vmem:[%s12791_s8 + $0x3c8] ss:$52 sps:$4 sm:$0xff]   ;;  %v9508_v53 = vld [vmem:[%s12791_s8 + $0x3d0] ss:$52 sps:$4 sm:$0xff]  }
 0x523   :  { %6857 = vmatprep.subr.bf16.mxu0 %v9432_v54  ;;  %v9513_v54 = vld [vmem:[%s12791_s8 + $0x434] ss:$52 sps:$4 sm:$0xff]  }
 0x525   :  { %6776 = vmatpush1.bf16.msra.mxu1 %v9427_v55  ;;  %v9516_v55 = vld [vmem:[%s12791_s8 + $0x43c] ss:$52 sps:$4 sm:$0xff]  }
 0x526   :  { %6858 = vmatpush1.bf16.msra.mxu0 %v9430_v56  ;;  %6777 = vmatprep.subr.bf16.mxu1 %v9435_v57  ;;  %v9511_v56 = vld [vmem:[%s12791_s8 + $0x430] ss:$52 sps:$4 sm:$0xff]   ;;  %v9514_v57 = vld [vmem:[%s12791_s8 + $0x438] ss:$52 sps:$4 sm:$0xff]  }
 0x527   :  { %6859 = vmatprep.subr.bf16.mxu0 %v9438_v58  ;;  %v9519_v58 = vld [vmem:[%s12791_s8 + $0x49c] ss:$52 sps:$4 sm:$0xff]  }
 0x529   :  { %6778 = vmatpush1.bf16.msra.mxu1 %v9433_v59  ;;  %v9522_v59 = vld [vmem:[%s12791_s8 + $0x4a4] ss:$52 sps:$4 sm:$0xff]  }
 0x52a   :  { %6860 = vmatpush1.bf16.msra.mxu0 %v9436_v60  ;;  %6779 = vmatprep.subr.bf16.mxu1 %v9441_v61  ;;  %v9517_v60 = vld [vmem:[%s12791_s8 + $0x498] ss:$52 sps:$4 sm:$0xff]   ;;  %v9520_v61 = vld [vmem:[%s12791_s8 + $0x4a0] ss:$52 sps:$4 sm:$0xff]  }
 0x52b   :  { %6861 = vmatprep.subr.bf16.mxu0 %v9444_v62  ;;  %v9525_v62 = vld [vmem:[%s12791_s8 + $0x504] ss:$52 sps:$4 sm:$0xff]  }
 0x52d   :  { %6780 = vmatpush1.bf16.msra.mxu1 %v9439_v0  ;;  %v9528_v0 = vld [vmem:[%s12791_s8 + $0x50c] ss:$52 sps:$4 sm:$0xff]  }
 0x52e   :  { %6862 = vmatpush1.bf16.msra.mxu0 %v9442_v1  ;;  %6781 = vmatprep.subr.bf16.mxu1 %v9447_v3  ;;  %v9523_v1 = vld [vmem:[%s12791_s8 + $0x500] ss:$52 sps:$4 sm:$0xff]   ;;  %v9526_v3 = vld [vmem:[%s12791_s8 + $0x508] ss:$52 sps:$4 sm:$0xff]  }
 0x52f   :  { %6863 = vmatprep.subr.bf16.mxu0 %v9450_v4  ;;  %v9531_v4 = vld [vmem:[%s12791_s8 + $0x56c] ss:$52 sps:$4 sm:$0xff]  }
 0x531   :  { %6782 = vmatpush1.bf16.msra.mxu1 %v9445_v5  ;;  %v9534_v5 = vld [vmem:[%s12791_s8 + $0x574] ss:$52 sps:$4 sm:$0xff]  }
 0x532   :  { %6864 = vmatpush1.bf16.msra.mxu0 %v9448_v6  ;;  %6874 = vmatprep.subr.bf16.mxu1 %v9453_v7  ;;  %v9529_v6 = vld [vmem:[%s12791_s8 + $0x568] ss:$52 sps:$4 sm:$0xff]   ;;  %v9532_v7 = vld [vmem:[%s12791_s8 + $0x570] ss:$52 sps:$4 sm:$0xff]  }
 0x533   :  { %6956 = vmatprep.subr.bf16.mxu0 %v9456_v8  ;;  %v9537_v8 = vld [vmem:[%s12791_s8 + $0x5d4] ss:$52 sps:$4 sm:$0xff]  }
 0x534   :  { %6784 = vmatmul.mubr.bf16.vlgmr.msra.gmra.mrb[16].mxu1 %v11820_v46 }
 0x535   :  { %6866 = vmatmul.mubr.bf16.vlgmr.msra.gmra.mrb[12].mxu0 %v11820_v46  ;;  %6875 = vmatpush1.bf16.msra.mxu1 %v9451_v10  ;;  %v9540_v10 = vld [vmem:[%s12791_s8 + $0x5dc] ss:$52 sps:$4 sm:$0xff]  }
 0x536   :  { %6906 = vmatprep.mubr.bf16.mxu1 %v11606_v25  ;;  %6957 = vmatpush1.bf16.msra.mxu0 %v9454_v12  ;;  %v9535_v12 = vld [vmem:[%s12791_s8 + $0x5d0] ss:$52 sps:$4 sm:$0xff]  }
 0x537   :  { %6988 = vmatprep.mubr.bf16.mxu0 %v11606_v25  ;;  %6876 = vmatprep.subr.bf16.mxu1 %v9459_v11  ;;  %v9538_v11 = vld [vmem:[%s12791_s8 + $0x5d8] ss:$52 sps:$4 sm:$0xff]  }
 0x538   :  { %6958 = vmatprep.subr.bf16.mxu0 %v9462_v19  ;;  %v9543_v19 = vld [vmem:[%s12791_s8 + $0x63c] ss:$52 sps:$4 sm:$0xff]  }
 0x539   :  { %6877 = vmatpush1.bf16.msra.mxu1 %v9457_v20  ;;  %v9546_v20 = vld [vmem:[%s12791_s8 + $0x644] ss:$52 sps:$4 sm:$0xff]  }
 0x53a   :  { %6959 = vmatpush1.bf16.msra.mxu0 %v9460_v21  ;;  %6878 = vmatprep.subr.bf16.mxu1 %v9465_v22  ;;  %v9541_v21 = vld [vmem:[%s12791_s8 + $0x638] ss:$52 sps:$4 sm:$0xff]   ;;  %v9544_v22 = vld [vmem:[%s12791_s8 + $0x640] ss:$52 sps:$4 sm:$0xff]  }
 0x53b   :  { %6960 = vmatprep.subr.bf16.mxu0 %v9468_v23  ;;  %v9549_v23 = vld [vmem:[%s12791_s8 + $0x6a4] ss:$52 sps:$4 sm:$0xff]  }
 0x53d   :  { %6879 = vmatpush1.bf16.msra.mxu1 %v9463_v16  ;;  %v9552_v16 = vld [vmem:[%s12791_s8 + $0x6ac] ss:$52 sps:$4 sm:$0xff]  }
 0x53e   :  { %6961 = vmatpush1.bf16.msra.mxu0 %v9466_v24  ;;  %6880 = vmatprep.subr.bf16.mxu1 %v9471_v18  ;;  %v9547_v24 = vld [vmem:[%s12791_s8 + $0x6a0] ss:$52 sps:$4 sm:$0xff]   ;;  %v9550_v18 = vld [vmem:[%s12791_s8 + $0x6a8] ss:$52 sps:$4 sm:$0xff]  }
 0x53f   :  { %6962 = vmatprep.subr.bf16.mxu0 %v9474_v26  ;;  %v9555_v26 = vld [vmem:[%s12791_s8 + $0x70c] ss:$52 sps:$4 sm:$0xff]  }
 0x541   :  { %6881 = vmatpush1.bf16.msra.mxu1 %v9469_v28  ;;  %v9558_v28 = vld [vmem:[%s12791_s8 + $0x714] ss:$52 sps:$4 sm:$0xff]  }
 0x542   :  { %6963 = vmatpush1.bf16.msra.mxu0 %v9472_v29  ;;  %6882 = vmatprep.subr.bf16.mxu1 %v9477_v31  ;;  %v9553_v29 = vld [vmem:[%s12791_s8 + $0x708] ss:$52 sps:$4 sm:$0xff]   ;;  %v9556_v31 = vld [vmem:[%s12791_s8 + $0x710] ss:$52 sps:$4 sm:$0xff]  }
 0x543   :  { %6964 = vmatprep.subr.bf16.mxu0 %v9480_v32  ;;  %v9561_v32 = vld [vmem:[%s12791_s8 + $0x774] ss:$52 sps:$4 sm:$0xff]  }
 0x545   :  { %6883 = vmatpush1.bf16.msra.mxu1 %v9475_v33  ;;  %v9564_v33 = vld [vmem:[%s12791_s8 + $0x77c] ss:$52 sps:$4 sm:$0xff]  }
 0x546   :  { %6965 = vmatpush1.bf16.msra.mxu0 %v9478_v34  ;;  %6884 = vmatprep.subr.bf16.mxu1 %v9483_v35  ;;  %v9559_v34 = vld [vmem:[%s12791_s8 + $0x770] ss:$52 sps:$4 sm:$0xff]   ;;  %v9562_v35 = vld [vmem:[%s12791_s8 + $0x778] ss:$52 sps:$4 sm:$0xff]  }
 0x547   :  { %6966 = vmatprep.subr.bf16.mxu0 %v9486_v36  ;;  %v9567_v36 = vld [vmem:[%s12791_s8 + $0x7dc] ss:$52 sps:$4 sm:$0xff]  }
 0x549   :  { %6885 = vmatpush1.bf16.msra.mxu1 %v9481_v9  ;;  %v9570_v9 = vld [vmem:[%s12791_s8 + $0x7e4] ss:$52 sps:$4 sm:$0xff]  }
 0x54a   :  { %6967 = vmatpush1.bf16.msra.mxu0 %v9484_v37  ;;  %6886 = vmatprep.subr.bf16.mxu1 %v9489_v38  ;;  %v9565_v37 = vld [vmem:[%s12791_s8 + $0x7d8] ss:$52 sps:$4 sm:$0xff]   ;;  %v9568_v38 = vld [vmem:[%s12791_s8 + $0x7e0] ss:$52 sps:$4 sm:$0xff]  }
 0x54b   :  { %6968 = vmatprep.subr.bf16.mxu0 %v9492_v39  ;;  %v9573_v39 = vld [vmem:[%s12791_s8 + $0x844] ss:$52 sps:$4 sm:$0xff]  }
 0x54d   :  { %6887 = vmatpush1.bf16.msra.mxu1 %v9487_v40  ;;  %v9576_v40 = vld [vmem:[%s12791_s8 + $0x84c] ss:$52 sps:$4 sm:$0xff]  }
 0x54e   :  { %6969 = vmatpush1.bf16.msra.mxu0 %v9490_v41  ;;  %6888 = vmatprep.subr.bf16.mxu1 %v9495_v42  ;;  %v9571_v41 = vld [vmem:[%s12791_s8 + $0x840] ss:$52 sps:$4 sm:$0xff]  }
 0x54f   :  { %6970 = vmatprep.subr.bf16.mxu0 %v9498_v43  ;;  %v12465_v42 = vld [vmem:[%s12792_s9] sm:$0xff]  ;;  %v9574_v43 = vld [vmem:[%s12791_s8 + $0x848] ss:$52 sps:$4 sm:$0xff]  }
 0x551   :  { %6889 = vmatpush1.bf16.msra.mxu1 %v9493_v44  ;;  %v9579_v44 = vld [vmem:[%s12791_s8 + $0x8ac] ss:$52 sps:$4 sm:$0xff]  }
 0x552   :  { %6971 = vmatpush1.bf16.msra.mxu0 %v9496_v45  ;;  %6890 = vmatprep.subr.bf16.mxu1 %v9501_v47  ;;  %v9582_v45 = vld [vmem:[%s12791_s8 + $0x8b4] ss:$52 sps:$4 sm:$0xff]   ;;  %v4372_v47 = vrot.slane %v12465_v42, %v11191_v15 }
 0x553   :  { %6972 = vmatprep.subr.bf16.mxu0 %v9504_v48  ;;  %v4380_v48 = vrot.slane %v12465_v42, %v11288_v63 }
 0x555   :  { %6891 = vmatpush1.bf16.msra.mxu1 %v9499_v49  ;;  %v4376_v49 = vrot.slane %v12465_v42, %v11199_v17 }
 0x556   :  { %6973 = vmatpush1.bf16.msra.mxu0 %v9502_v50  ;;  %6892 = vmatprep.subr.bf16.mxu1 %v9507_v51  ;;  %v4384_v50 = vrot.slane %v12465_v42, %v11202_v14  ;;  %v9577_v51 = vld [vmem:[%s12791_s8 + $0x8a8] ss:$52 sps:$4 sm:$0xff]  }
 0x557   :  { %6974 = vmatprep.subr.bf16.mxu0 %v9510_v52  ;;  %v9580_v52 = vld [vmem:[%s12791_s8 + $0x8b0] ss:$52 sps:$4 sm:$0xff]  }
 0x559   :  { %6893 = vmatpush1.bf16.msra.mxu1 %v9505_v30  ;;  %v9585_v30 = vld [vmem:[%s12791_s8 + $0x914] ss:$52 sps:$4 sm:$0xff]  }
 0x55a   :  { %6975 = vmatpush1.bf16.msra.mxu0 %v9508_v53  ;;  %6894 = vmatprep.subr.bf16.mxu1 %v9513_v54 }
 0x55b   :  { %6976 = vmatprep.subr.bf16.mxu0 %v9516_v55  ;;  %v9588_v55 = vld [vmem:[%s12791_s8 + $0x91c] ss:$52 sps:$4 sm:$0xff]  }
 0x55d   :  { %6895 = vmatpush1.bf16.msra.mxu1 %v9511_v56 }
 0x55e   :  { %6977 = vmatpush1.bf16.msra.mxu0 %v9514_v57  ;;  %6896 = vmatprep.subr.bf16.mxu1 %v9519_v58 }
 0x55f   :  { %6978 = vmatprep.subr.bf16.mxu0 %v9522_v59 }
 0x561   :  { %6897 = vmatpush1.bf16.msra.mxu1 %v9517_v60  ;;  %v9583_v60 = vld [vmem:[%s12791_s8 + $0x910] ss:$52 sps:$4 sm:$0xff]  }
 0x562   :  { %6979 = vmatpush1.bf16.msra.mxu0 %v9520_v61  ;;  %6898 = vmatprep.subr.bf16.mxu1 %v9525_v62 }
 0x563   :  { %6980 = vmatprep.subr.bf16.mxu0 %v9528_v0 }
 0x565   :  { %6899 = vmatpush1.bf16.msra.mxu1 %v9523_v1 }
 0x566   :  { %6981 = vmatpush1.bf16.msra.mxu0 %v9526_v3  ;;  %6900 = vmatprep.subr.bf16.mxu1 %v9531_v4  ;;  %v9586_v3 = vld [vmem:[%s12791_s8 + $0x918] ss:$52 sps:$4 sm:$0xff]   ;;  %v9591_v4 = vld [vmem:[%s12791_s8 + $0x97c] ss:$52 sps:$4 sm:$0xff]  }
 0x567   :  { %6982 = vmatprep.subr.bf16.mxu0 %v9534_v5 }
 0x569   :  { %6901 = vmatpush1.bf16.msra.mxu1 %v9529_v6 }
 0x56a   :  { %6983 = vmatpush1.bf16.msra.mxu0 %v9532_v7  ;;  %6902 = vmatprep.subr.bf16.mxu1 %v9537_v8 }
 0x56b   :  { %6984 = vmatprep.subr.bf16.mxu0 %v9540_v10 }
 0x56d   :  { %6903 = vmatpush1.bf16.msra.mxu1 %v9535_v12 }
 0x56e   :  { %6985 = vmatpush1.bf16.msra.mxu0 %v9538_v11  ;;  %6904 = vmatprep.subr.bf16.mxu1 %v9543_v19  ;;  %v9594_v11 = vld [vmem:[%s12791_s8 + $0x984] ss:$52 sps:$4 sm:$0xff]  }
 0x56f   :  { %6986 = vmatprep.subr.bf16.mxu0 %v9546_v20  ;;  %v9589_v19 = vld [vmem:[%s12791_s8 + $0x978] ss:$52 sps:$4 sm:$0xff]   ;;  %v9592_v20 = vld [vmem:[%s12791_s8 + $0x980] ss:$52 sps:$4 sm:$0xff]  }
 0x571   :  { %6905 = vmatpush1.bf16.msra.mxu1 %v9541_v21  ;;  %v9597_v21 = vld [vmem:[%s12791_s8 + $0x9e4] ss:$52 sps:$4 sm:$0xff]  }
 0x572   :  { %6987 = vmatpush1.bf16.msra.mxu0 %v9544_v22  ;;  %6915 = vmatprep.subr.bf16.mxu1 %v9549_v23  ;;  %v9600_v22 = vld [vmem:[%s12791_s8 + $0x9ec] ss:$52 sps:$4 sm:$0xff]  }
 0x573   :  { %6997 = vmatprep.subr.bf16.mxu0 %v9552_v16  ;;  %v9595_v23 = vld [vmem:[%s12791_s8 + $0x9e0] ss:$52 sps:$4 sm:$0xff]   ;;  %v9598_v16 = vld [vmem:[%s12791_s8 + $0x9e8] ss:$52 sps:$4 sm:$0xff]  }
 0x574   :  { %6907 = vmatmul.mubr.bf16.vlgmr.msra.gmra.mrb[20].mxu1 %v11614_v27 }
 0x575   :  { %6989 = vmatmul.mubr.bf16.vlgmr.msra.gmra.mrb[16].mxu0 %v11614_v27  ;;  %6916 = vmatpush1.bf16.msra.mxu1 %v9547_v24  ;;  %v9603_v24 = vld [vmem:[%s12791_s8 + $0xa4c] ss:$52 sps:$4 sm:$0xff]  }
 0x576   :  { %6947 = vmatprep.mubr.bf16.mxu1 %v11714_v2  ;;  %6998 = vmatpush1.bf16.msra.mxu0 %v9550_v18  ;;  %v9606_v18 = vld [vmem:[%s12791_s8 + $0xa54] ss:$52 sps:$4 sm:$0xff]  }
 0x577   :  { %7029 = vmatprep.mubr.bf16.mxu0 %v11714_v2  ;;  %6917 = vmatprep.subr.bf16.mxu1 %v9555_v26  ;;  %v9601_v26 = vld [vmem:[%s12791_s8 + $0xa48] ss:$52 sps:$4 sm:$0xff]  }
 0x578   :  { %6999 = vmatprep.subr.bf16.mxu0 %v9558_v28 }
 0x579   :  { %6918 = vmatpush1.bf16.msra.mxu1 %v9553_v29  ;;  %v9604_v29 = vld [vmem:[%s12791_s8 + $0xa50] ss:$52 sps:$4 sm:$0xff]  }
 0x57a   :  { %7000 = vmatpush1.bf16.msra.mxu0 %v9556_v31  ;;  %6919 = vmatprep.subr.bf16.mxu1 %v9561_v32  ;;  %v9609_v31 = vld [vmem:[%s12791_s8 + $0xab4] ss:$52 sps:$4 sm:$0xff]  }
 0x57b   :  { %7001 = vmatprep.subr.bf16.mxu0 %v9564_v33 }
 0x57d   :  { %6920 = vmatpush1.bf16.msra.mxu1 %v9559_v34  ;;  %v9612_v34 = vld [vmem:[%s12791_s8 + $0xabc] ss:$52 sps:$4 sm:$0xff]  }
 0x57e   :  { %7002 = vmatpush1.bf16.msra.mxu0 %v9562_v35  ;;  %6921 = vmatprep.subr.bf16.mxu1 %v9567_v36 }
 0x57f   :  { %7003 = vmatprep.subr.bf16.mxu0 %v9570_v9 }
 0x581   :  { %6922 = vmatpush1.bf16.msra.mxu1 %v9565_v37 }
 0x582   :  { %7004 = vmatpush1.bf16.msra.mxu0 %v9568_v38  ;;  %6923 = vmatprep.subr.bf16.mxu1 %v9573_v39  ;;  %v9607_v38 = vld [vmem:[%s12791_s8 + $0xab0] ss:$52 sps:$4 sm:$0xff]  }
 0x583   :  { %7005 = vmatprep.subr.bf16.mxu0 %v9576_v40  ;;  %v9610_v40 = vld [vmem:[%s12791_s8 + $0xab8] ss:$52 sps:$4 sm:$0xff]  }
 0x585   :  { %6924 = vmatpush1.bf16.msra.mxu1 %v9571_v41  ;;  %v9615_v41 = vld [vmem:[%s12791_s8 + $0xb1c] ss:$52 sps:$4 sm:$0xff]  }
 0x586   :  { %7006 = vmatpush1.bf16.msra.mxu0 %v9574_v43  ;;  %6925 = vmatprep.subr.bf16.mxu1 %v9579_v44  ;;  %v9618_v43 = vld [vmem:[%s12791_s8 + $0xb24] ss:$52 sps:$4 sm:$0xff]  }
 0x587   :  { %v6621_v53 = vpop.f32.mrb[12].mxu1  ;;  %v6703_v54 = vpop.f32.mrb[8].mxu0  ;;  %7007 = vmatprep.subr.bf16.mxu0 %v9582_v45  ;;  %v9613_v44 = vld [vmem:[%s12791_s8 + $0xb18] ss:$52 sps:$4 sm:$0xff]   ;;  %v9616_v45 = vld [vmem:[%s12791_s8 + $0xb20] ss:$52 sps:$4 sm:$0xff]  }
 0x588   :  { %v8218_v56 = vadd.f32 %v6621_v53, %v4372_v47  ;;  %v8220_v57 = vadd.f32 %v6703_v54, %v4380_v48  ;;  %v6623_v58 = vpop.f32.mrb[13].mxu1  ;;  %v6705_v59 = vpop.f32.mrb[9].mxu0  ;;  %v9621_v47 = vld [vmem:[%s12791_s8 + $0xb84] ss:$52 sps:$4 sm:$0xff]   ;;  %v9624_v48 = vld [vmem:[%s12791_s8 + $0xb8c] ss:$52 sps:$4 sm:$0xff]  }
 0x589   :  { %v8219_v61 = vadd.f32 %v6623_v58, %v4376_v49  ;;  %v8221_v62 = vadd.f32 %v6705_v59, %v4384_v50  ;;  %v6625_v0 = vpop.f32.mrb[14].mxu1  ;;  %v6707_v1 = vpop.f32.mrb[10].mxu0  ;;  %6926 = vmatpush1.bf16.msra.mxu1 %v9577_v51  ;;  %v9619_v49 = vld [vmem:[%s12791_s8 + $0xb80] ss:$52 sps:$4 sm:$0xff]   ;;  %v9622_v50 = vld [vmem:[%s12791_s8 + $0xb88] ss:$52 sps:$4 sm:$0xff]  }
 0x58a   :  { %v8155_v5 = vmul.f32 -1.442695, %v8218_v56  ;;  %v8157_v6 = vmul.f32 -1.442695, %v8220_v57  ;;  %7008 = vmatpush1.bf16.msra.mxu0 %v9580_v52  ;;  %v6626_v7 = vpop.f32.mrb[15].mxu1  ;;  %v6708_v8 = vpop.f32.mrb[11].mxu0  ;;  %6927 = vmatprep.subr.bf16.mxu1 %v9585_v30 }
 0x58b   :  { %v8156_v10 = vmul.f32 -1.442695, %v8219_v61  ;;  %v8158_v12 = vmul.f32 -1.442695, %v8221_v62  ;;  %7009 = vmatprep.subr.bf16.mxu0 %v9588_v55  ;;  %v9627_v51 = vld [vmem:[%s12791_s8 + $0xbec] ss:$52 sps:$4 sm:$0xff]  }
 0x58c   :  { %9677 = vpow2.f32 %v8155_v5  ;;  %v9630_v30 = vld [vmem:[%s12791_s8 + $0xbf4] ss:$52 sps:$4 sm:$0xff]   ;;  %v9628_v57 = vld [vmem:[%s12791_s8 + $0xbf0] ss:$52 sps:$4 sm:$0xff]   ;;  %v9634_v61 = vld [vmem:[%s12791_s8 + $0xc58] ss:$52 sps:$4 sm:$0xff]  }
 0x58d   :  { %9679 = vpow2.f32 %v8157_v6  ;;  %6928 = vmatpush1.bf16.msra.mxu1 %v9583_v60  ;;  %v9625_v55 = vld [vmem:[%s12791_s8 + $0xbe8] ss:$52 sps:$4 sm:$0xff]   ;;  %v9631_v60 = vld [vmem:[%s12791_s8 + $0xc50] ss:$52 sps:$4 sm:$0xff]   ;;  %v9637_v1 = vld [vmem:[%s12791_s8 + $0xcb8] ss:$52 sps:$4 sm:$0xff]  }
 0x58e   :  { %9681 = vpow2.f32 %v8156_v10  ;;  %7010 = vmatpush1.bf16.msra.mxu0 %v9586_v3  ;;  %6929 = vmatprep.subr.bf16.mxu1 %v9591_v4  ;;  %v9633_v58 = vld [vmem:[%s12791_s8 + $0xc54] ss:$52 sps:$4 sm:$0xff]   ;;  %v9636_v59 = vld [vmem:[%s12791_s8 + $0xc5c] ss:$52 sps:$4 sm:$0xff]   ;;  %v9642_v0 = vld [vmem:[%s12791_s8 + $0xcc4] ss:$52 sps:$4 sm:$0xff]  }
 0x58f   :  { %9683 = vpow2.f32 %v8158_v12  ;;  %7011 = vmatprep.subr.bf16.mxu0 %v9594_v11  ;;  %v9639_v62 = vld [vmem:[%s12791_s8 + $0xcbc] ss:$52 sps:$4 sm:$0xff]   ;;  %v9640_v3 = vld [vmem:[%s12791_s8 + $0xcc0] ss:$52 sps:$4 sm:$0xff]   ;;  %v9645_v6 = vld [vmem:[%s12791_s8 + $0x3d8] ss:$52 sps:$4 sm:$0xff]  }
 0x590   :  { %v9643_v4 = vld [vmem:[%s12791_s8 + $0x370] ss:$52 sps:$4 sm:$0xff]   ;;  %v9646_v7 = vld [vmem:[%s12791_s8 + $0x98] ss:$52 sps:$4 sm:$0xff]   ;;  %v9647_v8 = vld [vmem:[%s12791_s8 + $0x440] ss:$52 sps:$4 sm:$0xff]  }
 0x591   :  { %6930 = vmatpush1.bf16.msra.mxu1 %v9589_v19  ;;  %v9644_v5 = vld [vmem:[%s12791_s8 + $0x30] ss:$52 sps:$4 sm:$0xff]   ;;  %v9648_v10 = vld [vmem:[%s12791_s8 + $0x100] ss:$52 sps:$4 sm:$0xff]   ;;  %v9649_v12 = vld [vmem:[%s12791_s8 + $0x4a8] ss:$52 sps:$4 sm:$0xff]  }
 0x592   :  { %7012 = vmatpush1.bf16.msra.mxu0 %v9592_v20  ;;  %6931 = vmatprep.subr.bf16.mxu1 %v9597_v21  ;;  %v9651_v11 = vld [vmem:[%s12791_s8 + $0x510] ss:$52 sps:$4 sm:$0xff]   ;;  %v9653_v20 = vld [vmem:[%s12791_s8 + $0x578] ss:$52 sps:$4 sm:$0xff]  }
 0x593   :  { %7013 = vmatprep.subr.bf16.mxu0 %v9600_v22  ;;  %v9652_v19 = vld [vmem:[%s12791_s8 + $0x1d0] ss:$52 sps:$4 sm:$0xff]   ;;  %v9654_v21 = vld [vmem:[%s12791_s8 + $0x238] ss:$52 sps:$4 sm:$0xff]   ;;  %v9655_v22 = vld [vmem:[%s12791_s8 + $0x5e0] ss:$52 sps:$4 sm:$0xff]  }
 0x595   :  { %6932 = vmatpush1.bf16.msra.mxu1 %v9595_v23  ;;  %v9656_v23 = vld [vmem:[%s12791_s8 + $0x2a0] ss:$52 sps:$4 sm:$0xff]  }
 0x596   :  { %v9678_v28 = vpop.eup %9677  ;;  %7014 = vmatpush1.bf16.msra.mxu0 %v9598_v16  ;;  %6933 = vmatprep.subr.bf16.mxu1 %v9603_v24  ;;  %v9657_v16 = vld [vmem:[%s12791_s8 + $0x648] ss:$52 sps:$4 sm:$0xff]  }
 0x597   :  { %v9680_v32 = vpop.eup %9679  ;;  %v7157_v33 = vadd.f32 1.0, %v9678_v28  ;;  %7015 = vmatprep.subr.bf16.mxu0 %v9606_v18  ;;  %v9658_v24 = vld [vmem:[%s12791_s8 + $0x308] ss:$52 sps:$4 sm:$0xff]   ;;  %v9659_v18 = vld [vmem:[%s12791_s8 + $0x9f0] ss:$52 sps:$4 sm:$0xff]  }
 0x598   :  { %v9682_v35 = vpop.eup %9681  ;;  %v7159_v36 = vadd.f32 1.0, %v9680_v32  ;;  %v9661_v28 = vld [vmem:[%s12791_s8 + $0xa58] ss:$52 sps:$4 sm:$0xff]   ;;  %v9664_v32 = vld [vmem:[%s12791_s8 + $0x780] ss:$52 sps:$4 sm:$0xff]  }
 0x599   :  { %v9684_v9 = vpop.eup %9683  ;;  %9685 = vrcp.f32 %v7157_v33  ;;  %v7158_v37 = vadd.f32 1.0, %v9682_v35  ;;  %6934 = vmatpush1.bf16.msra.mxu1 %v9601_v26  ;;  %v9660_v26 = vld [vmem:[%s12791_s8 + $0x6b0] ss:$52 sps:$4 sm:$0xff]   ;;  %v9669_v35 = vld [vmem:[%s12791_s8 + $0xbf8] ss:$52 sps:$4 sm:$0xff]  }
 0x59a   :  { %9687 = vrcp.f32 %v7159_v36  ;;  %v7160_v39 = vadd.f32 1.0, %v9684_v9  ;;  %7016 = vmatpush1.bf16.msra.mxu0 %v9604_v29  ;;  %6935 = vmatprep.subr.bf16.mxu1 %v9609_v31  ;;  %v9662_v29 = vld [vmem:[%s12791_s8 + $0x718] ss:$52 sps:$4 sm:$0xff]   ;;  %v9663_v31 = vld [vmem:[%s12791_s8 + $0xac0] ss:$52 sps:$4 sm:$0xff]  }
 0x59b   :  { %9689 = vrcp.f32 %v7158_v37  ;;  %7017 = vmatprep.subr.bf16.mxu0 %v9612_v34  ;;  %v9667_v33 = vld [vmem:[%s12791_s8 + $0xb90] ss:$52 sps:$4 sm:$0xff]   ;;  %v9670_v36 = vld [vmem:[%s12791_s8 + $0x8b8] ss:$52 sps:$4 sm:$0xff]   ;;  %v9671_v9 = vld [vmem:[%s12791_s8 + $0xc60] ss:$52 sps:$4 sm:$0xff]  }
 0x59c   :  { %9691 = vrcp.f32 %v7160_v39  ;;  %v9668_v34 = vld [vmem:[%s12791_s8 + $0x850] ss:$52 sps:$4 sm:$0xff]   ;;  %v9672_v37 = vld [vmem:[%s12791_s8 + $0x920] ss:$52 sps:$4 sm:$0xff]   ;;  %v9674_v39 = vld [vmem:[%s12791_s8 + $0x988] ss:$52 sps:$4 sm:$0xff]  }
 0x59d   :  { %6936 = vmatpush1.bf16.msra.mxu1 %v9607_v38  ;;  %v9673_v38 = vld [vmem:[%s12791_s8 + $0xcc8] ss:$52 sps:$4 sm:$0xff]  }
 0x59e   :  { %7018 = vmatpush1.bf16.msra.mxu0 %v9610_v40  ;;  %6937 = vmatprep.subr.bf16.mxu1 %v9615_v41  ;;  %v4387_v40 = vsub.s32 4, %v11188_v13  ;;  %v4395_v41 = vsub.s32 6, %v11188_v13 }
 0x59f   :  { %7019 = vmatprep.subr.bf16.mxu0 %v9618_v43  ;;  %v4391_v43 = vsub.s32 5, %v11188_v13 }
 0x5a1   :  { %6938 = vmatpush1.bf16.msra.mxu1 %v9613_v44  ;;  %v4399_v44 = vsub.s32 7, %v11188_v13 }
 0x5a2   :  { %7020 = vmatpush1.bf16.msra.mxu0 %v9616_v45  ;;  %6939 = vmatprep.subr.bf16.mxu1 %v9621_v47  ;;  %v4388_v45 = vrot.slane %v12465_v42, %v4387_v40  ;;  %v4396_v47 = vrot.slane %v12465_v42, %v4395_v41 }
 0x5a3   :  { %v9686_v52 = vpop.eup %9685  ;;  %7021 = vmatprep.subr.bf16.mxu0 %v9624_v48  ;;  %v4392_v48 = vrot.slane %v12465_v42, %v4391_v43 }
 0x5a4   :  { %v9688_v53 = vpop.eup %9687  ;;  %7196 = vst [vmem:[%s12793_s10] sm:$0xff] %v9686_v52 }
 0x5a5   :  { %v9690_v54 = vpop.eup %9689  ;;  %7198 = vst [vmem:[%s12793_s10 + $0x10] sm:$0xff] %v9688_v53  ;;  %6940 = vmatpush1.bf16.msra.mxu1 %v9619_v49  ;;  %v4400_v49 = vrot.slane %v12465_v42, %v4399_v44 }
 0x5a6   :  { %v9692_v56 = vpop.eup %9691  ;;  %7197 = vst [vmem:[%s12793_s10 + $0x8] sm:$0xff] %v9690_v54  ;;  %7022 = vmatpush1.bf16.msra.mxu0 %v9622_v50  ;;  %6941 = vmatprep.subr.bf16.mxu1 %v9627_v51 }
 0x5a7   :  { %7199 = vst [vmem:[%s12793_s10 + $0x18] sm:$0xff] %v9692_v56  ;;  %7023 = vmatprep.subr.bf16.mxu0 %v9630_v30 }
 0x5a9   :  { %6942 = vmatpush1.bf16.msra.mxu1 %v9625_v55 }
 0x5aa   :  { %7024 = vmatpush1.bf16.msra.mxu0 %v9628_v57  ;;  %6943 = vmatprep.subr.bf16.mxu1 %v9633_v58 }
 0x5ab   :  { %7025 = vmatprep.subr.bf16.mxu0 %v9636_v59 }
 0x5ad   :  { %6944 = vmatpush1.bf16.msra.mxu1 %v9631_v60 }
 0x5ae   :  { %7026 = vmatpush1.bf16.msra.mxu0 %v9634_v61  ;;  %6945 = vmatprep.subr.bf16.mxu1 %v9639_v62 }
 0x5af   :  { %7027 = vmatprep.subr.bf16.mxu0 %v9642_v0 }
 0x5b1   :  { %6946 = vmatpush1.bf16.msra.mxu1 %v9637_v1 }
 0x5b2   :  { %7028 = vmatpush1.bf16.msra.mxu0 %v9640_v3  ;;  %8168 = vmatprep.subr.bf16.mxu1 %v9643_v4 }
 0x5b4   :  { %6948 = vmatmul.mubr.bf16.vlgmr.msra.gmra.mrb[20].mxu1 %v11820_v46 }
 0x5b5   :  { %7030 = vmatmul.mubr.bf16.vlgmr.msra.gmra.mrb[16].mxu0 %v11820_v46  ;;  %8169 = vmatpush3.bf16.msra.mxu1 %v9644_v5 }
 0x5b6   :  { %7070 = vmatprep.mubr.bf16.mxu1 %v11606_v25  ;;  %8170 = vmatprep.subr.bf16.mxu1 %v9645_v6  ;;  %v9650_v25 = vld [vmem:[%s12791_s8 + $0x168] ss:$52 sps:$4 sm:$0xff]  }
 0x5b9   :  { %8171 = vmatpush3.bf16.msra.mxu1 %v9646_v7 }
 0x5ba   :  { %8172 = vmatprep.subr.bf16.mxu1 %v9647_v8 }
 0x5bd   :  { %8173 = vmatpush3.bf16.msra.mxu1 %v9648_v10 }
 0x5be   :  { %8174 = vmatprep.subr.bf16.mxu1 %v9649_v12 }
 0x5c1   :  { %8175 = vmatpush3.bf16.msra.mxu1 %v9650_v25 }
 0x5c2   :  { %8176 = vmatprep.subr.bf16.mxu1 %v9651_v11 }
 0x5c5   :  { %8177 = vmatpush3.bf16.msra.mxu1 %v9652_v19 }
 0x5c6   :  { %8178 = vmatprep.subr.bf16.mxu1 %v9653_v20 }
 0x5c9   :  { %8179 = vmatpush3.bf16.msra.mxu1 %v9654_v21 }
 0x5ca   :  { %8180 = vmatprep.subr.bf16.mxu1 %v9655_v22 }
 0x5cd   :  { %8181 = vmatpush3.bf16.msra.mxu1 %v9656_v23 }
 0x5ce   :  { %8182 = vmatprep.subr.bf16.mxu1 %v9657_v16 }
 0x5d1   :  { %8183 = vmatpush3.bf16.msra.mxu1 %v9658_v24 }
 0x5d2   :  { %8190 = vmatprep.subr.bf16.mxu1 %v9659_v18 }
 0x5d4   :  { %7071 = vmatmul.mubr.bf16.vlgmr.msra.gmra.mrb[24].mxu1 %v11614_v27  ;;  %v9665_v27 = vld [vmem:[%s12791_s8 + $0xb28] ss:$52 sps:$4 sm:$0xff]  }
 0x5d5   :  { %8191 = vmatpush3.bf16.msra.mxu1 %v9660_v26  ;;  %7110 = vmatprep.mubr.bf16.mxu1 %v11714_v2  ;;  %v9666_v2 = vld [vmem:[%s12791_s8 + $0x7e8] ss:$52 sps:$4 sm:$0xff]  }
 0x5d6   :  { %8192 = vmatprep.subr.bf16.mxu1 %v9661_v28 }
 0x5d9   :  { %8193 = vmatpush3.bf16.msra.mxu1 %v9662_v29 }
 0x5da   :  { %8194 = vmatprep.subr.bf16.mxu1 %v9663_v31 }
 0x5dd   :  { %8195 = vmatpush3.bf16.msra.mxu1 %v9664_v32 }
 0x5de   :  { %8196 = vmatprep.subr.bf16.mxu1 %v9665_v27 }
 0x5e1   :  { %8197 = vmatpush3.bf16.msra.mxu1 %v9666_v2 }
 0x5e2   :  { %8198 = vmatprep.subr.bf16.mxu1 %v9667_v33 }
 0x5e5   :  { %8199 = vmatpush3.bf16.msra.mxu1 %v9668_v34 }
 0x5e6   :  { %8200 = vmatprep.subr.bf16.mxu1 %v9669_v35 }
 0x5e9   :  { %8201 = vmatpush3.bf16.msra.mxu1 %v9670_v36 }
 0x5ea   :  { %8202 = vmatprep.subr.bf16.mxu1 %v9671_v9 }
 0x5ed   :  { %8203 = vmatpush3.bf16.msra.mxu1 %v9672_v37 }
 0x5ee   :  { %8204 = vmatprep.subr.bf16.mxu1 %v9673_v38 }
 0x5f1   :  { %8205 = vmatpush3.bf16.msra.mxu1 %v9674_v39 }
 0x5f4   :  { %7111 = vmatmul.mubr.bf16.vlgmr.msra.gmra.mrb[28].mxu1 %v11820_v46 }
 0x607   :  { %v6785_v50 = vpop.f32.mrb[16].mxu1 }
 0x608   :  { %v8222_v46 = vadd.f32 %v6785_v50, %v4388_v45  ;;  %v6867_v51 = vpop.f32.mrb[12].mxu0  ;;  %v6787_v52 = vpop.f32.mrb[17].mxu1 }
 0x609   :  { %v8224_v30 = vadd.f32 %v6867_v51, %v4396_v47  ;;  %v8223_v53 = vadd.f32 %v6787_v52, %v4392_v48  ;;  %v6869_v54 = vpop.f32.mrb[13].mxu0  ;;  %v6789_v55 = vpop.f32.mrb[18].mxu1 }
 0x60a   :  { %v8159_v56 = vmul.f32 -1.442695, %v8222_v46  ;;  %v8225_v57 = vadd.f32 %v6869_v54, %v4400_v49  ;;  %v6871_v58 = vpop.f32.mrb[14].mxu0  ;;  %v6790_v59 = vpop.f32.mrb[19].mxu1 }
 0x60b   :  { %v8161_v60 = vmul.f32 -1.442695, %v8224_v30  ;;  %v8160_v61 = vmul.f32 -1.442695, %v8223_v53  ;;  %v6872_v62 = vpop.f32.mrb[15].mxu0 }
 0x60c   :  { %9693 = vpow2.f32 %v8159_v56  ;;  %v8162_v0 = vmul.f32 -1.442695, %v8225_v57 }
 0x60d   :  { %9695 = vpow2.f32 %v8161_v60 }
 0x60e   :  { %9697 = vpow2.f32 %v8160_v61 }
 0x60f   :  { %9699 = vpow2.f32 %v8162_v0 }
 0x616   :  { %v9694_v42 = vpop.eup %9693 }
 0x617   :  { %v9696_v1 = vpop.eup %9695  ;;  %v7161_v3 = vadd.f32 1.0, %v9694_v42 }
 0x618   :  { %v9698_v4 = vpop.eup %9697  ;;  %v7163_v5 = vadd.f32 1.0, %v9696_v1 }
 0x619   :  { %v9700_v6 = vpop.eup %9699  ;;  %9701 = vrcp.f32 %v7161_v3  ;;  %v7162_v7 = vadd.f32 1.0, %v9698_v4 }
 0x61a   :  { %9703 = vrcp.f32 %v7163_v5  ;;  %v7164_v8 = vadd.f32 1.0, %v9700_v6 }
 0x61b   :  { %9705 = vrcp.f32 %v7162_v7 }
 0x61c   :  { %9707 = vrcp.f32 %v7164_v8 }
 0x623   :  { %v9702_v10 = vpop.eup %9701 }
 0x624   :  { %v9704_v12 = vpop.eup %9703  ;;  %7200 = vst [vmem:[%s12793_s10 + $0x20] sm:$0xff] %v9702_v10 }
 0x625   :  { %v9706_v25 = vpop.eup %9705  ;;  %7202 = vst [vmem:[%s12793_s10 + $0x30] sm:$0xff] %v9704_v12 }
 0x626   :  { %v9708_v11 = vpop.eup %9707  ;;  %7201 = vst [vmem:[%s12793_s10 + $0x28] sm:$0xff] %v9706_v25 }
 0x627   :  { %7203 = vst [vmem:[%s12793_s10 + $0x38] sm:$0xff] %v9708_v11 }
 0x628   :  { %9740 = shalt.err (!%p9737_p4)
}
 0x629   :  { %s9741_s1 = scalar_lea.hbm %s12794_s11, 16 }
 0x62a   :  { %p9742_p5 = scmp.ne.s32.totalorder %s12794_s11, %s9741_s1  ;;  %p9745_p6 = scmp.lt.u32.totalorder %s9741_s1, %s12794_s11 }
 0x62c   :  { %p9747_p7 = pnand %p9745_p6, %p9742_p5 }
 0x62e   :  { %9750 = shalt.err (!%p9747_p7)
}
 0x62f   :  { %7220 = dma.vmem_to_hbm [thread:$0]  %s7218_s27, 16, %s12794_s11, [#allocation3]   ;;  %v4366_v19 = vld [vmem:[%s12792_s9 + $0x8] sm:$0x1f] }
 0x630   :  { %v4404_v20 = vrot.slane %v4366_v19, %v11191_v15  ;;  %v4412_v21 = vrot.slane %v4366_v19, %v11288_v63  ;;  %v4408_v22 = vrot.slane %v4366_v19, %v11199_v17  ;;  %v4416_v23 = vrot.slane %v4366_v19, %v11202_v14 }
 0x631   :  { %v4420_v30 = vrot.slane %v4366_v19, %v4387_v40 }
 0x687   :  { %v6949_v16 = vpop.f32.mrb[20].mxu1 }
 0x688   :  { %v8226_v24 = vadd.f32 %v6949_v16, %v4404_v20  ;;  %v7031_v18 = vpop.f32.mrb[16].mxu0  ;;  %v6951_v26 = vpop.f32.mrb[21].mxu1 }
 0x689   :  { %v8228_v28 = vadd.f32 %v7031_v18, %v4412_v21  ;;  %v8227_v29 = vadd.f32 %v6951_v26, %v4408_v22  ;;  %v7033_v31 = vpop.f32.mrb[17].mxu0  ;;  %v6953_v32 = vpop.f32.mrb[22].mxu1 }
 0x68a   :  { %v8163_v27 = vmul.f32 -1.442695, %v8226_v24  ;;  %v8229_v2 = vadd.f32 %v7033_v31, %v4416_v23  ;;  %v7035_v33 = vpop.f32.mrb[18].mxu0  ;;  %v6954_v34 = vpop.f32.mrb[23].mxu1 }
 0x68b   :  { %v8165_v35 = vmul.f32 -1.442695, %v8228_v28  ;;  %v8164_v15 = vmul.f32 -1.442695, %v8227_v29  ;;  %v7036_v36 = vpop.f32.mrb[19].mxu0 }
 0x68c   :  { %9709 = vpow2.f32 %v8163_v27  ;;  %v8166_v63 = vmul.f32 -1.442695, %v8229_v2 }
 0x68d   :  { %9711 = vpow2.f32 %v8165_v35 }
 0x68e   :  { %9713 = vpow2.f32 %v8164_v15 }
 0x68f   :  { %9715 = vpow2.f32 %v8166_v63 }
 0x696   :  { %v9710_v17 = vpop.eup %9709 }
 0x697   :  { %v9712_v14 = vpop.eup %9711  ;;  %v7165_v9 = vadd.f32 1.0, %v9710_v17 }
 0x698   :  { %v9714_v37 = vpop.eup %9713  ;;  %v7167_v38 = vadd.f32 1.0, %v9712_v14 }
 0x699   :  { %v9716_v39 = vpop.eup %9715  ;;  %9717 = vrcp.f32 %v7165_v9  ;;  %v7166_v41 = vadd.f32 1.0, %v9714_v37 }
 0x69a   :  { %9719 = vrcp.f32 %v7167_v38  ;;  %v7168_v43 = vadd.f32 1.0, %v9716_v39 }
 0x69b   :  { %9721 = vrcp.f32 %v7166_v41 }
 0x69c   :  { %9723 = vrcp.f32 %v7168_v43 }
 0x6a3   :  { %v9718_v44 = vpop.eup %9717 }
 0x6a4   :  { %v9720_v45 = vpop.eup %9719  ;;  %7204 = vst [vmem:[%s12793_s10 + $0x40] sm:$0xff] %v9718_v44 }
 0x6a5   :  { %v9722_v47 = vpop.eup %9721  ;;  %7206 = vst [vmem:[%s12793_s10 + $0x50] sm:$0xff] %v9720_v45 }
 0x6a6   :  { %v9724_v48 = vpop.eup %9723  ;;  %7205 = vst [vmem:[%s12793_s10 + $0x48] sm:$0xff] %v9722_v47 }
 0x6a7   :  { %7207 = vst [vmem:[%s12793_s10 + $0x58] sm:$0xff] %v9724_v48  ;;  %v8184_v49 = vpop.f32.mrb[24].mxu1 }
 0x6a8   :  { %v8185_v50 = vpop.f32.mrb[25].mxu1 }
 0x6a9   :  { %v8186_v46 = vadd.f32 %v8185_v50, %v8184_v49  ;;  %v8187_v51 = vpop.f32.mrb[26].mxu1 }
 0x6aa   :  { %v8188_v52 = vpop.f32.mrb[27].mxu1 }
 0x6ab   :  { %v7073_v55 = vadd.f32 %v8186_v46, %v4420_v30 }
 0x6c7   :  { %v8206_v53 = vpop.f32.mrb[28].mxu1 }
 0x6c8   :  { %v8207_v54 = vpop.f32.mrb[29].mxu1 }
 0x6c9   :  { %v8208_v56 = vadd.f32 %v8207_v54, %v8206_v53  ;;  %v8209_v57 = vpop.f32.mrb[30].mxu1 }
 0x6ca   :  { %v8210_v58 = vpop.f32.mrb[31].mxu1 }
 0x6cb   :  { %v7113_v59 = vadd.f32 %v8208_v56, %v7073_v55 }
 0x6cd   :  { %v8167_v60 = vmul.f32 -1.442695, %v7113_v59 }
 0x6cf   :  { %9725 = vpow2.f32 %v8167_v60 }
 0x6d9   :  { %v9726_v61 = vpop.eup %9725 }
 0x6da   :  { %v7169_v62 = vadd.f32 1.0, %v9726_v61 }
 0x6dc   :  { %9727 = vrcp.f32 %v7169_v62 }
 0x6e6   :  { %v9728_v0 = vpop.eup %9727 }
 0x6e7   :  { %7208 = vst.msk [vmem:[%s12793_s10 + $0x60] sm:$0xff] %vm2514_vm0, %v9728_v0 }
 0x6e8   :  { %9751 = dma.done.wait [#allocation3], 16  }
 0x6e9   :  { %9752 = vsyncadd [#allocation3], 4294967280 }
 0x6ea   :  { %7226 = vsyncpa [#allocation3], 1 }

</bundles_post_ra>
